<compile_context>
chip_gen: v7x
topology: tpu7x:2x2x1
jax: 0.10.0
libtpu: 0.0.40
codegen_flags: <defaults>
</compile_context>

<pallas_src>
import functools
import math

import jax
import jax.numpy as jnp
from jax.experimental import pallas as pl
from jax.experimental.pallas import tpu as pltpu

BN_EPS = 1e-5
INV_SQRT2 = 1.0 / math.sqrt(2.0)


def _vmem():
    # Whole-array block resident in VMEM (all operands here are tiny).
    return pl.BlockSpec(memory_space=pltpu.MemorySpace.VMEM)


# ----------------------------- in-kernel math ------------------------------

def _erf_approx(x):
    # Abramowitz & Stegun 7.1.26.  The divide is an EUP approx reciprocal and
    # the exp also rides the EUP slot, so the polynomial is the only VPU work.
    p = 0.3275911
    a1, a2, a3, a4, a5 = (0.254829592, -0.284496736, 1.421413741,
                          -1.453152027, 1.061405429)
    ax = jnp.abs(x)
    t = pl.reciprocal(1.0 + p * ax, approx=True)
    poly = ((((a5 * t + a4) * t + a3) * t + a2) * t + a1) * t
    y = 1.0 - poly * jnp.exp(-ax * ax)
    return jnp.where(x < 0.0, -y, y)


def _gelu_exact(x):
    # torch.nn.GELU() default: 0.5 * x * (1 + erf(x / sqrt(2)))
    return 0.5 * x * (1.0 + _erf_approx(x * INV_SQRT2))


# ------------------------------ fused kernel --------------------------------

def _stage_kernel(feat_ref, img_ref, border_ref, pwf_ref, pwi_ref, pg_ref,
                  pb_ref, dw_ref, pw_ref, bng_ref, bnb_ref, o_ref,
                  *, n_batch, n_blocks, H, W, shrinkage):
    # Working layout: (C, M) with M = N*H*W and lane l = n*H*W + h*W + w.
    C = o_ref.shape[1]
    HW = H * W
    M = n_batch * HW
    inv_m = 1.0 / M

    # (1, M) border row-masks, loaded from a tiny VMEM input -- NOT four full
    # (C, M) masks pinned in vregs across the whole body.  The per-use
    # sublane-broadcast inside jnp.where is transient and cheap.
    w_first = border_ref[0] != 0
    w_last = border_ref[1] != 0
    h_first = border_ref[2] != 0
    h_last = border_ref[3] != 0

    def shift(x, amt):
        # out[:, l] = x[:, l - amt] (wrap-around; border masks fix the edges,
        # including the batch boundaries -- no cross-batch leakage).
        return pltpu.roll(x, shift=amt % M, axis=1)

    def dwconv3x3(x, i, p):
        # Depthwise 3x3 conv with replicate padding.  x: (C, M).
        # Taps are (C, 1) lane-0 tiles -> plain lane broadcast, no lane extract.
        left = jnp.where(w_first, x, shift(x, 1))      # x[h, max(w-1, 0)]
        right = jnp.where(w_last, x, shift(x, -1))     # x[h, min(w+1, W-1)]

        def row_combo(kh):
            base = 9 * p + 3 * kh                      # tap index kh*3+kw
            return (dw_ref[i, base + 0] * left
                    + dw_ref[i, base + 1] * x
                    + dw_ref[i, base + 2] * right)

        top, mid, bot = row_combo(0), row_combo(1), row_combo(2)
        out = mid
        out = out + jnp.where(h_first, top, shift(top, W))    # row max(h-1, 0)
        out = out + jnp.where(h_last, bot, shift(bot, -W))    # row min(h+1, H-1)
        return out

    def bn(x, g, b):
        # Training-mode BatchNorm2d: batch stats, biased variance, fp32.
        # Affine folded into one scale/shift (single mul-add per element).
        s = jnp.sum(x, axis=1, keepdims=True)
        ss = jnp.sum(x * x, axis=1, keepdims=True)
        mean = s * inv_m
        var = jnp.maximum(ss * inv_m - mean * mean, 0.0)   # guard cancellation
        scale = jax.lax.rsqrt(var + BN_EPS) * g
        return x * scale + (b - mean * scale)

    # Build the lane-dense (C, N*HW) slab from the (N, C, HW) inputs.  HW is a
    # multiple of 128 so this lane concat is pure tile placement (the N<->C
    # transpose never touches HBM / XLA).
    feat = jnp.concatenate([feat_ref[n] for n in range(n_batch)], axis=1)
    img = jnp.concatenate([img_ref[n] for n in range(n_batch)], axis=1)

    # Projection: Conv1x1(2C->C) on cat([features, image]) == Wf@feat + Wi@img.
    x = (jnp.dot(pwf_ref[...], feat, preferred_element_type=jnp.float32)
         + jnp.dot(pwi_ref[...], img, preferred_element_type=jnp.float32))
    x = bn(x, pg_ref[...], pb_ref[...])

    # 8 residual blocks under fori_loop: bounds live ranges; per-block weights
    # are re-read from VMEM each iteration (vld slot has slack).
    def block(i, x):
        h = x
        for p in range(2):                 # two DW3x3 -> PW1x1 -> BN -> GELU
            h = dwconv3x3(h, i, p)
            h = jnp.dot(pw_ref[i, p], h, preferred_element_type=jnp.float32)
            h = _gelu_exact(bn(h, bng_ref[i, p], bnb_ref[i, p]))
        return x + (h if shrinkage == 1.0 else shrinkage * h)

    x = jax.lax.fori_loop(0, n_blocks, block, x)

    # Scatter back to (N, C, HW); lane offsets are multiples of 128.
    for n in range(n_batch):
        o_ref[n] = x[:, n * HW:(n + 1) * HW]


# -------------------------------- wrapper ------------------------------------

def _border_masks(n_batch, H, W):
    # (4, 1, M) int32 rows: [w==0, w==W-1, h==0, h==H-1] in the flattened lane
    # index l = n*H*W + h*W + w.  Pure function of shapes -> constant under jit.
    M = n_batch * H * W
    lane = jnp.arange(M, dtype=jnp.int32)
    w_idx = lane % W
    h_idx = (lane // W) % H
    m = jnp.stack([w_idx == 0, w_idx == W - 1, h_idx == 0, h_idx == H - 1])
    return m.astype(jnp.int32).reshape(4, 1, M)


def convolutional_stage(features, image, params, *, shrinkage=1.0):
    """PyTorch ConvolutionalStage.forward(features, image); NCHW in/out."""
    N, C, H, W = features.shape
    HW = H * W

    # Free reshapes only -- no host-side transpose kernels.
    feat = features.reshape(N, C, HW)
    img = image.reshape(N, C, HW)
    border = _border_masks(N, H, W)
    n_blocks = params['dw'].shape[0]

    kernel = functools.partial(_stage_kernel, n_batch=N, n_blocks=n_blocks,
                               H=H, W=W, shrinkage=shrinkage)
    out = pl.pallas_call(
        kernel,
        out_shape=jax.ShapeDtypeStruct((N, C, HW), jnp.float32),
        in_specs=[_vmem()] * 11,
        out_specs=_vmem(),
    )(feat, img, border,
      params['proj_wf'], params['proj_wi'], params['proj_g'], params['proj_b'],
      params['dw'], params['pw'], params['bn_g'], params['bn_b'])

    return out.reshape(N, C, H, W)


# ------------------------------ parameters -----------------------------------

def init_params(key, c, n_blocks=8):
    # Deterministic synthetic init.  Shapes map 1:1 onto the torch weights:
    #   projection : torch (C, 2C, 1, 1) -> split [:, :C] (features), [:, C:] (image)
    #   pointwise  : torch (Cout, Cin, 1, 1) -> (Cout, Cin)
    #   depthwise  : torch (C, 1, 3, 3) -> taps as (C, 1) tiles at index
    #                9*conv_half + 3*kh + kw, i.e. shape (n_blocks, 18, C, 1)
    #   BN affine  : gamma=1, beta=0 (torch default init)
    keys = jax.random.split(key, 3)
    scale = 0.1
    proj_w = scale * jax.random.normal(keys[0], (c, 2 * c), jnp.float32)
    return {
        'proj_wf': proj_w[:, :c],                      # applied to features
        'proj_wi': proj_w[:, c:],                      # applied to image
        'proj_g': jnp.ones((c, 1), jnp.float32),
        'proj_b': jnp.zeros((c, 1), jnp.float32),
        'dw': scale * jax.random.normal(keys[1], (n_blocks, 18, c, 1),
                                        jnp.float32),
        'pw': scale * jax.random.normal(keys[2], (n_blocks, 2, c, c),
                                        jnp.float32),
        'bn_g': jnp.ones((n_blocks, 2, c, 1), jnp.float32),
        'bn_b': jnp.zeros((n_blocks, 2, c, 1), jnp.float32),
    }


# --------------------------------- main ---------------------------------------

if __name__ == "__main__":
    key = jax.random.PRNGKey(0)
    n_features = 16
    N, H, W = 2, 16, 16

    k_feat, k_img, k_par = jax.random.split(key, 3)
    features = jax.random.normal(k_feat, (N, n_features, H, W), jnp.float32)  # NCHW
    image = jax.random.normal(k_img, (N, n_features, H, W), jnp.float32)      # NCHW
    params = init_params(k_par, n_features)

    fwd = jax.jit(convolutional_stage)
    out = jax.block_until_ready(fwd(features, image, params))

    assert out.shape == (N, n_features, H, W), out.shape
    assert out.dtype == jnp.float32
    assert bool(jnp.all(jnp.isfinite(out)))
    print("KERNEL_OK")
</pallas_src>

<mosaic_0001>
module attributes {stable_mosaic.version = 11 : i64} {
  func.func @_stage_kernel(%arg0: memref<2x16x256xf32, #tpu.memory_space<vmem>>, %arg1: memref<2x16x256xf32, #tpu.memory_space<vmem>>, %arg2: memref<4x1x512xi32, #tpu.memory_space<vmem>>, %arg3: memref<16x16xf32, #tpu.memory_space<vmem>>, %arg4: memref<16x16xf32, #tpu.memory_space<vmem>>, %arg5: memref<16x1xf32, #tpu.memory_space<vmem>>, %arg6: memref<16x1xf32, #tpu.memory_space<vmem>>, %arg7: memref<8x18x16x1xf32, #tpu.memory_space<vmem>>, %arg8: memref<8x2x16x16xf32, #tpu.memory_space<vmem>>, %arg9: memref<8x2x16x1xf32, #tpu.memory_space<vmem>>, %arg10: memref<8x2x16x1xf32, #tpu.memory_space<vmem>>, %arg11: memref<2x16x256xf32, #tpu.memory_space<vmem>>) attributes {dimension_semantics = [], scalar_prefetch = 0 : i64, scratch_operands = 0 : i64, tpu.core_type = #tpu.core_type<tc>} {
    %c0 = arith.constant 0 : index
    %c0_0 = arith.constant 0 : index
    %c0_1 = arith.constant 0 : index
    %0 = vector.load %arg2[%c0, %c0_0, %c0_1] : memref<4x1x512xi32, #tpu.memory_space<vmem>>, vector<1x1x512xi32>
    %1 = vector.shape_cast %0 : vector<1x1x512xi32> to vector<1x512xi32>
    %c0_i32 = arith.constant 0 : i32
    %2 = vector.broadcast %c0_i32 : i32 to vector<1x512xi32>
    %3 = arith.cmpi ne, %1, %2 : vector<1x512xi32>
    %c1 = arith.constant 1 : index
    %c0_2 = arith.constant 0 : index
    %c0_3 = arith.constant 0 : index
    %4 = vector.load %arg2[%c1, %c0_2, %c0_3] : memref<4x1x512xi32, #tpu.memory_space<vmem>>, vector<1x1x512xi32>
    %5 = vector.shape_cast %4 : vector<1x1x512xi32> to vector<1x512xi32>
    %c0_i32_4 = arith.constant 0 : i32
    %6 = vector.broadcast %c0_i32_4 : i32 to vector<1x512xi32>
    %7 = arith.cmpi ne, %5, %6 : vector<1x512xi32>
    %c2 = arith.constant 2 : index
    %c0_5 = arith.constant 0 : index
    %c0_6 = arith.constant 0 : index
    %8 = vector.load %arg2[%c2, %c0_5, %c0_6] : memref<4x1x512xi32, #tpu.memory_space<vmem>>, vector<1x1x512xi32>
    %9 = vector.shape_cast %8 : vector<1x1x512xi32> to vector<1x512xi32>
    %c0_i32_7 = arith.constant 0 : i32
    %10 = vector.broadcast %c0_i32_7 : i32 to vector<1x512xi32>
    %11 = arith.cmpi ne, %9, %10 : vector<1x512xi32>
    %c3 = arith.constant 3 : index
    %c0_8 = arith.constant 0 : index
    %c0_9 = arith.constant 0 : index
    %12 = vector.load %arg2[%c3, %c0_8, %c0_9] : memref<4x1x512xi32, #tpu.memory_space<vmem>>, vector<1x1x512xi32>
    %13 = vector.shape_cast %12 : vector<1x1x512xi32> to vector<1x512xi32>
    %c0_i32_10 = arith.constant 0 : i32
    %14 = vector.broadcast %c0_i32_10 : i32 to vector<1x512xi32>
    %15 = arith.cmpi ne, %13, %14 : vector<1x512xi32>
    %c0_11 = arith.constant 0 : index
    %c0_12 = arith.constant 0 : index
    %c0_13 = arith.constant 0 : index
    %16 = vector.load %arg0[%c0_11, %c0_12, %c0_13] : memref<2x16x256xf32, #tpu.memory_space<vmem>>, vector<1x16x256xf32>
    %17 = vector.shape_cast %16 : vector<1x16x256xf32> to vector<16x256xf32>
    %c1_14 = arith.constant 1 : index
    %c0_15 = arith.constant 0 : index
    %c0_16 = arith.constant 0 : index
    %18 = vector.load %arg0[%c1_14, %c0_15, %c0_16] : memref<2x16x256xf32, #tpu.memory_space<vmem>>, vector<1x16x256xf32>
    %19 = vector.shape_cast %18 : vector<1x16x256xf32> to vector<16x256xf32>
    %20 = tpu.concatenate %17, %19 in 1 : vector<16x256xf32>, vector<16x256xf32> -> vector<16x512xf32>
    %c0_17 = arith.constant 0 : index
    %c0_18 = arith.constant 0 : index
    %c0_19 = arith.constant 0 : index
    %21 = vector.load %arg1[%c0_17, %c0_18, %c0_19] : memref<2x16x256xf32, #tpu.memory_space<vmem>>, vector<1x16x256xf32>
    %22 = vector.shape_cast %21 : vector<1x16x256xf32> to vector<16x256xf32>
    %c1_20 = arith.constant 1 : index
    %c0_21 = arith.constant 0 : index
    %c0_22 = arith.constant 0 : index
    %23 = vector.load %arg1[%c1_20, %c0_21, %c0_22] : memref<2x16x256xf32, #tpu.memory_space<vmem>>, vector<1x16x256xf32>
    %24 = vector.shape_cast %23 : vector<1x16x256xf32> to vector<16x256xf32>
    %25 = tpu.concatenate %22, %24 in 1 : vector<16x256xf32>, vector<16x256xf32> -> vector<16x512xf32>
    %c0_23 = arith.constant 0 : index
    %c0_24 = arith.constant 0 : index
    %26 = vector.load %arg3[%c0_23, %c0_24] : memref<16x16xf32, #tpu.memory_space<vmem>>, vector<16x16xf32>
    %cst = arith.constant dense<0.000000e+00> : vector<16x512xf32>
    %27 = tpu.matmul %26, %20, %cst {dimension_numbers = #tpu.dot_dimension_numbers<[1], [0], [0], [1], [0, 0, 1, 1], [], []>} : vector<16x16xf32>, vector<16x512xf32>, vector<16x512xf32> -> vector<16x512xf32>
    %c0_25 = arith.constant 0 : index
    %c0_26 = arith.constant 0 : index
    %28 = vector.load %arg4[%c0_25, %c0_26] : memref<16x16xf32, #tpu.memory_space<vmem>>, vector<16x16xf32>
    %cst_27 = arith.constant dense<0.000000e+00> : vector<16x512xf32>
    %29 = tpu.matmul %28, %25, %cst_27 {dimension_numbers = #tpu.dot_dimension_numbers<[1], [0], [0], [1], [0, 0, 1, 1], [], []>} : vector<16x16xf32>, vector<16x512xf32>, vector<16x512xf32> -> vector<16x512xf32>
    %30 = arith.addf %27, %29 : vector<16x512xf32>
    %c0_28 = arith.constant 0 : index
    %c0_29 = arith.constant 0 : index
    %31 = vector.load %arg5[%c0_28, %c0_29] : memref<16x1xf32, #tpu.memory_space<vmem>>, vector<16x1xf32>
    %c0_30 = arith.constant 0 : index
    %c0_31 = arith.constant 0 : index
    %32 = vector.load %arg6[%c0_30, %c0_31] : memref<16x1xf32, #tpu.memory_space<vmem>>, vector<16x1xf32>
    %cst_32 = arith.constant dense<0.000000e+00> : vector<16xf32>
    %33 = vector.multi_reduction <add>, %30, %cst_32 [1] : vector<16x512xf32> to vector<16xf32>
    %34 = vector.shape_cast %33 : vector<16xf32> to vector<16x1xf32>
    %35 = arith.mulf %30, %30 : vector<16x512xf32>
    %cst_33 = arith.constant dense<0.000000e+00> : vector<16xf32>
    %36 = vector.multi_reduction <add>, %35, %cst_33 [1] : vector<16x512xf32> to vector<16xf32>
    %37 = vector.shape_cast %36 : vector<16xf32> to vector<16x1xf32>
    %cst_34 = arith.constant 0.001953125 : f32
    %38 = vector.broadcast %cst_34 : f32 to vector<16x1xf32>
    %39 = arith.mulf %34, %38 : vector<16x1xf32>
    %cst_35 = arith.constant 0.001953125 : f32
    %40 = vector.broadcast %cst_35 : f32 to vector<16x1xf32>
    %41 = arith.mulf %37, %40 : vector<16x1xf32>
    %42 = arith.mulf %39, %39 : vector<16x1xf32>
    %43 = arith.subf %41, %42 : vector<16x1xf32>
    %cst_36 = arith.constant 0.000000e+00 : f32
    %44 = vector.broadcast %cst_36 : f32 to vector<16x1xf32>
    %45 = arith.maximumf %43, %44 : vector<16x1xf32>
    %cst_37 = arith.constant 9.99999974E-6 : f32
    %46 = vector.broadcast %cst_37 : f32 to vector<16x1xf32>
    %47 = arith.addf %45, %46 : vector<16x1xf32>
    %48 = math.rsqrt %47 : vector<16x1xf32>
    %49 = arith.mulf %48, %31 : vector<16x1xf32>
    %50 = vector.broadcast %49 : vector<16x1xf32> to vector<16x512xf32>
    %51 = arith.mulf %30, %50 : vector<16x512xf32>
    %52 = arith.mulf %39, %49 : vector<16x1xf32>
    %53 = arith.subf %32, %52 : vector<16x1xf32>
    %54 = vector.broadcast %53 : vector<16x1xf32> to vector<16x512xf32>
    %55 = arith.addf %51, %54 : vector<16x512xf32>
    %c0_i32_38 = arith.constant 0 : i32
    %c8_i32 = arith.constant 8 : i32
    %56 = arith.addi %c0_i32_38, %c8_i32 : i32
    %c1_i32 = arith.constant 1 : i32
    %57 = scf.for %arg12 = %c0_i32_38 to %56 step %c1_i32 iter_args(%arg13 = %55) -> (vector<16x512xf32>)  : i32 {
      %c1_i32_46 = arith.constant 1 : i32
      %66 = tpu.dynamic_rotate %arg13 by %c1_i32_46 dim 1 : vector<16x512xf32>, i32 -> vector<16x512xf32>
      %67 = vector.shape_cast %3 : vector<1x512xi1> to vector<1x512xi1>
      %68 = vector.broadcast %67 : vector<1x512xi1> to vector<16x512xi1>
      %69 = arith.select %68, %arg13, %66 : vector<16x512xi1>, vector<16x512xf32>
      %c511_i32 = arith.constant 511 : i32
      %70 = tpu.dynamic_rotate %arg13 by %c511_i32 dim 1 : vector<16x512xf32>, i32 -> vector<16x512xf32>
      %71 = vector.shape_cast %7 : vector<1x512xi1> to vector<1x512xi1>
      %72 = vector.broadcast %71 : vector<1x512xi1> to vector<16x512xi1>
      %73 = arith.select %72, %arg13, %70 : vector<16x512xi1>, vector<16x512xf32>
      %74 = arith.index_cast %arg12 : i32 to index
      %c0_47 = arith.constant 0 : index
      %c0_48 = arith.constant 0 : index
      %c0_49 = arith.constant 0 : index
      %75 = vector.load %arg7[%74, %c0_47, %c0_48, %c0_49] : memref<8x18x16x1xf32, #tpu.memory_space<vmem>>, vector<1x1x16x1xf32>
      %76 = vector.shape_cast %75 : vector<1x1x16x1xf32> to vector<16x1xf32>
      %77 = vector.broadcast %76 : vector<16x1xf32> to vector<16x512xf32>
      %78 = arith.mulf %77, %69 : vector<16x512xf32>
      %79 = arith.index_cast %arg12 : i32 to index
      %c1_50 = arith.constant 1 : index
      %c0_51 = arith.constant 0 : index
      %c0_52 = arith.constant 0 : index
      %80 = vector.load %arg7[%79, %c1_50, %c0_51, %c0_52] : memref<8x18x16x1xf32, #tpu.memory_space<vmem>>, vector<1x1x16x1xf32>
      %81 = vector.shape_cast %80 : vector<1x1x16x1xf32> to vector<16x1xf32>
      %82 = vector.broadcast %81 : vector<16x1xf32> to vector<16x512xf32>
      %83 = arith.mulf %82, %arg13 : vector<16x512xf32>
      %84 = arith.addf %78, %83 : vector<16x512xf32>
      %85 = arith.index_cast %arg12 : i32 to index
      %c2_53 = arith.constant 2 : index
      %c0_54 = arith.constant 0 : index
      %c0_55 = arith.constant 0 : index
      %86 = vector.load %arg7[%85, %c2_53, %c0_54, %c0_55] : memref<8x18x16x1xf32, #tpu.memory_space<vmem>>, vector<1x1x16x1xf32>
      %87 = vector.shape_cast %86 : vector<1x1x16x1xf32> to vector<16x1xf32>
      %88 = vector.broadcast %87 : vector<16x1xf32> to vector<16x512xf32>
      %89 = arith.mulf %88, %73 : vector<16x512xf32>
      %90 = arith.addf %84, %89 : vector<16x512xf32>
      %91 = arith.index_cast %arg12 : i32 to index
      %c3_56 = arith.constant 3 : index
      %c0_57 = arith.constant 0 : index
      %c0_58 = arith.constant 0 : index
      %92 = vector.load %arg7[%91, %c3_56, %c0_57, %c0_58] : memref<8x18x16x1xf32, #tpu.memory_space<vmem>>, vector<1x1x16x1xf32>
      %93 = vector.shape_cast %92 : vector<1x1x16x1xf32> to vector<16x1xf32>
      %94 = vector.broadcast %93 : vector<16x1xf32> to vector<16x512xf32>
      %95 = arith.mulf %94, %69 : vector<16x512xf32>
      %96 = arith.index_cast %arg12 : i32 to index
      %c4 = arith.constant 4 : index
      %c0_59 = arith.constant 0 : index
      %c0_60 = arith.constant 0 : index
      %97 = vector.load %arg7[%96, %c4, %c0_59, %c0_60] : memref<8x18x16x1xf32, #tpu.memory_space<vmem>>, vector<1x1x16x1xf32>
      %98 = vector.shape_cast %97 : vector<1x1x16x1xf32> to vector<16x1xf32>
      %99 = vector.broadcast %98 : vector<16x1xf32> to vector<16x512xf32>
      %100 = arith.mulf %99, %arg13 : vector<16x512xf32>
      %101 = arith.addf %95, %100 : vector<16x512xf32>
      %102 = arith.index_cast %arg12 : i32 to index
      %c5 = arith.constant 5 : index
      %c0_61 = arith.constant 0 : index
      %c0_62 = arith.constant 0 : index
      %103 = vector.load %arg7[%102, %c5, %c0_61, %c0_62] : memref<8x18x16x1xf32, #tpu.memory_space<vmem>>, vector<1x1x16x1xf32>
      %104 = vector.shape_cast %103 : vector<1x1x16x1xf32> to vector<16x1xf32>
      %105 = vector.broadcast %104 : vector<16x1xf32> to vector<16x512xf32>
      %106 = arith.mulf %105, %73 : vector<16x512xf32>
      %107 = arith.addf %101, %106 : vector<16x512xf32>
      %108 = arith.index_cast %arg12 : i32 to index
      %c6 = arith.constant 6 : index
      %c0_63 = arith.constant 0 : index
      %c0_64 = arith.constant 0 : index
      %109 = vector.load %arg7[%108, %c6, %c0_63, %c0_64] : memref<8x18x16x1xf32, #tpu.memory_space<vmem>>, vector<1x1x16x1xf32>
      %110 = vector.shape_cast %109 : vector<1x1x16x1xf32> to vector<16x1xf32>
      %111 = vector.broadcast %110 : vector<16x1xf32> to vector<16x512xf32>
      %112 = arith.mulf %111, %69 : vector<16x512xf32>
      %113 = arith.index_cast %arg12 : i32 to index
      %c7 = arith.constant 7 : index
      %c0_65 = arith.constant 0 : index
      %c0_66 = arith.constant 0 : index
      %114 = vector.load %arg7[%113, %c7, %c0_65, %c0_66] : memref<8x18x16x1xf32, #tpu.memory_space<vmem>>, vector<1x1x16x1xf32>
      %115 = vector.shape_cast %114 : vector<1x1x16x1xf32> to vector<16x1xf32>
      %116 = vector.broadcast %115 : vector<16x1xf32> to vector<16x512xf32>
      %117 = arith.mulf %116, %arg13 : vector<16x512xf32>
      %118 = arith.addf %112, %117 : vector<16x512xf32>
      %119 = arith.index_cast %arg12 : i32 to index
      %c8 = arith.constant 8 : index
      %c0_67 = arith.constant 0 : index
      %c0_68 = arith.constant 0 : index
      %120 = vector.load %arg7[%119, %c8, %c0_67, %c0_68] : memref<8x18x16x1xf32, #tpu.memory_space<vmem>>, vector<1x1x16x1xf32>
      %121 = vector.shape_cast %120 : vector<1x1x16x1xf32> to vector<16x1xf32>
      %122 = vector.broadcast %121 : vector<16x1xf32> to vector<16x512xf32>
      %123 = arith.mulf %122, %73 : vector<16x512xf32>
      %124 = arith.addf %118, %123 : vector<16x512xf32>
      %c16_i32 = arith.constant 16 : i32
      %125 = tpu.dynamic_rotate %90 by %c16_i32 dim 1 : vector<16x512xf32>, i32 -> vector<16x512xf32>
      %126 = vector.shape_cast %11 : vector<1x512xi1> to vector<1x512xi1>
      %127 = vector.broadcast %126 : vector<1x512xi1> to vector<16x512xi1>
      %128 = arith.select %127, %90, %125 : vector<16x512xi1>, vector<16x512xf32>
      %129 = arith.addf %107, %128 : vector<16x512xf32>
      %c496_i32 = arith.constant 496 : i32
      %130 = tpu.dynamic_rotate %124 by %c496_i32 dim 1 : vector<16x512xf32>, i32 -> vector<16x512xf32>
      %131 = vector.shape_cast %15 : vector<1x512xi1> to vector<1x512xi1>
      %132 = vector.broadcast %131 : vector<1x512xi1> to vector<16x512xi1>
      %133 = arith.select %132, %124, %130 : vector<16x512xi1>, vector<16x512xf32>
      %134 = arith.addf %129, %133 : vector<16x512xf32>
      %135 = arith.index_cast %arg12 : i32 to index
      %c0_69 = arith.constant 0 : index
      %c0_70 = arith.constant 0 : index
      %c0_71 = arith.constant 0 : index
      %136 = vector.load %arg8[%135, %c0_69, %c0_70, %c0_71] : memref<8x2x16x16xf32, #tpu.memory_space<vmem>>, vector<1x1x16x16xf32>
      %137 = vector.shape_cast %136 : vector<1x1x16x16xf32> to vector<16x16xf32>
      %cst_72 = arith.constant dense<0.000000e+00> : vector<16x512xf32>
      %138 = tpu.matmul %137, %134, %cst_72 {dimension_numbers = #tpu.dot_dimension_numbers<[1], [0], [0], [1], [0, 0, 1, 1], [], []>} : vector<16x16xf32>, vector<16x512xf32>, vector<16x512xf32> -> vector<16x512xf32>
      %139 = arith.index_cast %arg12 : i32 to index
      %c0_73 = arith.constant 0 : index
      %c0_74 = arith.constant 0 : index
      %c0_75 = arith.constant 0 : index
      %140 = vector.load %arg9[%139, %c0_73, %c0_74, %c0_75] : memref<8x2x16x1xf32, #tpu.memory_space<vmem>>, vector<1x1x16x1xf32>
      %141 = vector.shape_cast %140 : vector<1x1x16x1xf32> to vector<16x1xf32>
      %142 = arith.index_cast %arg12 : i32 to index
      %c0_76 = arith.constant 0 : index
      %c0_77 = arith.constant 0 : index
      %c0_78 = arith.constant 0 : index
      %143 = vector.load %arg10[%142, %c0_76, %c0_77, %c0_78] : memref<8x2x16x1xf32, #tpu.memory_space<vmem>>, vector<1x1x16x1xf32>
      %144 = vector.shape_cast %143 : vector<1x1x16x1xf32> to vector<16x1xf32>
      %cst_79 = arith.constant dense<0.000000e+00> : vector<16xf32>
      %145 = vector.multi_reduction <add>, %138, %cst_79 [1] : vector<16x512xf32> to vector<16xf32>
      %146 = vector.shape_cast %145 : vector<16xf32> to vector<16x1xf32>
      %147 = arith.mulf %138, %138 : vector<16x512xf32>
      %cst_80 = arith.constant dense<0.000000e+00> : vector<16xf32>
      %148 = vector.multi_reduction <add>, %147, %cst_80 [1] : vector<16x512xf32> to vector<16xf32>
      %149 = vector.shape_cast %148 : vector<16xf32> to vector<16x1xf32>
      %cst_81 = arith.constant 0.001953125 : f32
      %150 = vector.broadcast %cst_81 : f32 to vector<16x1xf32>
      %151 = arith.mulf %146, %150 : vector<16x1xf32>
      %cst_82 = arith.constant 0.001953125 : f32
      %152 = vector.broadcast %cst_82 : f32 to vector<16x1xf32>
      %153 = arith.mulf %149, %152 : vector<16x1xf32>
      %154 = arith.mulf %151, %151 : vector<16x1xf32>
      %155 = arith.subf %153, %154 : vector<16x1xf32>
      %cst_83 = arith.constant 0.000000e+00 : f32
      %156 = vector.broadcast %cst_83 : f32 to vector<16x1xf32>
      %157 = arith.maximumf %155, %156 : vector<16x1xf32>
      %cst_84 = arith.constant 9.99999974E-6 : f32
      %158 = vector.broadcast %cst_84 : f32 to vector<16x1xf32>
      %159 = arith.addf %157, %158 : vector<16x1xf32>
      %160 = math.rsqrt %159 : vector<16x1xf32>
      %161 = arith.mulf %160, %141 : vector<16x1xf32>
      %162 = vector.broadcast %161 : vector<16x1xf32> to vector<16x512xf32>
      %163 = arith.mulf %138, %162 : vector<16x512xf32>
      %164 = arith.mulf %151, %161 : vector<16x1xf32>
      %165 = arith.subf %144, %164 : vector<16x1xf32>
      %166 = vector.broadcast %165 : vector<16x1xf32> to vector<16x512xf32>
      %167 = arith.addf %163, %166 : vector<16x512xf32>
      %cst_85 = arith.constant 5.000000e-01 : f32
      %168 = vector.broadcast %cst_85 : f32 to vector<16x512xf32>
      %169 = arith.mulf %168, %167 : vector<16x512xf32>
      %cst_86 = arith.constant 0.707106769 : f32
      %170 = vector.broadcast %cst_86 : f32 to vector<16x512xf32>
      %171 = arith.mulf %167, %170 : vector<16x512xf32>
      %172 = math.absf %171 : vector<16x512xf32>
      %cst_87 = arith.constant 0.327591091 : f32
      %173 = vector.broadcast %cst_87 : f32 to vector<16x512xf32>
      %174 = arith.mulf %173, %172 : vector<16x512xf32>
      %cst_88 = arith.constant 1.000000e+00 : f32
      %175 = vector.broadcast %cst_88 : f32 to vector<16x512xf32>
      %176 = arith.addf %175, %174 : vector<16x512xf32>
      %177 = tpu.reciprocal %176 {approx = true} : vector<16x512xf32> -> vector<16x512xf32>
      %cst_89 = arith.constant 1.06140542 : f32
      %178 = vector.broadcast %cst_89 : f32 to vector<16x512xf32>
      %179 = arith.mulf %178, %177 : vector<16x512xf32>
      %cst_90 = arith.constant -1.45315206 : f32
      %180 = vector.broadcast %cst_90 : f32 to vector<16x512xf32>
      %181 = arith.addf %179, %180 : vector<16x512xf32>
      %182 = arith.mulf %181, %177 : vector<16x512xf32>
      %cst_91 = arith.constant 1.42141378 : f32
      %183 = vector.broadcast %cst_91 : f32 to vector<16x512xf32>
      %184 = arith.addf %182, %183 : vector<16x512xf32>
      %185 = arith.mulf %184, %177 : vector<16x512xf32>
      %cst_92 = arith.constant -0.284496725 : f32
      %186 = vector.broadcast %cst_92 : f32 to vector<16x512xf32>
      %187 = arith.addf %185, %186 : vector<16x512xf32>
      %188 = arith.mulf %187, %177 : vector<16x512xf32>
      %cst_93 = arith.constant 0.254829586 : f32
      %189 = vector.broadcast %cst_93 : f32 to vector<16x512xf32>
      %190 = arith.addf %188, %189 : vector<16x512xf32>
      %191 = arith.mulf %190, %177 : vector<16x512xf32>
      %cst_94 = arith.constant 0.000000e+00 : f32
      %192 = vector.broadcast %cst_94 : f32 to vector<16x512xf32>
      %193 = arith.subf %192, %172 : vector<16x512xf32>
      %194 = arith.mulf %193, %172 : vector<16x512xf32>
      %195 = math.exp %194 : vector<16x512xf32>
      %196 = arith.mulf %191, %195 : vector<16x512xf32>
      %cst_95 = arith.constant 1.000000e+00 : f32
      %197 = vector.broadcast %cst_95 : f32 to vector<16x512xf32>
      %198 = arith.subf %197, %196 : vector<16x512xf32>
      %cst_96 = arith.constant 0.000000e+00 : f32
      %199 = vector.broadcast %cst_96 : f32 to vector<16x512xf32>
      %200 = arith.cmpf olt, %171, %199 : vector<16x512xf32>
      %cst_97 = arith.constant 0.000000e+00 : f32
      %201 = vector.broadcast %cst_97 : f32 to vector<16x512xf32>
      %202 = arith.subf %201, %198 : vector<16x512xf32>
      %203 = arith.select %200, %202, %198 : vector<16x512xi1>, vector<16x512xf32>
      %cst_98 = arith.constant 1.000000e+00 : f32
      %204 = vector.broadcast %cst_98 : f32 to vector<16x512xf32>
      %205 = arith.addf %204, %203 : vector<16x512xf32>
      %206 = arith.mulf %169, %205 : vector<16x512xf32>
      %c1_i32_99 = arith.constant 1 : i32
      %207 = tpu.dynamic_rotate %206 by %c1_i32_99 dim 1 : vector<16x512xf32>, i32 -> vector<16x512xf32>
      %208 = vector.shape_cast %3 : vector<1x512xi1> to vector<1x512xi1>
      %209 = vector.broadcast %208 : vector<1x512xi1> to vector<16x512xi1>
      %210 = arith.select %209, %206, %207 : vector<16x512xi1>, vector<16x512xf32>
      %c511_i32_100 = arith.constant 511 : i32
      %211 = tpu.dynamic_rotate %206 by %c511_i32_100 dim 1 : vector<16x512xf32>, i32 -> vector<16x512xf32>
      %212 = vector.shape_cast %7 : vector<1x512xi1> to vector<1x512xi1>
      %213 = vector.broadcast %212 : vector<1x512xi1> to vector<16x512xi1>
      %214 = arith.select %213, %206, %211 : vector<16x512xi1>, vector<16x512xf32>
      %215 = arith.index_cast %arg12 : i32 to index
      %c9 = arith.constant 9 : index
      %c0_101 = arith.constant 0 : index
      %c0_102 = arith.constant 0 : index
      %216 = vector.load %arg7[%215, %c9, %c0_101, %c0_102] : memref<8x18x16x1xf32, #tpu.memory_space<vmem>>, vector<1x1x16x1xf32>
      %217 = vector.shape_cast %216 : vector<1x1x16x1xf32> to vector<16x1xf32>
      %218 = vector.broadcast %217 : vector<16x1xf32> to vector<16x512xf32>
      %219 = arith.mulf %218, %210 : vector<16x512xf32>
      %220 = arith.index_cast %arg12 : i32 to index
      %c10 = arith.constant 10 : index
      %c0_103 = arith.constant 0 : index
      %c0_104 = arith.constant 0 : index
      %221 = vector.load %arg7[%220, %c10, %c0_103, %c0_104] : memref<8x18x16x1xf32, #tpu.memory_space<vmem>>, vector<1x1x16x1xf32>
      %222 = vector.shape_cast %221 : vector<1x1x16x1xf32> to vector<16x1xf32>
      %223 = vector.broadcast %222 : vector<16x1xf32> to vector<16x512xf32>
      %224 = arith.mulf %223, %206 : vector<16x512xf32>
      %225 = arith.addf %219, %224 : vector<16x512xf32>
      %226 = arith.index_cast %arg12 : i32 to index
      %c11 = arith.constant 11 : index
      %c0_105 = arith.constant 0 : index
      %c0_106 = arith.constant 0 : index
      %227 = vector.load %arg7[%226, %c11, %c0_105, %c0_106] : memref<8x18x16x1xf32, #tpu.memory_space<vmem>>, vector<1x1x16x1xf32>
      %228 = vector.shape_cast %227 : vector<1x1x16x1xf32> to vector<16x1xf32>
      %229 = vector.broadcast %228 : vector<16x1xf32> to vector<16x512xf32>
      %230 = arith.mulf %229, %214 : vector<16x512xf32>
      %231 = arith.addf %225, %230 : vector<16x512xf32>
      %232 = arith.index_cast %arg12 : i32 to index
      %c12 = arith.constant 12 : index
      %c0_107 = arith.constant 0 : index
      %c0_108 = arith.constant 0 : index
      %233 = vector.load %arg7[%232, %c12, %c0_107, %c0_108] : memref<8x18x16x1xf32, #tpu.memory_space<vmem>>, vector<1x1x16x1xf32>
      %234 = vector.shape_cast %233 : vector<1x1x16x1xf32> to vector<16x1xf32>
      %235 = vector.broadcast %234 : vector<16x1xf32> to vector<16x512xf32>
      %236 = arith.mulf %235, %210 : vector<16x512xf32>
      %237 = arith.index_cast %arg12 : i32 to index
      %c13 = arith.constant 13 : index
      %c0_109 = arith.constant 0 : index
      %c0_110 = arith.constant 0 : index
      %238 = vector.load %arg7[%237, %c13, %c0_109, %c0_110] : memref<8x18x16x1xf32, #tpu.memory_space<vmem>>, vector<1x1x16x1xf32>
      %239 = vector.shape_cast %238 : vector<1x1x16x1xf32> to vector<16x1xf32>
      %240 = vector.broadcast %239 : vector<16x1xf32> to vector<16x512xf32>
      %241 = arith.mulf %240, %206 : vector<16x512xf32>
      %242 = arith.addf %236, %241 : vector<16x512xf32>
      %243 = arith.index_cast %arg12 : i32 to index
      %c14 = arith.constant 14 : index
      %c0_111 = arith.constant 0 : index
      %c0_112 = arith.constant 0 : index
      %244 = vector.load %arg7[%243, %c14, %c0_111, %c0_112] : memref<8x18x16x1xf32, #tpu.memory_space<vmem>>, vector<1x1x16x1xf32>
      %245 = vector.shape_cast %244 : vector<1x1x16x1xf32> to vector<16x1xf32>
      %246 = vector.broadcast %245 : vector<16x1xf32> to vector<16x512xf32>
      %247 = arith.mulf %246, %214 : vector<16x512xf32>
      %248 = arith.addf %242, %247 : vector<16x512xf32>
      %249 = arith.index_cast %arg12 : i32 to index
      %c15 = arith.constant 15 : index
      %c0_113 = arith.constant 0 : index
      %c0_114 = arith.constant 0 : index
      %250 = vector.load %arg7[%249, %c15, %c0_113, %c0_114] : memref<8x18x16x1xf32, #tpu.memory_space<vmem>>, vector<1x1x16x1xf32>
      %251 = vector.shape_cast %250 : vector<1x1x16x1xf32> to vector<16x1xf32>
      %252 = vector.broadcast %251 : vector<16x1xf32> to vector<16x512xf32>
      %253 = arith.mulf %252, %210 : vector<16x512xf32>
      %254 = arith.index_cast %arg12 : i32 to index
      %c16 = arith.constant 16 : index
      %c0_115 = arith.constant 0 : index
      %c0_116 = arith.constant 0 : index
      %255 = vector.load %arg7[%254, %c16, %c0_115, %c0_116] : memref<8x18x16x1xf32, #tpu.memory_space<vmem>>, vector<1x1x16x1xf32>
      %256 = vector.shape_cast %255 : vector<1x1x16x1xf32> to vector<16x1xf32>
      %257 = vector.broadcast %256 : vector<16x1xf32> to vector<16x512xf32>
      %258 = arith.mulf %257, %206 : vector<16x512xf32>
      %259 = arith.addf %253, %258 : vector<16x512xf32>
      %260 = arith.index_cast %arg12 : i32 to index
      %c17 = arith.constant 17 : index
      %c0_117 = arith.constant 0 : index
      %c0_118 = arith.constant 0 : index
      %261 = vector.load %arg7[%260, %c17, %c0_117, %c0_118] : memref<8x18x16x1xf32, #tpu.memory_space<vmem>>, vector<1x1x16x1xf32>
      %262 = vector.shape_cast %261 : vector<1x1x16x1xf32> to vector<16x1xf32>
      %263 = vector.broadcast %262 : vector<16x1xf32> to vector<16x512xf32>
      %264 = arith.mulf %263, %214 : vector<16x512xf32>
      %265 = arith.addf %259, %264 : vector<16x512xf32>
      %c16_i32_119 = arith.constant 16 : i32
      %266 = tpu.dynamic_rotate %231 by %c16_i32_119 dim 1 : vector<16x512xf32>, i32 -> vector<16x512xf32>
      %267 = vector.shape_cast %11 : vector<1x512xi1> to vector<1x512xi1>
      %268 = vector.broadcast %267 : vector<1x512xi1> to vector<16x512xi1>
      %269 = arith.select %268, %231, %266 : vector<16x512xi1>, vector<16x512xf32>
      %270 = arith.addf %248, %269 : vector<16x512xf32>
      %c496_i32_120 = arith.constant 496 : i32
      %271 = tpu.dynamic_rotate %265 by %c496_i32_120 dim 1 : vector<16x512xf32>, i32 -> vector<16x512xf32>
      %272 = vector.shape_cast %15 : vector<1x512xi1> to vector<1x512xi1>
      %273 = vector.broadcast %272 : vector<1x512xi1> to vector<16x512xi1>
      %274 = arith.select %273, %265, %271 : vector<16x512xi1>, vector<16x512xf32>
      %275 = arith.addf %270, %274 : vector<16x512xf32>
      %276 = arith.index_cast %arg12 : i32 to index
      %c1_121 = arith.constant 1 : index
      %c0_122 = arith.constant 0 : index
      %c0_123 = arith.constant 0 : index
      %277 = vector.load %arg8[%276, %c1_121, %c0_122, %c0_123] : memref<8x2x16x16xf32, #tpu.memory_space<vmem>>, vector<1x1x16x16xf32>
      %278 = vector.shape_cast %277 : vector<1x1x16x16xf32> to vector<16x16xf32>
      %cst_124 = arith.constant dense<0.000000e+00> : vector<16x512xf32>
      %279 = tpu.matmul %278, %275, %cst_124 {dimension_numbers = #tpu.dot_dimension_numbers<[1], [0], [0], [1], [0, 0, 1, 1], [], []>} : vector<16x16xf32>, vector<16x512xf32>, vector<16x512xf32> -> vector<16x512xf32>
      %280 = arith.index_cast %arg12 : i32 to index
      %c1_125 = arith.constant 1 : index
      %c0_126 = arith.constant 0 : index
      %c0_127 = arith.constant 0 : index
      %281 = vector.load %arg9[%280, %c1_125, %c0_126, %c0_127] : memref<8x2x16x1xf32, #tpu.memory_space<vmem>>, vector<1x1x16x1xf32>
      %282 = vector.shape_cast %281 : vector<1x1x16x1xf32> to vector<16x1xf32>
      %283 = arith.index_cast %arg12 : i32 to index
      %c1_128 = arith.constant 1 : index
      %c0_129 = arith.constant 0 : index
      %c0_130 = arith.constant 0 : index
      %284 = vector.load %arg10[%283, %c1_128, %c0_129, %c0_130] : memref<8x2x16x1xf32, #tpu.memory_space<vmem>>, vector<1x1x16x1xf32>
      %285 = vector.shape_cast %284 : vector<1x1x16x1xf32> to vector<16x1xf32>
      %cst_131 = arith.constant dense<0.000000e+00> : vector<16xf32>
      %286 = vector.multi_reduction <add>, %279, %cst_131 [1] : vector<16x512xf32> to vector<16xf32>
      %287 = vector.shape_cast %286 : vector<16xf32> to vector<16x1xf32>
      %288 = arith.mulf %279, %279 : vector<16x512xf32>
      %cst_132 = arith.constant dense<0.000000e+00> : vector<16xf32>
      %289 = vector.multi_reduction <add>, %288, %cst_132 [1] : vector<16x512xf32> to vector<16xf32>
      %290 = vector.shape_cast %289 : vector<16xf32> to vector<16x1xf32>
      %cst_133 = arith.constant 0.001953125 : f32
      %291 = vector.broadcast %cst_133 : f32 to vector<16x1xf32>
      %292 = arith.mulf %287, %291 : vector<16x1xf32>
      %cst_134 = arith.constant 0.001953125 : f32
      %293 = vector.broadcast %cst_134 : f32 to vector<16x1xf32>
      %294 = arith.mulf %290, %293 : vector<16x1xf32>
      %295 = arith.mulf %292, %292 : vector<16x1xf32>
      %296 = arith.subf %294, %295 : vector<16x1xf32>
      %cst_135 = arith.constant 0.000000e+00 : f32
      %297 = vector.broadcast %cst_135 : f32 to vector<16x1xf32>
      %298 = arith.maximumf %296, %297 : vector<16x1xf32>
      %cst_136 = arith.constant 9.99999974E-6 : f32
      %299 = vector.broadcast %cst_136 : f32 to vector<16x1xf32>
      %300 = arith.addf %298, %299 : vector<16x1xf32>
      %301 = math.rsqrt %300 : vector<16x1xf32>
      %302 = arith.mulf %301, %282 : vector<16x1xf32>
      %303 = vector.broadcast %302 : vector<16x1xf32> to vector<16x512xf32>
      %304 = arith.mulf %279, %303 : vector<16x512xf32>
      %305 = arith.mulf %292, %302 : vector<16x1xf32>
      %306 = arith.subf %285, %305 : vector<16x1xf32>
      %307 = vector.broadcast %306 : vector<16x1xf32> to vector<16x512xf32>
      %308 = arith.addf %304, %307 : vector<16x512xf32>
      %cst_137 = arith.constant 5.000000e-01 : f32
      %309 = vector.broadcast %cst_137 : f32 to vector<16x512xf32>
      %310 = arith.mulf %309, %308 : vector<16x512xf32>
      %cst_138 = arith.constant 0.707106769 : f32
      %311 = vector.broadcast %cst_138 : f32 to vector<16x512xf32>
      %312 = arith.mulf %308, %311 : vector<16x512xf32>
      %313 = math.absf %312 : vector<16x512xf32>
      %cst_139 = arith.constant 0.327591091 : f32
      %314 = vector.broadcast %cst_139 : f32 to vector<16x512xf32>
      %315 = arith.mulf %314, %313 : vector<16x512xf32>
      %cst_140 = arith.constant 1.000000e+00 : f32
      %316 = vector.broadcast %cst_140 : f32 to vector<16x512xf32>
      %317 = arith.addf %316, %315 : vector<16x512xf32>
      %318 = tpu.reciprocal %317 {approx = true} : vector<16x512xf32> -> vector<16x512xf32>
      %cst_141 = arith.constant 1.06140542 : f32
      %319 = vector.broadcast %cst_141 : f32 to vector<16x512xf32>
      %320 = arith.mulf %319, %318 : vector<16x512xf32>
      %cst_142 = arith.constant -1.45315206 : f32
      %321 = vector.broadcast %cst_142 : f32 to vector<16x512xf32>
      %322 = arith.addf %320, %321 : vector<16x512xf32>
      %323 = arith.mulf %322, %318 : vector<16x512xf32>
      %cst_143 = arith.constant 1.42141378 : f32
      %324 = vector.broadcast %cst_143 : f32 to vector<16x512xf32>
      %325 = arith.addf %323, %324 : vector<16x512xf32>
      %326 = arith.mulf %325, %318 : vector<16x512xf32>
      %cst_144 = arith.constant -0.284496725 : f32
      %327 = vector.broadcast %cst_144 : f32 to vector<16x512xf32>
      %328 = arith.addf %326, %327 : vector<16x512xf32>
      %329 = arith.mulf %328, %318 : vector<16x512xf32>
      %cst_145 = arith.constant 0.254829586 : f32
      %330 = vector.broadcast %cst_145 : f32 to vector<16x512xf32>
      %331 = arith.addf %329, %330 : vector<16x512xf32>
      %332 = arith.mulf %331, %318 : vector<16x512xf32>
      %cst_146 = arith.constant 0.000000e+00 : f32
      %333 = vector.broadcast %cst_146 : f32 to vector<16x512xf32>
      %334 = arith.subf %333, %313 : vector<16x512xf32>
      %335 = arith.mulf %334, %313 : vector<16x512xf32>
      %336 = math.exp %335 : vector<16x512xf32>
      %337 = arith.mulf %332, %336 : vector<16x512xf32>
      %cst_147 = arith.constant 1.000000e+00 : f32
      %338 = vector.broadcast %cst_147 : f32 to vector<16x512xf32>
      %339 = arith.subf %338, %337 : vector<16x512xf32>
      %cst_148 = arith.constant 0.000000e+00 : f32
      %340 = vector.broadcast %cst_148 : f32 to vector<16x512xf32>
      %341 = arith.cmpf olt, %312, %340 : vector<16x512xf32>
      %cst_149 = arith.constant 0.000000e+00 : f32
      %342 = vector.broadcast %cst_149 : f32 to vector<16x512xf32>
      %343 = arith.subf %342, %339 : vector<16x512xf32>
      %344 = arith.select %341, %343, %339 : vector<16x512xi1>, vector<16x512xf32>
      %cst_150 = arith.constant 1.000000e+00 : f32
      %345 = vector.broadcast %cst_150 : f32 to vector<16x512xf32>
      %346 = arith.addf %345, %344 : vector<16x512xf32>
      %347 = arith.mulf %310, %346 : vector<16x512xf32>
      %348 = arith.addf %arg13, %347 : vector<16x512xf32>
      scf.yield %348 : vector<16x512xf32>
    }
    %c8_i32_39 = arith.constant 8 : i32
    %58 = vector.extract_strided_slice %57 {offsets = [0, 0], sizes = [16, 256], strides = [1, 1]} : vector<16x512xf32> to vector<16x256xf32>
    %c0_40 = arith.constant 0 : index
    %c0_41 = arith.constant 0 : index
    %c0_42 = arith.constant 0 : index
    %59 = vector.load %arg11[%c0_40, %c0_41, %c0_42] : memref<2x16x256xf32, #tpu.memory_space<vmem>>, vector<1x16x256xf32>
    %60 = vector.shape_cast %59 : vector<1x16x256xf32> to vector<16x256xf32>
    %61 = vector.shape_cast %58 : vector<16x256xf32> to vector<1x16x256xf32>
    tpu.vector_store %arg11[%c0_40, %c0_41, %c0_42], %61 {strides = array<i32>} : memref<2x16x256xf32, #tpu.memory_space<vmem>>, vector<1x16x256xf32>,
    %62 = vector.extract_strided_slice %57 {offsets = [0, 256], sizes = [16, 256], strides = [1, 1]} : vector<16x512xf32> to vector<16x256xf32>
    %c1_43 = arith.constant 1 : index
    %c0_44 = arith.constant 0 : index
    %c0_45 = arith.constant 0 : index
    %63 = vector.load %arg11[%c1_43, %c0_44, %c0_45] : memref<2x16x256xf32, #tpu.memory_space<vmem>>, vector<1x16x256xf32>
    %64 = vector.shape_cast %63 : vector<1x16x256xf32> to vector<16x256xf32>
    %65 = vector.shape_cast %62 : vector<16x256xf32> to vector<1x16x256xf32>
    tpu.vector_store %arg11[%c1_43, %c0_44, %c0_45], %65 {strides = array<i32>} : memref<2x16x256xf32, #tpu.memory_space<vmem>>, vector<1x16x256xf32>,
    return
  }
}

</mosaic_0001>

<bundles_post_ra>
// kernel: convolutional_stage.1
= control target key start
LH: loop header
LB: loop body
LE: loop exit
PB: predicated region body
PF: predicated region fallthrough
CT: control target
= control target key end

     0   :  { %v2753_v3 = vmov 0.0   ;;  %vm4618_vm4 = vcmask 130048   ;;  %v2754_v61 = vmov 0   ;;  %s4565_s1 = inlined_call_operand.vmem [shape: f32[2,16,256], index: 1, kind: input, shape index: {}]   ;;  %s4566_s2 = inlined_call_operand.vmem [shape: s32[4,1,512], index: 2, kind: input, shape index: {}]   ;;  %s4567_s7 = inlined_call_operand.vmem [shape: f32[8,18,16,1], index: 7, kind: input, shape index: {}]   ;;  %s4568_s8 = inlined_call_operand.vmem [shape: f32[8,2,16,16], index: 8, kind: input, shape index: {}]   ;;  %s4569_s9 = inlined_call_operand.vmem [shape: f32[8,2,16,1], index: 9, kind: input, shape index: {}]   ;;  %s4570_s10 = inlined_call_operand.vmem [shape: f32[8,2,16,1], index: 10, kind: input, shape index: {}]   ;;  %s4571_s11 = inlined_call_operand.vmem [shape: f32[2,16,256], index: 11, kind: output, shape index: {}]   ;;  %s4572_s0 = inlined_call_operand.vmem [shape: f32[2,16,256], index: 0, kind: input, shape index: {}]   ;;  %s4573_s4 = inlined_call_operand.vmem [shape: f32[16,16], index: 4, kind: input, shape index: {}]   ;;  %s4574_s3 = inlined_call_operand.vmem [shape: f32[16,16], index: 3, kind: input, shape index: {}]   ;;  %s4575_s5 = inlined_call_operand.vmem [shape: f32[16,1], index: 5, kind: input, shape index: {}]   ;;  %s4576_s6 = inlined_call_operand.vmem [shape: f32[16,1], index: 6, kind: input, shape index: {}]  }
   0x1   :  { %v2824_v0 = vld [vmem:[%s4566_s2] sm:$0xf]  ;;  %v2829_v1 = vld [vmem:[%s4566_s2 + $0x4] sm:$0xf]  ;;  %v2834_v2 = vld [vmem:[%s4566_s2 + $0x8] sm:$0xf]  ;;  %142 = vmatprep.mubr.f32.mxu0 %v2753_v3  ;;  %219 = vmatprep.mubr.f32.mxu1 %v2753_v3 }
   0x2   :  { %4646 = vst [vmem:[#allocation2_spill] sm:$0xff] %v2824_v0  ;;  %4647 = vst [vmem:[#allocation3_spill] sm:$0xff] %v2829_v1  ;;  %v2842_v4 = vld [vmem:[%s4566_s2 + $0xc] sm:$0xf]  ;;  %v61_v6 = vld [vmem:[%s4565_s1 + $0x18] sm:$0xff]  ;;  %2601 = vset.pattern.permute.xlu0 %v2754_v61  ;;  %2602 = vset.pattern.permute.xlu1 %v2754_v61 }
   0x3   :  { %4648 = vst [vmem:[#allocation4_spill] sm:$0xff] %v2834_v2  ;;  %4649 = vst [vmem:[#allocation5_spill] sm:$0xff] %v2842_v4  ;;  %v59_v5 = vld [vmem:[%s4565_s1 + $0x8] sm:$0xff]  ;;  %v2416_v8 = vld [vmem:[%s4565_s1 + $0x38] sm:$0xff] }
   0x4   :  { %v2414_v7 = vld [vmem:[%s4565_s1 + $0x28] sm:$0xff]  ;;  %v2481_v9 = vpack.c.bf16 %v61_v6, %v59_v5  ;;  %v58_v11 = vld [vmem:[%s4565_s1] sm:$0xff]  ;;  %v60_v12 = vld [vmem:[%s4565_s1 + $0x10] sm:$0xff] }
   0x5   :  { %v2485_v10 = vpack.c.bf16 %v2416_v8, %v2414_v7  ;;  %v2413_v13 = vld [vmem:[%s4565_s1 + $0x20] sm:$0xff]  ;;  %v2483_v14 = vpack.c.bf16 %v60_v12, %v58_v11  ;;  %v2415_v15 = vld [vmem:[%s4565_s1 + $0x30] sm:$0xff]  ;;  %v50_v16 = vld [vmem:[%s4572_s0 + $0x8] sm:$0xff] }
   0x6   :  { %2482 = vmatprep.subr.bf16.mxu0 %v2481_v9  ;;  %v2487_v17 = vpack.c.bf16 %v2415_v15, %v2413_v13  ;;  %v52_v18 = vld [vmem:[%s4572_s0 + $0x18] sm:$0xff]  ;;  %v49_v19 = vld [vmem:[%s4572_s0] sm:$0xff]  ;;  %v51_v20 = vld [vmem:[%s4572_s0 + $0x10] sm:$0xff] }
   0x7   :  { %2486 = vmatprep.subr.bf16.mxu1 %v2485_v10  ;;  %2484 = vmatpush1.bf16.msra.mxu0 %v2483_v14  ;;  %v69_v21 = vld [vmem:[%s4573_s4] sm:$0xff]  ;;  %v2489_v22 = vpack.c.bf16 %v52_v18, %v50_v16  ;;  %v2491_v23 = vpack.c.bf16 %v51_v20, %v49_v19  ;;  %v2410_v24 = vld [vmem:[%s4572_s0 + $0x28] sm:$0xff]  ;;  %v2412_v25 = vld [vmem:[%s4572_s0 + $0x38] sm:$0xff] }
   0x8   :  { %2488 = vmatpush1.bf16.msra.mxu1 %v2487_v17  ;;  %v2493_v26 = vpack.c.bf16 %v2412_v25, %v2410_v24  ;;  %v2409_v27 = vld [vmem:[%s4572_s0 + $0x20] sm:$0xff]  ;;  %v2411_v28 = vld [vmem:[%s4572_s0 + $0x30] sm:$0xff]  ;;  %v70_v30 = vld [vmem:[%s4573_s4 + $0x8] sm:$0xff] }
   0x9   :  { %2490 = vmatprep.subr.bf16.mxu0 %v2489_v22  ;;  %v2495_v29 = vpack.c.bf16 %v2411_v28, %v2409_v27  ;;  %v67_v31 = vld [vmem:[%s4574_s3] sm:$0xff]  ;;  %v68_v32 = vld [vmem:[%s4574_s3 + $0x8] sm:$0xff] }
   0xa   :  { %2417 = vmatmul.mubr.msk.f32.vlgmr.msra.gmra.mrb[0].mxu0 %vm4618_vm4, %v69_v21  ;;  %2494 = vmatprep.subr.bf16.mxu1 %v2493_v26  ;;  %v392_v18 = vld [vmem:[%s4575_s5] sm:$0xff]  ;;  %v395_v28 = vld [vmem:[%s4576_s6 + $0x8] sm:$0xff] }
   0xb   :  { %2419 = vmatmul.mubr.msk.f32.vlgmr.msra.gmra.mrb[0].mxu1 %vm4618_vm4, %v69_v21  ;;  %2492 = vmatpush1.bf16.msra.mxu0 %v2491_v23  ;;  %v393_v21 = vld [vmem:[%s4575_s5 + $0x8] sm:$0xff]  ;;  %v394_v25 = vld [vmem:[%s4576_s6] sm:$0xff]  ;;  %s2989_s5 = smov 0  }
   0xc   :  { %148 = vmatprep.mubr.f32.mxu0 %v2753_v3  ;;  %225 = vmatprep.mubr.f32.mxu1 %v2753_v3 }
   0xd   :  { %2496 = vmatpush1.bf16.msra.mxu1 %v2495_v29 }
   0xe   :  { %2418 = vmatmul.mubr.msk.f32.gmra.mrb[2].mxu0 %vm4618_vm4, %v70_v30 }
   0xf   :  { %2420 = vmatmul.mubr.msk.f32.gmra.mrb[2].mxu1 %vm4618_vm4, %v70_v30  ;;  %302 = vmatprep.mubr.f32.mxu0 %v2753_v3 }
  0x10   :  { %379 = vmatprep.mubr.f32.mxu1 %v2753_v3 }
  0x12   :  { %2421 = vmatmul.mubr.msk.f32.vlgmr.msra.gmra.mrb[0].mxu0 %vm4618_vm4, %v67_v31 }
  0x13   :  { %2423 = vmatmul.mubr.msk.f32.vlgmr.msra.gmra.mrb[0].mxu1 %vm4618_vm4, %v67_v31  ;;  %308 = vmatprep.mubr.f32.mxu0 %v2753_v3 }
  0x14   :  { %385 = vmatprep.mubr.f32.mxu1 %v2753_v3 }
  0x16   :  { %2422 = vmatmul.mubr.msk.f32.gmra.mrb[2].mxu0 %vm4618_vm4, %v68_v32 }
  0x17   :  { %2424 = vmatmul.mubr.msk.f32.gmra.mrb[2].mxu1 %vm4618_vm4, %v68_v32 }
  0xe5   :  { %v2913_v33 = vpop.f32.mrb[0].mxu0 }
  0xe6   :  { %v406_v34 = vmul.f32 %v2913_v33, %v2913_v33  ;;  %v2917_v35 = vpop.f32.mrb[0].mxu1  ;;  %v2919_v36 = vpop.f32.mrb[1].mxu0 }
  0xe7   :  { %v396_v37 = vadd.f32 %v2919_v36, %v2913_v33  ;;  %v407_v38 = vmul.f32 %v2919_v36, %v2919_v36  ;;  %v2925_v39 = vpop.f32.mrb[1].mxu1  ;;  %v408_v43 = vmul.f32 %v2917_v35, %v2917_v35 }
  0xe8   :  { %v409_v51 = vmul.f32 %v2925_v39, %v2925_v39 }
  0xe9   :  { %v2927_v40 = vpop.f32.mrb[2].mxu0  ;;  %v397_v41 = vadd.f32 %v396_v37, %v2917_v35  ;;  %v414_v42 = vadd.f32 %v407_v38, %v406_v34 }
  0xea   :  { %v410_v44 = vmul.f32 %v2927_v40, %v2927_v40  ;;  %v2934_v45 = vpop.f32.mrb[2].mxu1  ;;  %v2936_v46 = vpop.f32.mrb[3].mxu0 }
  0xeb   :  { %v401_v47 = vadd.f32 %v2936_v46, %v2927_v40  ;;  %v411_v48 = vmul.f32 %v2936_v46, %v2936_v46  ;;  %v2942_v49 = vpop.f32.mrb[3].mxu1  ;;  %v398_v50 = vadd.f32 %v397_v41, %v2925_v39  ;;  %v415_v52 = vadd.f32 %v414_v42, %v408_v43 }
  0xec   :  { %v412_v53 = vmul.f32 %v2934_v45, %v2934_v45  ;;  %v413_v57 = vmul.f32 %v2942_v49, %v2942_v49 }
  0xed   :  { %v419_v54 = vadd.f32 %v411_v48, %v410_v44  ;;  %399 = vadd.xlane.f32.xlu0 %v398_v50  ;;  %v402_v55 = vadd.f32 %v401_v47, %v2934_v45  ;;  %v416_v56 = vadd.f32 %v415_v52, %v409_v51 }
  0xef   :  { %v403_v58 = vadd.f32 %v402_v55, %v2942_v49  ;;  %v420_v59 = vadd.f32 %v419_v54, %v412_v53  ;;  %417 = vadd.xlane.f32.xlu1 %v416_v56 }
  0xf1   :  { %404 = vadd.xlane.f32.xlu0 %v403_v58  ;;  %v421_v60 = vadd.f32 %v420_v59, %v413_v57 }
  0xf3   :  { %422 = vadd.xlane.f32.xlu1 %v421_v60 }
 0x17a   :  { %v400_v62 = vpop.xlane.xlu0 %399 }
 0x17b   :  { %v424_v63 = vmul.f32 0.001953125, %v400_v62 }
 0x17c   :  { %v418_v5 = vpop.xlane.xlu1 %417 }
 0x17d   :  { %v428_v3 = vmul.f32 %v424_v63, %v424_v63  ;;  %v426_v6 = vmul.f32 0.001953125, %v418_v5 }
 0x17e   :  { %v405_v7 = vpop.xlane.xlu0 %404 }
 0x17f   :  { %v425_v8 = vmul.f32 0.001953125, %v405_v7  ;;  %v430_v9 = vsub.f32 %v426_v6, %v428_v3 }
 0x180   :  { %v423_v11 = vpop.xlane.xlu1 %422 }
 0x181   :  { %v429_v10 = vmul.f32 %v425_v8, %v425_v8  ;;  %v432_v12 = vmax.f32 %v430_v9, 0.0  ;;  %v427_v13 = vmul.f32 0.001953125, %v423_v11 }
 0x183   :  { %v434_v14 = vadd.f32 1e-05, %v432_v12  ;;  %v431_v15 = vsub.f32 %v427_v13, %v429_v10 }
 0x185   :  { %2603 = vrsqrt.f32 %v434_v14  ;;  %v433_v16 = vmax.f32 %v431_v15, 0.0 }
 0x187   :  { %v435_v17 = vadd.f32 1e-05, %v433_v16 }
 0x189   :  { %2605 = vrsqrt.f32 %v435_v17 }
 0x18f   :  { %v2604_v19 = vpop.eup %2603 }
 0x190   :  { %v438_v20 = vmul.f32 %v2604_v19, %v392_v18 }
 0x192   :  { %442 = vperm.xlu0 %2601, %v438_v20   ;;  %v458_v24 = vmul.f32 %v438_v20, %v424_v63 }
 0x193   :  { %v2606_v22 = vpop.eup %2605 }
 0x194   :  { %v439_v23 = vmul.f32 %v2606_v22, %v393_v21  ;;  %v460_v26 = vsub.f32 %v394_v25, %v458_v24 }
 0x196   :  { %447 = vperm.xlu1 %2602, %v439_v23   ;;  %v459_v27 = vmul.f32 %v439_v23, %v425_v8 }
 0x198   :  { %v461_v29 = vsub.f32 %v395_v28, %v459_v27 }
 0x19a   :  { %464 = vperm.xlu1 %2602, %v460_v26  }
 0x19e   :  { %469 = vperm.xlu1 %2602, %v461_v29  }
 0x211   :  { %v443_v30 = vpop.permute.xlu0 %442 }
 0x212   :  { %v450_v32 = vmul.f32 %v443_v30, %v2913_v33  ;;  %v451_v34 = vmul.f32 %v443_v30, %v2919_v36  ;;  %v452_v37 = vmul.f32 %v443_v30, %v2917_v35  ;;  %v453_v38 = vmul.f32 %v443_v30, %v2925_v39 }
 0x215   :  { %v448_v31 = vpop.permute.xlu1 %447 }
 0x216   :  { %v454_v48 = vmul.f32 %v448_v31, %v2927_v40  ;;  %v455_v50 = vmul.f32 %v448_v31, %v2936_v46  ;;  %v456_v51 = vmul.f32 %v448_v31, %v2934_v45  ;;  %v457_v52 = vmul.f32 %v448_v31, %v2942_v49 }
 0x219   :  { %v465_v41 = vpop.permute.xlu1 %464 }
 0x21a   :  { %v472_v42 = vadd.f32 %v465_v41, %v450_v32   ;;  %v473_v43 = vadd.f32 %v465_v41, %v451_v34   ;;  %v474_v44 = vadd.f32 %v465_v41, %v452_v37   ;;  %v475_v47 = vadd.f32 %v465_v41, %v453_v38  }
 0x21d   :  { %v470_v33 = vpop.permute.xlu1 %469 }
 0x21e   :  { %v476_v53 = vadd.f32 %v470_v33, %v454_v48   ;;  %v477_v36 = vadd.f32 %v470_v33, %v455_v50   ;;  %v478_v54 = vadd.f32 %v470_v33, %v456_v51   ;;  %v479_v35 = vadd.f32 %v470_v33, %v457_v52  }
 0x21f LB: > { %4650 = vst [vmem:[#allocation6_spill] sm:$0xff] %v2719_v35  ;;  %4651 = vst [vmem:[#allocation7_spill] sm:$0xff] %v2723_v54  ;;  %v4577_v39 = vmov 0   ;;  %s604_s6 = smul.u32 288, %s2751_s5  ;;  %s2756_s12 = smov 1   ;;  %v510_v19 = vlaneseq  ;;  %v4661_v0 = vld [vmem:[#allocation2_spill] sm:$0xff]  ;;  %s2751_s5 = sphi %s2989_s5, %s485_s5   ;;  %v2747_v42 = vphi %v472_v42, %v4803_v42   ;;  %v2743_v43 = vphi %v473_v43, %v4802_v43   ;;  %v2739_v44 = vphi %v474_v44, %v4801_v44   ;;  %v2735_v47 = vphi %v475_v47, %v4800_v47   ;;  %v2731_v53 = vphi %v476_v53, %v4799_v53   ;;  %v2727_v36 = vphi %v477_v36, %v4798_v36   ;;  %v2723_v54 = vphi %v478_v54, %v4797_v54   ;;  %v2719_v35 = vphi %v479_v35, %v4796_v35  }
 0x220   : > { %4652 = vst [vmem:[#allocation8_spill] sm:$0xff] %v2727_v36  ;;  %4653 = vst [vmem:[#allocation9_spill] sm:$0xff] %v2731_v53  ;;  %2608 = vset.pattern.permute.xlu1 %v4577_v39  ;;  %2607 = vset.pattern.permute.xlu0 %v4577_v39  ;;  %s2757_s13 = smov 127   ;;  %vm4662_vm0 = vcmp.ne.s32.totalorder %v4661_v0, 0  ;;  %v4666_v1 = vld [vmem:[#allocation3_spill] sm:$0xff]  ;;  %v4668_v33 = vmov 0 }
 0x221   : > { %4654 = vst [vmem:[#allocation10_spill] sm:$0xff] %v2735_v47  ;;  %4655 = vst [vmem:[#allocation11_spill] sm:$0xff] %v2739_v44  ;;  %s3024_s30 = scalar_lea.vmem %s4567_s7, %s604_s6  ;;  %v523_v22 = vshrl.u32 %v510_v19, 7  ;;  %v3100_v26 = vand.u32 127, %v510_v19  ;;  %v521_v27 = vsel %vm4662_vm0, 1, %v4577_v39  ;;  %vm4667_vm1 = vcmp.ne.s32.totalorder %v4666_v1, 0 }
 0x222   : > { %4656 = vst [vmem:[#allocation12_spill] sm:$0xff] %v2743_v43  ;;  %4657 = vst [vmem:[#allocation13_spill] sm:$0xff] %v2747_v42  ;;  %v2425_v40 = vld [vmem:[%s3024_s30 + $0x10] sm:$0xff]  ;;  %v606_v45 = vld [vmem:[%s3024_s30] sm:$0xff]  ;;  %v3117_v37 = vsel %vm4667_vm1, 1, %v4577_v39  ;;  %v4683_v19 = vmov 0 }
 0x223   : > { %632 = vperm.xlu1 %2608, %v2425_v40   ;;  %610 = vperm.xlu0 %2607, %v606_v45   ;;  %v2426_v46 = vld [vmem:[%s3024_s30 + $0x18] sm:$0xff]  ;;  %v607_v49 = vld [vmem:[%s3024_s30 + $0x8] sm:$0xff]  ;;  %v2427_v56 = vld [vmem:[%s3024_s30 + $0x20] sm:$0xff]  ;;  %v3098_v25 = vsub.s32 1, %v523_v22  ;;  %v3105_v28 = vsub.s32 0, %v523_v22  ;;  %v3109_v31 = vsub.s32 2, %v523_v22 }
 0x224   : > { %v2428_v55 = vld [vmem:[%s3024_s30 + $0x28] sm:$0xff]  ;;  %v2435_v58 = vld [vmem:[%s3024_s30 + $0x60] sm:$0xff]  ;;  %v2438_v59 = vld [vmem:[%s3024_s30 + $0x78] sm:$0xff]  ;;  %v3111_v32 = vsub.s32 3, %v523_v22  ;;  %vm4617_vm5 = vcmp.lt.s32.totalorder %v3100_v26, 1  ;;  %vm4616_vm7 = vcmp.lt.s32.totalorder %v3100_v26, 127 }
 0x225   : > { %v2436_v57 = vld [vmem:[%s3024_s30 + $0x68] sm:$0xff]  ;;  %v2437_v60 = vld [vmem:[%s3024_s30 + $0x70] sm:$0xff]  ;;  %v2439_v62 = vld [vmem:[%s3024_s30 + $0x80] sm:$0xff]  ;;  %4660 = vst [vmem:[#allocation16_spill] sm:$0xff] %v3098_v25  ;;  %v529_v34 = vrot.slane %v521_v27, %v3098_v25  ;;  %v525_v38 = vrot.slane %v521_v27, %v3105_v28  ;;  %v533_v50 = vrot.slane %v521_v27, %v3109_v31  ;;  %v579_v52 = vrot.slane %v3117_v37, %v3105_v28  ;;  %s2758_s2 = smov 16   ;;  %s2759_s14 = smov 112  }
 0x226   : > { %v2440_v61 = vld [vmem:[%s3024_s30 + $0x88] sm:$0xff]  ;;  %v2429_v63 = vld [vmem:[%s3024_s30 + $0x30] sm:$0xff]  ;;  %v2430_v3 = vld [vmem:[%s3024_s30 + $0x38] sm:$0xff]  ;;  %4663 = vst [vmem:[#allocation17_spill] sm:$0xff] %v3105_v28  ;;  %v537_v51 = vrot.slane %v521_v27, %v3111_v32  ;;  %vm4619_vm15 = vcmp.lt.s32.totalorder %v3100_v26, 16  ;;  %vm4622_vm1 = vcmp.lt.s32.totalorder %v3100_v26, 112 }
 0x227   : > { %637 = vperm.xlu1 %2608, %v2426_v46   ;;  %615 = vperm.xlu0 %2607, %v607_v49   ;;  %v2431_v5 = vld [vmem:[%s3024_s30 + $0x40] sm:$0xff]  ;;  %v2432_v6 = vld [vmem:[%s3024_s30 + $0x48] sm:$0xff]  ;;  %v2433_v7 = vld [vmem:[%s3024_s30 + $0x50] sm:$0xff]  ;;  %4664 = vst [vmem:[#allocation18_spill] sm:$0xff] %v3109_v31  ;;  %vm3125_vm6 = vcmp.eq.s32.totalorder %v529_v34, 1  ;;  %vm3135_vm8 = vcmp.eq.s32.totalorder %v525_v38, 1  ;;  %v583_v49 = vrot.slane %v3117_v37, %v3098_v25 }
 0x228   : > { %v2434_v8 = vld [vmem:[%s3024_s30 + $0x58] sm:$0xff]  ;;  %4665 = vst [vmem:[#allocation19_spill] sm:$0xff] %v3111_v32  ;;  %v4669_v33 = vsel %vm3125_vm6, 4294967295, %v4668_v33  ;;  %v4671_v46 = vmov 0  ;;  %vm3146_vm9 = vcmp.eq.s32.totalorder %v533_v50, 1  ;;  %vm3150_vm10 = vcmp.eq.s32.totalorder %v537_v51, 1 }
 0x229   : > { %4670 = vst [vmem:[#allocation20_spill] sm:$0xff] %v4669_v33  ;;  %v4672_v46 = vsel %vm3135_vm8, 4294967295, %v4671_v46  ;;  %vm3154_vm11 = vcmp.eq.s32.totalorder %v579_v52, 1  ;;  %vm3176_vm12 = vcmp.eq.s32.totalorder %v583_v49, 1  ;;  %s3614_s15 = sshll.u32 %s2751_s5, 5  ;;  %s485_s5 = sadd.s32 1, %s2751_s5  }
 0x22a   : > { %4673 = vst [vmem:[#allocation21_spill] sm:$0xff] %v4672_v46  ;;  %v4684_v19 = vsel %vm3176_vm12, 4294967295, %v4683_v19  ;;  %s3640_s18 = scalar_lea.vmem %s4568_s8, %s3614_s15  ;;  %s3708_s20 = scalar_lea.vmem %s4569_s9, %s3614_s15 }
 0x22b   : > { %667 = vperm.xlu1 %2608, %v2428_v55   ;;  %662 = vperm.xlu0 %2607, %v2427_v56   ;;  %v4674_v56 = vmov 0  ;;  %4685 = vst [vmem:[#allocation25_spill] sm:$0xff] %v4684_v19  ;;  %s3715_s3 = scalar_lea.vmem %s4570_s10, %s3614_s15  ;;  %p482_p0 = scmp.ge.s32.totalorder %s485_s5, 8  }
 0x22c   : > { %v4675_v56 = vsel %vm3146_vm9, 4294967295, %v4674_v56 }
 0x22d   : > { %4676 = vst [vmem:[#allocation22_spill] sm:$0xff] %v4675_v56 }
 0x22f   : > { %779 = vperm.xlu1 %2608, %v2436_v57   ;;  %774 = vperm.xlu0 %2607, %v2435_v58   ;;  %v4677_v57 = vmov 0 }
 0x230   : > { %v4678_v57 = vsel %vm3150_vm10, 4294967295, %v4677_v57 }
 0x231   : > { %4679 = vst [vmem:[#allocation23_spill] sm:$0xff] %v4678_v57 }
 0x233   : > { %801 = vperm.xlu1 %2608, %v2438_v59   ;;  %796 = vperm.xlu0 %2607, %v2437_v60   ;;  %v4680_v60 = vmov 0 }
 0x234   : > { %v4681_v60 = vsel %vm3154_vm11, 4294967295, %v4680_v60 }
 0x235   : > { %4682 = vst [vmem:[#allocation24_spill] sm:$0xff] %v4681_v60 }
 0x237   : > { %831 = vperm.xlu1 %2608, %v2440_v61   ;;  %826 = vperm.xlu0 %2607, %v2439_v62  }
 0x23b   : > { %494 = vrot.lane.b32.xlu0 %v2747_v42, %s2756_s12  ;;  %496 = vrot.lane.b32.xlu1 %v2731_v53, %s2756_s12 }
 0x23f   : > { %498 = vrot.lane.b32.xlu0 %v2743_v43, %s2756_s12  ;;  %500 = vrot.lane.b32.xlu1 %v2727_v36, %s2756_s12 }
 0x243   : > { %506 = vrot.lane.b32.xlu0 %v2735_v47, %s2756_s12  ;;  %508 = vrot.lane.b32.xlu1 %v2719_v35, %s2756_s12 }
 0x247   : > { %502 = vrot.lane.b32.xlu0 %v2739_v44, %s2756_s12  ;;  %504 = vrot.lane.b32.xlu1 %v2723_v54, %s2756_s12 }
 0x24b   : > { %550 = vrot.lane.b32.xlu0 %v2747_v42, %s2757_s13  ;;  %552 = vrot.lane.b32.xlu1 %v2731_v53, %s2757_s13 }
 0x24f   : > { %554 = vrot.lane.b32.xlu0 %v2743_v43, %s2757_s13  ;;  %556 = vrot.lane.b32.xlu1 %v2727_v36, %s2757_s13 }
 0x253   : > { %558 = vrot.lane.b32.xlu0 %v2739_v44, %s2757_s13  ;;  %560 = vrot.lane.b32.xlu1 %v2723_v54, %s2757_s13 }
 0x257   : > { %562 = vrot.lane.b32.xlu0 %v2735_v47, %s2757_s13  ;;  %564 = vrot.lane.b32.xlu1 %v2719_v35, %s2757_s13 }
 0x25b   : > { %692 = vperm.xlu0 %2607, %v2429_v63   ;;  %697 = vperm.xlu1 %2608, %v2430_v3   ;;  %v587_v3 = vrot.slane %v3117_v37, %v3109_v31 }
 0x25d   : > { %vm3243_vm13 = vcmp.eq.s32.totalorder %v587_v3, 1 }
 0x25f   : > { %714 = vperm.xlu0 %2607, %v2431_v5   ;;  %719 = vperm.xlu1 %2608, %v2432_v6   ;;  %v591_v6 = vrot.slane %v3117_v37, %v3111_v32  ;;  %v4686_v32 = vmov 0 }
 0x260   : > { %v4687_v32 = vsel %vm3243_vm13, 4294967295, %v4686_v32 }
 0x261   : > { %4688 = vst [vmem:[#allocation26_spill] sm:$0xff] %v4687_v32  ;;  %vm3328_vm14 = vcmp.eq.s32.totalorder %v591_v6, 1 }
 0x263   : > { %744 = vperm.xlu0 %2607, %v2433_v7   ;;  %749 = vperm.xlu1 %2608, %v2434_v8  }
 0x2a2   : > { %v633_v9 = vpop.permute.xlu1 %632  ;;  %v3076_v10 = vpop.permute.xlu0 %610 }
 0x2a3   : > { %v640_v5 = vmul.f32 %v2747_v42, %v633_v9  ;;  %v641_v7 = vmul.f32 %v2743_v43, %v633_v9  ;;  %v3174_v8 = vmul.f32 %v2735_v47, %v633_v9  ;;  %v3187_v27 = vmul.f32 %v2739_v44, %v633_v9 }
 0x2a6   : > { %v3078_v11 = vpop.permute.xlu1 %637  ;;  %v3080_v12 = vpop.permute.xlu0 %615 }
 0x2a7   : > { %v644_v22 = vmul.f32 %v2731_v53, %v3078_v11  ;;  %v3209_v52 = vmul.f32 %v2719_v35, %v3078_v11  ;;  %v3217_v49 = vmul.f32 %v2723_v54, %v3078_v11 }
 0x2aa   : > { %v3082_v13 = vpop.permute.xlu1 %667  ;;  %v3084_v14 = vpop.permute.xlu0 %662 }
 0x2ae   : > { %v3086_v15 = vpop.permute.xlu1 %779  ;;  %v3088_v16 = vpop.permute.xlu0 %774 }
 0x2b2   : > { %v3090_v17 = vpop.permute.xlu1 %801  ;;  %v3092_v18 = vpop.permute.xlu0 %796 }
 0x2b3   : > { %4658 = vst [vmem:[#allocation14_spill] sm:$0xff] %v3090_v17  ;;  %4659 = vst [vmem:[#allocation15_spill] sm:$0xff] %v3092_v18  ;;  %v3229_v39 = vmul.f32 %v2747_v42, %v3092_v18  ;;  %v3233_v0 = vmul.f32 %v2731_v53, %v3090_v17 }
 0x2b6   : > { %v3094_v20 = vpop.permute.xlu1 %831  ;;  %v3096_v21 = vpop.permute.xlu0 %826 }
 0x2ba   : > { %v495_v23 = vpop.permute.xlu0 %494  ;;  %v497_v24 = vpop.permute.xlu1 %496 }
 0x2be   : > { %v499_v29 = vpop.permute.xlu0 %498  ;;  %v3107_v30 = vpop.permute.xlu1 %500 }
 0x2bf   : > { %v517_v40 = vsel %vm4617_vm5, %v495_v23, %v499_v29  ;;  %v518_v45 = vsel %vm4617_vm5, %v497_v24, %v3107_v30 }
 0x2c0   : > { %v3144_v55 = vsel %vm3125_vm6, %v2743_v43, %v517_v40  ;;  %v3161_v61 = vsel %vm3125_vm6, %v2727_v36, %v518_v45  ;;  %v805_v40 = vmul.f32 %v2743_v43, %v3092_v18  ;;  %v809_v45 = vmul.f32 %v2727_v36, %v3090_v17 }
 0x2c1   : > { %v623_v51 = vmul.f32 %v3080_v12, %v3161_v61  ;;  %v783_v9 = vmul.f32 %v3088_v16, %v3144_v55 }
 0x2c2   : > { %v507_v41 = vpop.permute.xlu0 %506  ;;  %v509_v48 = vpop.permute.xlu1 %508 }
 0x2c3   : > { %v519_v62 = vsel %vm4617_vm5, %v507_v41, %v495_v23  ;;  %v520_v63 = vsel %vm4617_vm5, %v509_v48, %v497_v24  ;;  %v619_v23 = vmul.f32 %v3076_v10, %v3144_v55  ;;  %v645_v24 = vmul.f32 %v2727_v36, %v3078_v11 }
 0x2c4   : > { %v3192_v34 = vsel %vm3135_vm8, %v2747_v42, %v519_v62  ;;  %v3197_v37 = vsel %vm3135_vm8, %v2731_v53, %v520_v63  ;;  %v3221_v62 = vmul.f32 %v2739_v44, %v3092_v18  ;;  %v3225_v63 = vmul.f32 %v2723_v54, %v3090_v17 }
 0x2c5   : > { %v618_v33 = vmul.f32 %v3076_v10, %v3192_v34  ;;  %v622_v46 = vmul.f32 %v3080_v12, %v3197_v37  ;;  %v649_v4 = vadd.f32 %v641_v7, %v619_v23  ;;  %v653_v25 = vadd.f32 %v645_v24, %v623_v51 }
 0x2c6   : > { %v503_v58 = vpop.permute.xlu0 %502  ;;  %v505_v59 = vpop.permute.xlu1 %504  ;;  %v3247_v2 = vadd.f32 %v805_v40, %v783_v9 }
 0x2c7   : > { %v513_v11 = vsel %vm4617_vm5, %v503_v58, %v507_v41  ;;  %v515_v1 = vsel %vm4617_vm5, %v499_v29, %v503_v58  ;;  %v787_v41 = vmul.f32 %v3086_v15, %v3161_v61  ;;  %v514_v29 = vsel %vm4617_vm5, %v505_v59, %v509_v48 }
 0x2c8   : > { %v516_v58 = vsel %vm4617_vm5, %v3107_v30, %v505_v59  ;;  %v3265_v23 = vsel %vm3146_vm9, %v2739_v44, %v515_v1  ;;  %v3270_v48 = vsel %vm3150_vm10, %v2735_v47, %v513_v11  ;;  %v648_v24 = vadd.f32 %v640_v5, %v618_v33 }
 0x2c9   : > { %v652_v51 = vadd.f32 %v644_v22, %v622_v46  ;;  %v3289_v40 = vsel %vm3146_vm9, %v2723_v54, %v516_v58  ;;  %v3294_v11 = vsel %vm3150_vm10, %v2719_v35, %v514_v29  ;;  %v817_v33 = vadd.f32 %v809_v45, %v787_v41 }
 0x2ca   : > { %v3199_v38 = vpop.permute.xlu0 %550  ;;  %v3201_v50 = vpop.permute.xlu1 %552  ;;  %v3298_v5 = vmul.f32 %v3088_v16, %v3192_v34  ;;  %v620_v29 = vmul.f32 %v3076_v10, %v3265_v23  ;;  %v621_v45 = vmul.f32 %v3076_v10, %v3270_v48  ;;  %v4691_v10 = vmov 0 }
 0x2cb   : > { %v4692_v10 = vsel %vm3328_vm14, 4294967295, %v4691_v10 }
 0x2cc   : > { %4693 = vst [vmem:[#allocation29_spill] sm:$0xff] %v4692_v10  ;;  %v651_v32 = vadd.f32 %v3174_v8, %v621_v45 }
 0x2ce   : > { %v555_v31 = vpop.permute.xlu0 %554  ;;  %v557_v28 = vpop.permute.xlu1 %556 }
 0x2cf   : > { %v571_v3 = vsel %vm4616_vm7, %v3199_v38, %v555_v31  ;;  %v572_v7 = vsel %vm4616_vm7, %v3201_v50, %v557_v28 }
 0x2d0   : > { %v3275_v30 = vsel %vm3154_vm11, %v2747_v42, %v571_v3  ;;  %v3280_v59 = vsel %vm3154_vm11, %v2731_v53, %v572_v7 }
 0x2d1   : > { %v670_v1 = vmul.f32 %v3084_v14, %v3275_v30  ;;  %v674_v9 = vmul.f32 %v3082_v13, %v3280_v59 }
 0x2d2   : > { %v559_v3 = vpop.permute.xlu0 %558  ;;  %v561_v7 = vpop.permute.xlu1 %560 }
 0x2d3   : > { %v569_v46 = vsel %vm4616_vm7, %v555_v31, %v559_v3  ;;  %v570_v22 = vsel %vm4616_vm7, %v557_v28, %v561_v7  ;;  %v3304_v58 = vadd.f32 %v670_v1, %v648_v24  ;;  %v3306_v56 = vadd.f32 %v674_v9, %v652_v51 }
 0x2d4   : > { %v3315_v41 = vsel %vm3176_vm12, %v2743_v43, %v569_v46  ;;  %v3320_v31 = vsel %vm3176_vm12, %v2727_v36, %v570_v22  ;;  %v784_v28 = vmul.f32 %v3088_v16, %v3265_v23  ;;  %v625_v51 = vmul.f32 %v3080_v12, %v3294_v11 }
 0x2d5   : > { %4689 = vst [vmem:[#allocation27_spill] sm:$0xff] %v3304_v58  ;;  %4690 = vst [vmem:[#allocation28_spill] sm:$0xff] %v3306_v56  ;;  %850 = vrot.lane.b32.xlu0 %v3304_v58, %s2758_s2  ;;  %852 = vrot.lane.b32.xlu1 %v3306_v56, %s2758_s2  ;;  %v671_v24 = vmul.f32 %v3084_v14, %v3315_v41  ;;  %v675_v1 = vmul.f32 %v3082_v13, %v3320_v31 }
 0x2d6   : > { %v788_v9 = vmul.f32 %v3086_v15, %v3289_v40  ;;  %v563_v46 = vpop.permute.xlu0 %562  ;;  %v565_v22 = vpop.permute.xlu1 %564  ;;  %v835_v6 = vmul.f32 %v3096_v21, %v3315_v41  ;;  %v839_v19 = vmul.f32 %v3094_v20, %v3320_v31 }
 0x2d7   : > { %v567_v57 = vsel %vm4616_vm7, %v559_v3, %v563_v46  ;;  %v573_v60 = vsel %vm4616_vm7, %v563_v46, %v3199_v38  ;;  %v568_v56 = vsel %vm4616_vm7, %v561_v7, %v565_v22  ;;  %v574_v58 = vsel %vm4616_vm7, %v565_v22, %v3201_v50 }
 0x2d8   : > { %v598_v17 = vsel %vm3243_vm13, %v2739_v44, %v567_v57  ;;  %v3360_v18 = vsel %vm3328_vm14, %v2735_v47, %v573_v60  ;;  %v3365_v38 = vsel %vm3243_vm13, %v2723_v54, %v568_v56  ;;  %v3370_v3 = vsel %vm3328_vm14, %v2719_v35, %v574_v58 }
 0x2d9   : > { %v3372_v50 = vadd.f32 %v671_v24, %v649_v4  ;;  %v3374_v7 = vadd.f32 %v675_v1, %v653_v25  ;;  %v673_v57 = vmul.f32 %v3084_v14, %v3360_v18  ;;  %v677_v60 = vmul.f32 %v3082_v13, %v3370_v3 }
 0x2da   : > { %v3382_v46 = vmul.f32 %v3080_v12, %v3289_v40  ;;  %v693_v56 = vpop.permute.xlu0 %692  ;;  %v698_v22 = vpop.permute.xlu1 %697  ;;  %v814_v58 = vadd.f32 %v3221_v62, %v784_v28  ;;  %v3388_v4 = vmul.f32 %v3086_v15, %v3197_v37  ;;  %v655_v25 = vadd.f32 %v3209_v52, %v625_v51 }
 0x2db   : > { %4694 = vst [vmem:[#allocation30_spill] sm:$0xff] %v3374_v7  ;;  %854 = vrot.lane.b32.xlu0 %v3372_v50, %s2758_s2  ;;  %856 = vrot.lane.b32.xlu1 %v3374_v7, %s2758_s2  ;;  %v818_v12 = vadd.f32 %v3225_v63, %v788_v9  ;;  %v650_v24 = vadd.f32 %v3187_v27, %v620_v29 }
 0x2dc   : > { %v3398_v8 = vadd.f32 %v835_v6, %v3247_v2  ;;  %v3400_v62 = vadd.f32 %v839_v19, %v817_v33  ;;  %v836_v45 = vmul.f32 %v3096_v21, %v598_v17  ;;  %v840_v28 = vmul.f32 %v3094_v20, %v3365_v38 }
 0x2dd   : > { %v700_v1 = vmul.f32 %v693_v56, %v3192_v34  ;;  %v701_v10 = vmul.f32 %v693_v56, %v3144_v55  ;;  %v3407_v7 = vadd.f32 %v673_v57, %v651_v32  ;;  %v3409_v52 = vadd.f32 %v677_v60, %v655_v25 }
 0x2de   : > { %v702_v27 = vmul.f32 %v693_v56, %v3265_v23  ;;  %v703_v2 = vmul.f32 %v693_v56, %v3270_v48  ;;  %v704_v19 = vmul.f32 %v698_v22, %v3197_v37  ;;  %v705_v63 = vmul.f32 %v698_v22, %v3161_v61  ;;  %v715_v33 = vpop.permute.xlu0 %714  ;;  %v720_v29 = vpop.permute.xlu1 %719 }
 0x2df   : > { %v706_v51 = vmul.f32 %v698_v22, %v3289_v40  ;;  %862 = vrot.lane.b32.xlu0 %v3407_v7, %s2758_s2  ;;  %864 = vrot.lane.b32.xlu1 %v3409_v52, %s2758_s2  ;;  %v722_v32 = vmul.f32 %v2747_v42, %v715_v33  ;;  %v723_v55 = vmul.f32 %v2743_v43, %v715_v33 }
 0x2e0   : > { %v707_v34 = vmul.f32 %v698_v22, %v3294_v11  ;;  %v726_v37 = vmul.f32 %v2731_v53, %v720_v29  ;;  %v3424_v23 = vadd.f32 %v836_v45, %v814_v58  ;;  %v3426_v61 = vadd.f32 %v840_v28, %v818_v12 }
 0x2e1   : > { %v724_v40 = vmul.f32 %v2739_v44, %v715_v33  ;;  %v727_v9 = vmul.f32 %v2727_v36, %v720_v29  ;;  %v728_v6 = vmul.f32 %v2723_v54, %v720_v29  ;;  %v672_v57 = vmul.f32 %v3084_v14, %v598_v17 }
 0x2e2   : > { %v725_v60 = vmul.f32 %v2735_v47, %v715_v33  ;;  %v730_v56 = vadd.f32 %v722_v32, %v700_v1  ;;  %v731_v25 = vadd.f32 %v723_v55, %v701_v10  ;;  %v745_v43 = vpop.permute.xlu0 %744  ;;  %v750_v22 = vpop.permute.xlu1 %749  ;;  %v676_v58 = vmul.f32 %v3082_v13, %v3365_v38 }
 0x2e3   : > { %v729_v12 = vmul.f32 %v2719_v35, %v720_v29  ;;  %v734_v45 = vadd.f32 %v726_v37, %v704_v19  ;;  %916 = vrot.lane.b32.xlu0 %v3398_v8, %s2759_s14  ;;  %918 = vrot.lane.b32.xlu1 %v3400_v62, %s2759_s14  ;;  %v752_v14 = vmul.f32 %v745_v43, %v3275_v30 }
 0x2e4   : > { %v753_v28 = vmul.f32 %v745_v43, %v3315_v41  ;;  %v754_v10 = vmul.f32 %v745_v43, %v598_v17  ;;  %v756_v1 = vmul.f32 %v750_v22, %v3280_v59  ;;  %v757_v33 = vmul.f32 %v750_v22, %v3320_v31 }
 0x2e5   : > { %v732_v13 = vadd.f32 %v724_v40, %v702_v27  ;;  %v735_v32 = vadd.f32 %v727_v9, %v705_v63  ;;  %v736_v29 = vadd.f32 %v728_v6, %v706_v51  ;;  %v758_v19 = vmul.f32 %v750_v22, %v3365_v38 }
 0x2e6   : > { %v755_v55 = vmul.f32 %v745_v43, %v3360_v18  ;;  %v759_v37 = vmul.f32 %v750_v22, %v3370_v3  ;;  %v3447_v54 = vadd.f32 %v752_v14, %v730_v56  ;;  %v3449_v36 = vadd.f32 %v756_v1, %v734_v45 }
 0x2e7   : > { %v733_v53 = vadd.f32 %v725_v60, %v703_v2  ;;  %920 = vrot.lane.b32.xlu0 %v3424_v23, %s2759_s14  ;;  %922 = vrot.lane.b32.xlu1 %v3426_v61, %s2759_s14  ;;  %v654_v17 = vadd.f32 %v3217_v49, %v3382_v46  ;;  %v3457_v41 = vadd.f32 %v754_v10, %v732_v13  ;;  %v4629_v6 = vmov 0.0  }
 0x2e8   : > { %v737_v31 = vadd.f32 %v729_v12, %v707_v34  ;;  %v3459_v43 = vadd.f32 %v758_v19, %v736_v29  ;;  %v761_v38 = vadd.f32 %v753_v28, %v731_v25  ;;  %v765_v27 = vadd.f32 %v757_v33, %v735_v32  ;;  %1048 = vmatprep.mubr.f32.mxu0 %v4629_v6  ;;  %v4701_v28 = vld [vmem:[#allocation5_spill] sm:$0xff] }
 0x2e9   : > { %v3461_v63 = vadd.f32 %v672_v57, %v650_v24  ;;  %v3463_v51 = vadd.f32 %v676_v58, %v654_v17  ;;  %v834_v2 = vmul.f32 %v3096_v21, %v3275_v30  ;;  %v838_v40 = vmul.f32 %v3094_v20, %v3280_v59  ;;  %1125 = vmatprep.mubr.f32.mxu1 %v4629_v6  ;;  %v4700_v58 = vld [vmem:[#allocation16_spill] sm:$0xff]  ;;  %v4705_v29 = vld [vmem:[#allocation17_spill] sm:$0xff] }
 0x2ea   : > { %v785_v49 = vmul.f32 %v3088_v16, %v3270_v48  ;;  %v3471_v46 = vadd.f32 %v755_v55, %v733_v53  ;;  %v3473_v34 = vadd.f32 %v759_v37, %v737_v31  ;;  %v789_v9 = vmul.f32 %v3086_v15, %v3294_v11  ;;  %v4695_v16 = vld [vmem:[#allocation15_spill] sm:$0xff]  ;;  %v4696_v48 = vld [vmem:[#allocation14_spill] sm:$0xff] }
 0x2eb   : > { %858 = vrot.lane.b32.xlu0 %v3461_v63, %s2758_s2  ;;  %860 = vrot.lane.b32.xlu1 %v3463_v51, %s2758_s2  ;;  %v812_v30 = vadd.f32 %v3229_v39, %v3298_v5  ;;  %v816_v59 = vadd.f32 %v3233_v0, %v3388_v4  ;;  %v807_v53 = vmul.f32 %v2735_v47, %v4695_v16  ;;  %vm4702_vm3 = vcmp.ne.s32.totalorder %v4701_v28, 0  ;;  %v4706_v31 = vld [vmem:[#allocation30_spill] sm:$0xff]  ;;  %v4719_v28 = vld [vmem:[#allocation27_spill] sm:$0xff] }
 0x2ec   : > { %v811_v24 = vmul.f32 %v2719_v35, %v4696_v48  ;;  %v837_v39 = vmul.f32 %v3096_v21, %v3360_v18  ;;  %v841_v0 = vmul.f32 %v3094_v20, %v3370_v3  ;;  %v4697_v21 = vmov 0   ;;  %v4698_v3 = vld [vmem:[#allocation4_spill] sm:$0xff] }
 0x2ed   : > { %v3491_v15 = vadd.f32 %v834_v2, %v812_v30  ;;  %v3493_v11 = vadd.f32 %v838_v40, %v816_v59  ;;  %v815_v5 = vadd.f32 %v807_v53, %v785_v49  ;;  %vm4699_vm2 = vcmp.ne.s32.totalorder %v4698_v3, 0  ;;  %v4711_v59 = vld [vmem:[#allocation18_spill] sm:$0xff]  ;;  %v4712_v53 = vld [vmem:[#allocation19_spill] sm:$0xff] }
 0x2ee   : > { %v819_v4 = vadd.f32 %v811_v24, %v789_v9  ;;  %v875_v56 = vsel %vm4699_vm2, 1, %v4697_v21  ;;  %v937_v10 = vsel %vm4702_vm3, 1, %v4697_v21 }
 0x2ef   : > { %912 = vrot.lane.b32.xlu0 %v3491_v15, %s2759_s14  ;;  %914 = vrot.lane.b32.xlu1 %v3493_v11, %s2759_s14  ;;  %v3503_v57 = vadd.f32 %v837_v39, %v815_v5  ;;  %v883_v12 = vrot.slane %v875_v56, %v4700_v58  ;;  %v945_v32 = vrot.slane %v937_v10, %v4700_v58 }
 0x2f0   : > { %v3505_v60 = vadd.f32 %v841_v0, %v819_v4  ;;  %v879_v19 = vrot.slane %v875_v56, %v4705_v29  ;;  %v887_v16 = vrot.slane %v875_v56, %v4711_v59  ;;  %v891_v48 = vrot.slane %v875_v56, %v4712_v53 }
 0x2f1   : > { %vm3519_vm0 = vcmp.eq.s32.totalorder %v883_v12, 1  ;;  %vm3536_vm2 = vcmp.eq.s32.totalorder %v945_v32, 1  ;;  %v941_v12 = vrot.slane %v937_v10, %v4705_v29 }
 0x2f2   : > { %vm3540_vm3 = vcmp.eq.s32.totalorder %v879_v19, 1  ;;  %vm3561_vm7 = vcmp.eq.s32.totalorder %v887_v16, 1  ;;  %vm3565_vm5 = vcmp.eq.s32.totalorder %v891_v48, 1  ;;  %v953_v16 = vrot.slane %v937_v10, %v4712_v53 }
 0x2f3   : > { %924 = vrot.lane.b32.xlu0 %v3503_v57, %s2759_s14  ;;  %926 = vrot.lane.b32.xlu1 %v3505_v60, %s2759_s14  ;;  %vm3583_vm4 = vcmp.eq.s32.totalorder %v941_v12, 1  ;;  %v4727_v53 = vmov 0  ;;  %v976_v12 = vld [vmem:[%s3640_s18] sm:$0xff] }
 0x347   : > { %v851_v18 = vpop.permute.xlu0 %850  ;;  %v853_v20 = vpop.permute.xlu1 %852 }
 0x34d   : > { %v855_v25 = vpop.permute.xlu0 %854  ;;  %v857_v22 = vpop.permute.xlu1 %856 }
 0x34e   : > { %v871_v33 = vsel %vm4619_vm15, %v851_v18, %v855_v25  ;;  %v872_v13 = vsel %vm4619_vm15, %v853_v20, %v857_v22 }
 0x34f   : > { %v897_v17 = vsel %vm3519_vm0, %v3372_v50, %v871_v33  ;;  %v901_v2 = vsel %vm3519_vm0, %v4706_v31, %v872_v13  ;;  %v4720_v33 = vld [vmem:[#allocation28_spill] sm:$0xff]  ;;  %v4721_v31 = vmov 0 }
 0x350   : > { %v905_v39 = vadd.f32 %v897_v17, %v761_v38  ;;  %v909_v0 = vadd.f32 %v901_v2, %v765_v27  ;;  %v4713_v38 = vmov 0  ;;  %v4716_v27 = vmov 0 }
 0x351   : > { %v863_v45 = vpop.permute.xlu0 %862  ;;  %v865_v14 = vpop.permute.xlu1 %864  ;;  %v4714_v38 = vsel %vm3561_vm7, 4294967295, %v4713_v38  ;;  %v4717_v27 = vsel %vm3565_vm5, 4294967295, %v4716_v27  ;;  %v4722_v31 = vsel %vm3583_vm4, 4294967295, %v4721_v31  ;;  %v949_v2 = vrot.slane %v937_v10, %v4711_v59 }
 0x352   : > { %v873_v5 = vsel %vm4619_vm15, %v863_v45, %v851_v18  ;;  %v874_v4 = vsel %vm4619_vm15, %v865_v14, %v853_v20  ;;  %4715 = vst [vmem:[#allocation15_spill] sm:$0xff] %v4714_v38  ;;  %4718 = vst [vmem:[#allocation14_spill] sm:$0xff] %v4717_v27 }
 0x353   : > { %4723 = vst [vmem:[#allocation16_spill] sm:$0xff] %v4722_v31 }
 0x355   : > { %v917_v55 = vpop.permute.xlu0 %916  ;;  %v919_v37 = vpop.permute.xlu1 %918 }
 0x359   : > { %v921_v9 = vpop.permute.xlu0 %920  ;;  %v923_v30 = vpop.permute.xlu1 %922 }
 0x35a   : > { %v931_v50 = vsel %vm4622_vm1, %v917_v55, %v921_v9  ;;  %v932_v24 = vsel %vm4622_vm1, %v919_v37, %v923_v30 }
 0x35b   : > { %v959_v21 = vsel %vm3536_vm2, %v3398_v8, %v931_v50  ;;  %v963_v3 = vsel %vm3536_vm2, %v3400_v62, %v932_v24  ;;  %v896_v8 = vsel %vm3540_vm3, %v4719_v28, %v873_v5  ;;  %v900_v62 = vsel %vm3540_vm3, %v4720_v33, %v874_v4 }
 0x35c   : > { %v967_v56 = vadd.f32 %v959_v21, %v905_v39  ;;  %v971_v58 = vadd.f32 %v963_v3, %v909_v0 }
 0x35d   : > { %v859_v18 = vpop.permute.xlu0 %858  ;;  %v861_v20 = vpop.permute.xlu1 %860 }
 0x35e   : > { %v867_v13 = vsel %vm4619_vm15, %v859_v18, %v863_v45  ;;  %v869_v32 = vsel %vm4619_vm15, %v855_v25, %v859_v18  ;;  %v868_v29 = vsel %vm4619_vm15, %v861_v20, %v865_v14  ;;  %v870_v19 = vsel %vm4619_vm15, %v857_v22, %v861_v20 }
 0x35f   : > { %v2497_v17 = vpack.c.bf16 %v971_v58, %v967_v56  ;;  %v904_v45 = vadd.f32 %v896_v8, %v3447_v54  ;;  %v908_v25 = vadd.f32 %v900_v62, %v3449_v36  ;;  %v898_v14 = vsel %vm3561_vm7, %v3461_v63, %v869_v32 }
 0x360   : > { %v899_v22 = vsel %vm3565_vm5, %v3407_v7, %v867_v13  ;;  %v902_v59 = vsel %vm3561_vm7, %v3463_v51, %v870_v19  ;;  %v903_v54 = vsel %vm3565_vm5, %v3409_v52, %v868_v29  ;;  %vm3616_vm15 = vcmp.eq.s32.totalorder %v949_v2, 1 }
 0x361   : > { %v913_v48 = vpop.permute.xlu0 %912  ;;  %v915_v50 = vpop.permute.xlu1 %914  ;;  %2498 = vmatprep.subr.bf16.mxu0 %v2497_v17  ;;  %v4724_v52 = vmov 0  ;;  %vm3620_vm5 = vcmp.eq.s32.totalorder %v953_v16, 1  ;;  %v911_v0 = vadd.f32 %v903_v54, %v3473_v34 }
 0x362   : > { %v933_v36 = vsel %vm4622_vm1, %v913_v48, %v917_v55  ;;  %v934_v63 = vsel %vm4622_vm1, %v915_v50, %v919_v37  ;;  %v4725_v52 = vsel %vm3616_vm15, 4294967295, %v4724_v52  ;;  %v4728_v53 = vsel %vm3620_vm5, 4294967295, %v4727_v53 }
 0x363   : > { %v958_v7 = vsel %vm3583_vm4, %v3491_v15, %v933_v36  ;;  %v962_v10 = vsel %vm3583_vm4, %v3493_v11, %v934_v63  ;;  %4726 = vst [vmem:[#allocation17_spill] sm:$0xff] %v4725_v52  ;;  %4729 = vst [vmem:[#allocation30_spill] sm:$0xff] %v4728_v53  ;;  %v906_v37 = vadd.f32 %v898_v14, %v3457_v41 }
 0x364   : > { %v966_v51 = vadd.f32 %v958_v7, %v904_v45  ;;  %v970_v55 = vadd.f32 %v962_v10, %v908_v25  ;;  %v910_v15 = vadd.f32 %v902_v59, %v3459_v43  ;;  %v907_v11 = vadd.f32 %v899_v22, %v3471_v46 }
 0x365   : > { %v925_v24 = vpop.permute.xlu0 %924  ;;  %v927_v39 = vpop.permute.xlu1 %926 }
 0x366   : > { %v929_v5 = vsel %vm4622_vm1, %v921_v9, %v925_v24  ;;  %v935_v4 = vsel %vm4622_vm1, %v925_v24, %v913_v48  ;;  %v930_v21 = vsel %vm4622_vm1, %v923_v30, %v927_v39  ;;  %v936_v41 = vsel %vm4622_vm1, %v927_v39, %v915_v50 }
 0x367   : > { %v960_v43 = vsel %vm3616_vm15, %v3424_v23, %v929_v5  ;;  %v964_v46 = vsel %vm3616_vm15, %v3426_v61, %v930_v21  ;;  %v2499_v34 = vpack.c.bf16 %v970_v55, %v966_v51  ;;  %v961_v9 = vsel %vm3620_vm5, %v3503_v57, %v935_v4  ;;  %v977_v61 = vld [vmem:[%s3640_s18 + $0x8] sm:$0xff] }
 0x368   : > { %v965_v30 = vsel %vm3620_vm5, %v3505_v60, %v936_v41  ;;  %v969_v3 = vadd.f32 %v961_v9, %v907_v11  ;;  %v968_v56 = vadd.f32 %v960_v43, %v906_v37  ;;  %v972_v58 = vadd.f32 %v964_v46, %v910_v15 }
 0x369   : > { %2500 = vmatpush1.bf16.msra.mxu0 %v2499_v34  ;;  %v973_v23 = vadd.f32 %v965_v30, %v911_v0  ;;  %vm4730_vm1 = vcmask 130048  }
 0x36a   : > { %v2503_v18 = vpack.c.bf16 %v972_v58, %v968_v56  ;;  %vm4731_vm15 = vmmov %vm4730_vm1  ;;  %v1139_v58 = vld [vmem:[%s3708_s20] sm:$0xff] }
 0x36b   : > { %v2501_v20 = vpack.c.bf16 %v973_v23, %v969_v3  ;;  %vm4732_vm4 = vmmov %vm4730_vm1 }
 0x36c   : > { %2442 = vmatmul.mubr.msk.f32.vlgmr.msra.gmra.mrb[0].mxu0 %vm4730_vm1, %v976_v12  ;;  %vm4733_vm5 = vmmov %vm4730_vm1 }
 0x36d   : > { %2502 = vmatprep.subr.bf16.mxu1 %v2501_v20  ;;  %1054 = vmatprep.mubr.f32.mxu0 %v4629_v6  ;;  %v1140_v20 = vld [vmem:[%s3708_s20 + $0x8] sm:$0xff] }
 0x36e   : > { %2504 = vmatpush1.bf16.msra.mxu1 %v2503_v18  ;;  %v1142_v18 = vld [vmem:[%s3715_s3] sm:$0xff] }
 0x370   : > { %2443 = vmatmul.mubr.msk.f32.gmra.mrb[2].mxu0 %vm4731_vm15, %v977_v61 }
 0x371   : > { %2444 = vmatmul.mubr.msk.f32.vlgmr.msra.gmra.mrb[0].mxu1 %vm4732_vm4, %v976_v12  ;;  %1900 = vmatprep.mubr.f32.mxu0 %v4629_v6 }
 0x372   : > { %1131 = vmatprep.mubr.f32.mxu1 %v4629_v6 }
 0x375   : > { %2445 = vmatmul.mubr.msk.f32.gmra.mrb[2].mxu1 %vm4733_vm5, %v977_v61 }
 0x376   : > { %1977 = vmatprep.mubr.f32.mxu1 %v4629_v6 }
 0x43f   : > { %v3664_v57 = vpop.f32.mrb[0].mxu0 }
 0x440   : > { %v1154_v60 = vmul.f32 %v3664_v57, %v3664_v57  ;;  %v3668_v28 = vpop.f32.mrb[1].mxu0 }
 0x441   : > { %v1144_v8 = vadd.f32 %v3668_v28, %v3664_v57  ;;  %v1155_v33 = vmul.f32 %v3668_v28, %v3668_v28 }
 0x443   : > { %v3674_v62 = vpop.f32.mrb[2].mxu0  ;;  %v1162_v13 = vadd.f32 %v1155_v33, %v1154_v60 }
 0x444   : > { %v3676_v32 = vpop.f32.mrb[0].mxu1  ;;  %v1158_v29 = vmul.f32 %v3674_v62, %v3674_v62  ;;  %v3680_v19 = vpop.f32.mrb[3].mxu0 }
 0x445   : > { %v1156_v17 = vmul.f32 %v3676_v32, %v3676_v32  ;;  %v3684_v2 = vpop.f32.mrb[1].mxu1  ;;  %v1149_v16 = vadd.f32 %v3680_v19, %v3674_v62  ;;  %v1159_v45 = vmul.f32 %v3680_v19, %v3680_v19  ;;  %v1145_v25 = vadd.f32 %v1144_v8, %v3676_v32 }
 0x446   : > { %v1157_v14 = vmul.f32 %v3684_v2, %v3684_v2 }
 0x447   : > { %v1146_v22 = vadd.f32 %v1145_v25, %v3684_v2  ;;  %v1163_v48 = vadd.f32 %v1162_v13, %v1156_v17  ;;  %v1167_v50 = vadd.f32 %v1159_v45, %v1158_v29  ;;  %v1143_v13 = vld [vmem:[%s3715_s3 + $0x8] sm:$0xff]  ;;  %v2446_v17 = vld [vmem:[%s3024_s30 + $0x90] sm:$0xff]  ;;  %v2448_v45 = vld [vmem:[%s3024_s30 + $0xa0] sm:$0xff] }
 0x448   : > { %v3694_v59 = vpop.f32.mrb[2].mxu1  ;;  %v2447_v25 = vld [vmem:[%s3024_s30 + $0x98] sm:$0xff] }
 0x449   : > { %v1160_v54 = vmul.f32 %v3694_v59, %v3694_v59  ;;  %1147 = vadd.xlane.f32.xlu0 %v1146_v22  ;;  %v3698_v36 = vpop.f32.mrb[3].mxu1  ;;  %v1164_v63 = vadd.f32 %v1163_v48, %v1157_v14  ;;  %v1150_v7 = vadd.f32 %v1149_v16, %v3694_v59  ;;  %v2450_v14 = vld [vmem:[%s3024_s30 + $0xb0] sm:$0xff]  ;;  %v2449_v22 = vld [vmem:[%s3024_s30 + $0xa8] sm:$0xff] }
 0x44a   : > { %v1161_v10 = vmul.f32 %v3698_v36, %v3698_v36  ;;  %v2458_v48 = vld [vmem:[%s3024_s30 + $0xf0] sm:$0xff] }
 0x44b   : > { %v1151_v51 = vadd.f32 %v1150_v7, %v3698_v36  ;;  %v1168_v55 = vadd.f32 %v1167_v50, %v1160_v54  ;;  %v2451_v50 = vld [vmem:[%s3024_s30 + $0xb8] sm:$0xff]  ;;  %v2460_v54 = vld [vmem:[%s3024_s30 + $0x100] sm:$0xff]  ;;  %v2462_v7 = vld [vmem:[%s3024_s30 + $0x110] sm:$0xff] }
 0x44d   : > { %1165 = vadd.xlane.f32.xlu0 %v1164_v63  ;;  %1152 = vadd.xlane.f32.xlu1 %v1151_v51  ;;  %v1169_v37 = vadd.f32 %v1168_v55, %v1161_v10  ;;  %v2459_v63 = vld [vmem:[%s3024_s30 + $0xf8] sm:$0xff]  ;;  %v2461_v10 = vld [vmem:[%s3024_s30 + $0x108] sm:$0xff] }
 0x44e   : > { %v2463_v51 = vld [vmem:[%s3024_s30 + $0x118] sm:$0xff] }
 0x451   : > { %1170 = vadd.xlane.f32.xlu0 %v1169_v37 }
 0x4d6   : > { %v1148_v15 = vpop.xlane.xlu0 %1147 }
 0x4d7   : > { %v1172_v24 = vmul.f32 0.001953125, %v1148_v15 }
 0x4d9   : > { %v1176_v0 = vmul.f32 %v1172_v24, %v1172_v24 }
 0x4da   : > { %v1166_v39 = vpop.xlane.xlu0 %1165  ;;  %v1153_v11 = vpop.xlane.xlu1 %1152 }
 0x4db   : > { %v1174_v5 = vmul.f32 0.001953125, %v1166_v39  ;;  %v1173_v4 = vmul.f32 0.001953125, %v1153_v11 }
 0x4dd   : > { %v1178_v21 = vsub.f32 %v1174_v5, %v1176_v0  ;;  %v1177_v46 = vmul.f32 %v1173_v4, %v1173_v4 }
 0x4de   : > { %v1171_v41 = vpop.xlane.xlu0 %1170 }
 0x4df   : > { %v1180_v43 = vmax.f32 %v1178_v21, 0.0  ;;  %v1175_v34 = vmul.f32 0.001953125, %v1171_v41 }
 0x4e1   : > { %v1182_v9 = vadd.f32 1e-05, %v1180_v43  ;;  %v1179_v30 = vsub.f32 %v1175_v34, %v1177_v46 }
 0x4e3   : > { %2609 = vrsqrt.f32 %v1182_v9  ;;  %v1181_v3 = vmax.f32 %v1179_v30, 0.0 }
 0x4e5   : > { %v1183_v56 = vadd.f32 1e-05, %v1181_v3 }
 0x4e7   : > { %2611 = vrsqrt.f32 %v1183_v56 }
 0x4ed   : > { %v2610_v12 = vpop.eup %2609 }
 0x4ee   : > { %v1186_v23 = vmul.f32 %v2610_v12, %v1139_v58 }
 0x4f0   : > { %1190 = vperm.xlu1 %2608, %v1186_v23   ;;  %v1206_v61 = vmul.f32 %v1186_v23, %v1172_v24 }
 0x4f1   : > { %v2612_v60 = vpop.eup %2611 }
 0x4f2   : > { %v1208_v8 = vsub.f32 %v1142_v18, %v1206_v61  ;;  %v1187_v33 = vmul.f32 %v2612_v60, %v1140_v20 }
 0x4f4   : > { %1212 = vperm.xlu1 %2608, %v1208_v8   ;;  %1195 = vperm.xlu0 %2607, %v1187_v33   ;;  %v1207_v29 = vmul.f32 %v1187_v33, %v1173_v4 }
 0x4f6   : > { %v1209_v16 = vsub.f32 %v1143_v13, %v1207_v29 }
 0x4f8   : > { %1506 = vperm.xlu0 %2607, %v2446_v17   ;;  %1217 = vperm.xlu1 %2608, %v1209_v16  }
 0x4fc   : > { %1528 = vperm.xlu0 %2607, %v2448_v45   ;;  %1511 = vperm.xlu1 %2608, %v2447_v25  }
 0x500   : > { %1558 = vperm.xlu0 %2607, %v2450_v14   ;;  %1533 = vperm.xlu1 %2608, %v2449_v22  }
 0x504   : > { %1670 = vperm.xlu0 %2607, %v2458_v48   ;;  %1563 = vperm.xlu1 %2608, %v2451_v50  }
 0x508   : > { %1692 = vperm.xlu0 %2607, %v2460_v54   ;;  %1675 = vperm.xlu1 %2608, %v2459_v63  }
 0x50c   : > { %1722 = vperm.xlu0 %2607, %v2462_v7   ;;  %1697 = vperm.xlu1 %2608, %v2461_v10  }
 0x510   : > { %1727 = vperm.xlu1 %2608, %v2463_v51  }
 0x56f   : > { %v1191_v55 = vpop.permute.xlu1 %1190 }
 0x570   : > { %v1198_v37 = vmul.f32 %v1191_v55, %v3664_v57  ;;  %v1199_v15 = vmul.f32 %v1191_v55, %v3668_v28  ;;  %v1200_v24 = vmul.f32 %v1191_v55, %v3676_v32  ;;  %v1201_v39 = vmul.f32 %v1191_v55, %v3684_v2 }
 0x573   : > { %v1213_v11 = vpop.permute.xlu1 %1212  ;;  %v1196_v2 = vpop.permute.xlu0 %1195 }
 0x574   : > { %v3736_v0 = vadd.f32 %v1213_v11, %v1198_v37  ;;  %v3738_v5 = vadd.f32 %v1213_v11, %v1199_v15  ;;  %v3740_v4 = vadd.f32 %v1213_v11, %v1200_v24  ;;  %v3742_v21 = vadd.f32 %v1213_v11, %v1201_v39 }
 0x575   : > { %v1202_v12 = vmul.f32 %v1196_v2, %v3674_v62  ;;  %v1203_v23 = vmul.f32 %v1196_v2, %v3680_v19  ;;  %v1204_v18 = vmul.f32 %v1196_v2, %v3694_v59  ;;  %v1205_v61 = vmul.f32 %v1196_v2, %v3698_v36 }
 0x576   : > { %v3745_v41 = vmul.f32 0.70710677, %v3736_v0  ;;  %v3748_v57 = vmul.f32 0.70710677, %v3738_v5  ;;  %v3751_v28 = vmul.f32 0.70710677, %v3740_v4 }
 0x577   : > { %v3754_v32 = vmul.f32 0.70710677, %v3742_v21  ;;  %v1218_v58 = vpop.permute.xlu1 %1217 }
 0x578   : > { %v1244_v43 = vand.u32 2147483647, %v3745_v41  ;;  %v1245_v46 = vand.u32 2147483647, %v3748_v57  ;;  %v1246_v34 = vand.u32 2147483647, %v3751_v28  ;;  %v3764_v29 = vadd.f32 %v1218_v58, %v1202_v12 }
 0x579   : > { %v1247_v9 = vand.u32 2147483647, %v3754_v32  ;;  %v3766_v17 = vadd.f32 %v1218_v58, %v1203_v23  ;;  %v3768_v16 = vadd.f32 %v1218_v58, %v1204_v18  ;;  %v3770_v45 = vadd.f32 %v1218_v58, %v1205_v61 }
 0x57a   : > { %v1252_v30 = vmul.f32 0.3275911, %v1244_v43  ;;  %v1253_v3 = vmul.f32 0.3275911, %v1245_v46  ;;  %v1254_v56 = vmul.f32 0.3275911, %v1246_v34 }
 0x57b   : > { %v1255_v20 = vmul.f32 0.3275911, %v1247_v9  ;;  %v1348_v62 = vsub.f32 0.0, %v1244_v43  ;;  %v3773_v19 = vmul.f32 0.70710677, %v3764_v29  ;;  %v1349_v36 = vsub.f32 0.0, %v1245_v46 }
 0x57c   : > { %v1260_v60 = vadd.f32 1.0, %v1252_v30  ;;  %v1261_v8 = vadd.f32 1.0, %v1253_v3  ;;  %v1262_v33 = vadd.f32 1.0, %v1254_v56  ;;  %v3776_v59 = vmul.f32 0.70710677, %v3766_v17 }
 0x57d   : > { %v1263_v13 = vadd.f32 1.0, %v1255_v20  ;;  %v3779_v25 = vmul.f32 0.70710677, %v3768_v16  ;;  %v3782_v14 = vmul.f32 0.70710677, %v3770_v45  ;;  %v1350_v22 = vsub.f32 0.0, %v1246_v34 }
 0x57e   : > { %2613 = vrcp.f32 %v1260_v60  ;;  %v1248_v48 = vand.u32 2147483647, %v3773_v19  ;;  %v1249_v50 = vand.u32 2147483647, %v3776_v59  ;;  %v1351_v54 = vsub.f32 0.0, %v1247_v9 }
 0x57f   : > { %2615 = vrcp.f32 %v1261_v8  ;;  %v1250_v63 = vand.u32 2147483647, %v3779_v25  ;;  %v1251_v7 = vand.u32 2147483647, %v3782_v14  ;;  %v1356_v10 = vmul.f32 %v1348_v62, %v1244_v43 }
 0x580   : > { %2617 = vrcp.f32 %v1262_v33  ;;  %v1256_v51 = vmul.f32 0.3275911, %v1248_v48  ;;  %v1257_v55 = vmul.f32 0.3275911, %v1249_v50  ;;  %v1357_v37 = vmul.f32 %v1349_v36, %v1245_v46 }
 0x581   : > { %2619 = vrcp.f32 %v1263_v13  ;;  %v1258_v15 = vmul.f32 0.3275911, %v1250_v63  ;;  %v1259_v24 = vmul.f32 0.3275911, %v1251_v7  ;;  %v1358_v39 = vmul.f32 %v1350_v22, %v1246_v34 }
 0x582   : > { %v1264_v11 = vadd.f32 1.0, %v1256_v51  ;;  %v1265_v2 = vadd.f32 1.0, %v1257_v55  ;;  %v1352_v30 = vsub.f32 0.0, %v1248_v48  ;;  %v1359_v56 = vmul.f32 %v1351_v54, %v1247_v9 }
 0x583   : > { %v1266_v58 = vadd.f32 1.0, %v1258_v15  ;;  %v1267_v12 = vadd.f32 1.0, %v1259_v24  ;;  %v1353_v23 = vsub.f32 0.0, %v1249_v50  ;;  %v1364_v43 = vmul.f32 1.442695, %v1356_v10 }
 0x584   : > { %2621 = vrcp.f32 %v1264_v11  ;;  %v1355_v61 = vsub.f32 0.0, %v1251_v7  ;;  %v1366_v60 = vmul.f32 1.442695, %v1357_v37  ;;  %v1354_v8 = vsub.f32 0.0, %v1250_v63 }
 0x585   : > { %2623 = vrcp.f32 %v1265_v2  ;;  %v1360_v62 = vmul.f32 %v1352_v30, %v1248_v48  ;;  %v1361_v54 = vmul.f32 %v1353_v23, %v1249_v50  ;;  %v1368_v55 = vmul.f32 1.442695, %v1358_v39 }
 0x586   : > { %2625 = vrcp.f32 %v1266_v58  ;;  %v1363_v15 = vmul.f32 %v1355_v61, %v1251_v7  ;;  %v1370_v11 = vmul.f32 1.442695, %v1359_v56  ;;  %v1362_v58 = vmul.f32 %v1354_v8, %v1250_v63 }
 0x587   : > { %2627 = vrcp.f32 %v1267_v12  ;;  %v1372_v48 = vmul.f32 1.442695, %v1360_v62  ;;  %v1374_v50 = vmul.f32 1.442695, %v1361_v54  ;;  %v3806_v39 = vmul.f32 0.5, %v3736_v0 }
 0x588   : > { %v3788_v3 = vpop.eup %2613  ;;  %2629 = vpow2.f32 %v1364_v43  ;;  %v1378_v7 = vmul.f32 1.442695, %v1363_v15  ;;  %vm1396_vm1 = vcmp.lt.f32.partialorder %v3745_v41, 0.0  ;;  %vm1397_vm4 = vcmp.lt.f32.partialorder %v3748_v57, 0.0 }
 0x589   : > { %v3790_v18 = vpop.eup %2615  ;;  %v1276_v20 = vmul.f32 1.0614054, %v3788_v3  ;;  %2631 = vpow2.f32 %v1366_v60  ;;  %v1376_v60 = vmul.f32 1.442695, %v1362_v58  ;;  %vm1399_vm5 = vcmp.lt.f32.partialorder %v3754_v32, 0.0 }
 0x58a   : > { %v3793_v46 = vpop.eup %2617  ;;  %v1277_v34 = vmul.f32 1.0614054, %v3790_v18  ;;  %2633 = vpow2.f32 %v1368_v55  ;;  %v1229_v57 = vmul.f32 0.5, %v3738_v5  ;;  %vm1398_vm15 = vcmp.lt.f32.partialorder %v3751_v28, 0.0 }
 0x58b   : > { %v3796_v33 = vpop.eup %2619  ;;  %v1278_v9 = vmul.f32 1.0614054, %v3793_v46  ;;  %v1284_v13 = vadd.f32 -1.4531521, %v1276_v20  ;;  %2635 = vpow2.f32 %v1370_v11 }
 0x58c   : > { %v1279_v36 = vmul.f32 1.0614054, %v3796_v33  ;;  %v1285_v22 = vadd.f32 -1.4531521, %v1277_v34  ;;  %2637 = vpow2.f32 %v1372_v48 }
 0x58d   : > { %v1286_v10 = vadd.f32 -1.4531521, %v1278_v9  ;;  %v1292_v51 = vmul.f32 %v3788_v3, %v1284_v13  ;;  %2639 = vpow2.f32 %v1374_v50 }
 0x58e   : > { %v1287_v37 = vadd.f32 -1.4531521, %v1279_v36  ;;  %v1293_v24 = vmul.f32 %v3790_v18, %v1285_v22  ;;  %v3809_v61 = vpop.eup %2621  ;;  %2641 = vpow2.f32 %v1378_v7 }
 0x58f   : > { %v1294_v2 = vmul.f32 %v3793_v46, %v1286_v10  ;;  %v1300_v20 = vadd.f32 1.4214138, %v1292_v51  ;;  %v3812_v9 = vpop.eup %2623  ;;  %v1280_v36 = vmul.f32 1.0614054, %v3809_v61  ;;  %2643 = vpow2.f32 %v1376_v60 }
 0x590   : > { %v1295_v30 = vmul.f32 %v3796_v33, %v1287_v37  ;;  %v1301_v34 = vadd.f32 1.4214138, %v1293_v24  ;;  %v3816_v0 = vpop.eup %2625  ;;  %v1281_v10 = vmul.f32 1.0614054, %v3812_v9 }
 0x591   : > { %v1302_v12 = vadd.f32 1.4214138, %v1294_v2  ;;  %v1308_v23 = vmul.f32 %v3788_v3, %v1300_v20  ;;  %v3820_v51 = vpop.eup %2627  ;;  %v1282_v37 = vmul.f32 1.0614054, %v3816_v0  ;;  %v1288_v24 = vadd.f32 -1.4531521, %v1280_v36 }
 0x592   : > { %v1303_v43 = vadd.f32 1.4214138, %v1295_v30  ;;  %v1309_v56 = vmul.f32 %v3790_v18, %v1301_v34  ;;  %v1283_v20 = vmul.f32 1.0614054, %v3820_v51  ;;  %v1289_v58 = vadd.f32 -1.4531521, %v1281_v10  ;;  %v2630_v48 = vpop.eup %2629 }
 0x593   : > { %v1310_v63 = vmul.f32 %v3793_v46, %v1302_v12  ;;  %v1316_v8 = vadd.f32 -0.28449672, %v1308_v23  ;;  %v1290_v50 = vadd.f32 -1.4531521, %v1282_v37  ;;  %v1296_v12 = vmul.f32 %v3809_v61, %v1288_v24 }
 0x594   : > { %v1311_v13 = vmul.f32 %v3796_v33, %v1303_v43  ;;  %v1317_v62 = vadd.f32 -0.28449672, %v1309_v56  ;;  %v1291_v43 = vadd.f32 -1.4531521, %v1283_v20  ;;  %v1297_v56 = vmul.f32 %v3812_v9, %v1289_v58 }
 0x595   : > { %v1318_v22 = vadd.f32 -0.28449672, %v1310_v63  ;;  %v1324_v54 = vmul.f32 %v3788_v3, %v1316_v8  ;;  %v2632_v63 = vpop.eup %2631  ;;  %v1304_v36 = vadd.f32 1.4214138, %v1296_v12 }
 0x596   : > { %v1319_v55 = vadd.f32 -0.28449672, %v1311_v13  ;;  %v1325_v15 = vmul.f32 %v3790_v18, %v1317_v62  ;;  %v1298_v62 = vmul.f32 %v3816_v0, %v1290_v50 }
 0x597   : > { %v1326_v11 = vmul.f32 %v3793_v46, %v1318_v22  ;;  %v1332_v2 = vadd.f32 0.2548296, %v1324_v54  ;;  %v2634_v22 = vpop.eup %2633 }
 0x598   : > { %v1327_v30 = vmul.f32 %v3796_v33, %v1319_v55  ;;  %v1333_v34 = vadd.f32 0.2548296, %v1325_v15  ;;  %v1299_v55 = vmul.f32 %v3820_v51, %v1291_v43  ;;  %v1305_v15 = vadd.f32 1.4214138, %v1297_v56 }
 0x599   : > { %v1334_v23 = vadd.f32 0.2548296, %v1326_v11  ;;  %v1340_v7 = vmul.f32 %v3788_v3, %v1332_v2  ;;  %v2636_v3 = vpop.eup %2635  ;;  %v1306_v11 = vadd.f32 1.4214138, %v1298_v62  ;;  %v1312_v2 = vmul.f32 %v3809_v61, %v1304_v36 }
 0x59a   : > { %v1335_v8 = vadd.f32 0.2548296, %v1327_v30  ;;  %v1341_v13 = vmul.f32 %v3790_v18, %v1333_v34  ;;  %v2638_v20 = vpop.eup %2637  ;;  %v1307_v30 = vadd.f32 1.4214138, %v1299_v55  ;;  %v1313_v34 = vmul.f32 %v3812_v9, %v1305_v15 }
 0x59b   : > { %v1342_v54 = vmul.f32 %v3793_v46, %v1334_v23  ;;  %v1380_v10 = vmul.f32 %v2630_v48, %v1340_v7  ;;  %v2640_v50 = vpop.eup %2639  ;;  %v1314_v48 = vmul.f32 %v3816_v0, %v1306_v11  ;;  %v1320_v23 = vadd.f32 -0.28449672, %v1312_v2 }
 0x59c   : > { %v1343_v37 = vmul.f32 %v3796_v33, %v1335_v8  ;;  %v1381_v24 = vmul.f32 %v2632_v63, %v1341_v13  ;;  %v2642_v7 = vpop.eup %2641  ;;  %v1315_v33 = vmul.f32 %v3820_v51, %v1307_v30  ;;  %v1321_v56 = vadd.f32 -0.28449672, %v1313_v34 }
 0x59d   : > { %v1382_v58 = vmul.f32 %v2634_v22, %v1342_v54  ;;  %v1388_v18 = vsub.f32 1.0, %v1380_v10  ;;  %v1322_v13 = vadd.f32 -0.28449672, %v1314_v48  ;;  %v1328_v62 = vmul.f32 %v3809_v61, %v1320_v23 }
 0x59e   : > { %v1383_v12 = vmul.f32 %v2636_v3, %v1343_v37  ;;  %v1389_v46 = vsub.f32 1.0, %v1381_v24  ;;  %v1323_v54 = vadd.f32 -0.28449672, %v1315_v33  ;;  %v1329_v10 = vmul.f32 %v3812_v9, %v1321_v56  ;;  %v2644_v56 = vpop.eup %2643 }
 0x59f   : > { %v1404_v43 = vsub.f32 0.0, %v1388_v18  ;;  %v1390_v36 = vsub.f32 1.0, %v1382_v58  ;;  %v1330_v37 = vmul.f32 %v3816_v0, %v1322_v13  ;;  %v1336_v24 = vadd.f32 0.2548296, %v1328_v62 }
 0x5a0   : > { %v1391_v63 = vsub.f32 1.0, %v1383_v12  ;;  %v1405_v8 = vsub.f32 0.0, %v1389_v46  ;;  %v1331_v60 = vmul.f32 %v3820_v51, %v1323_v54  ;;  %v1337_v41 = vadd.f32 0.2548296, %v1329_v10 }
 0x5a1   : > { %v1412_v22 = vsel %vm1396_vm1, %v1404_v43, %v1388_v18  ;;  %v1406_v58 = vsub.f32 0.0, %v1390_v36  ;;  %v1338_v30 = vadd.f32 0.2548296, %v1330_v37  ;;  %v1344_v12 = vmul.f32 %v3809_v61, %v1336_v24 }
 0x5a2   : > { %v1407_v55 = vsub.f32 0.0, %v1391_v63  ;;  %v1413_v15 = vsel %vm1397_vm4, %v1405_v8, %v1389_v46  ;;  %v1420_v3 = vadd.f32 1.0, %v1412_v22  ;;  %v1339_v34 = vadd.f32 0.2548296, %v1331_v60 }
 0x5a3   : > { %v1421_v11 = vadd.f32 1.0, %v1413_v15  ;;  %v1345_v46 = vmul.f32 %v3812_v9, %v1337_v41  ;;  %v1346_v32 = vmul.f32 %v3816_v0, %v1338_v30  ;;  %v1384_v43 = vmul.f32 %v2638_v20, %v1344_v12  ;;  %v2456_v41 = vld [vmem:[%s3024_s30 + $0xe0] sm:$0xff]  ;;  %v2457_v30 = vld [vmem:[%s3024_s30 + $0xe8] sm:$0xff] }
 0x5a4   : > { %v3851_v2 = vmul.f32 %v1420_v3, %v3806_v39  ;;  %v1415_v18 = vsel %vm1399_vm5, %v1407_v55, %v1391_v63  ;;  %v1347_v39 = vmul.f32 %v3820_v51, %v1339_v34  ;;  %v1414_v5 = vsel %vm1398_vm15, %v1406_v58, %v1390_v36  ;;  %v2453_v58 = vld [vmem:[%s3024_s30 + $0xc8] sm:$0xff]  ;;  %v3921_v34 = vpop.permute.xlu0 %1506 }
 0x5a5   : > { %v1423_v48 = vadd.f32 1.0, %v1415_v18  ;;  %v3861_v23 = vmul.f32 %v1421_v11, %v1229_v57  ;;  %v1385_v33 = vmul.f32 %v2640_v50, %v1345_v46  ;;  %v1231_v61 = vmul.f32 0.5, %v3742_v21  ;;  %v2455_v18 = vld [vmem:[%s3024_s30 + $0xd8] sm:$0xff]  ;;  %v3927_v46 = vpop.permute.xlu1 %1511 }
 0x5a6   : > { %1436 = vrot.lane.b32.xlu0 %v3851_v2, %s2756_s12  ;;  %v1387_v63 = vmul.f32 %v2642_v7, %v1347_v39  ;;  %v1386_v9 = vmul.f32 %v2644_v56, %v1346_v32  ;;  %v1392_v8 = vsub.f32 1.0, %v1384_v43  ;;  %v1422_v0 = vadd.f32 1.0, %v1414_v5 }
 0x5a7   : > { %v1393_v13 = vsub.f32 1.0, %v1385_v33  ;;  %v3866_v62 = vmul.f32 %v1423_v48, %v1231_v61  ;;  %v1230_v20 = vmul.f32 0.5, %v3740_v4  ;;  %vm1400_vm1 = vcmp.lt.f32.partialorder %v3773_v19, 0.0 }
 0x5a8   : > { %v1395_v28 = vsub.f32 1.0, %v1387_v63  ;;  %v1408_v51 = vsub.f32 0.0, %v1392_v8  ;;  %vm1401_vm4 = vcmp.lt.f32.partialorder %v3776_v59, 0.0  ;;  %v1394_v50 = vsub.f32 1.0, %v1386_v9  ;;  %v3923_v57 = vpop.permute.xlu0 %1528 }
 0x5a9   : > { %v1409_v22 = vsub.f32 0.0, %v1393_v13  ;;  %v1232_v54 = vmul.f32 0.5, %v3764_v29  ;;  %v3874_v55 = vmul.f32 %v1422_v0, %v1230_v20  ;;  %vm1403_vm5 = vcmp.lt.f32.partialorder %v3782_v14, 0.0  ;;  %v3931_v39 = vpop.permute.xlu1 %1533 }
 0x5aa   : > { %1440 = vrot.lane.b32.xlu0 %v3861_v23, %s2756_s12  ;;  %v1411_v21 = vsub.f32 0.0, %v1395_v28  ;;  %v1416_v7 = vsel %vm1400_vm1, %v1408_v51, %v1392_v8  ;;  %v1410_v19 = vsub.f32 0.0, %v1394_v50  ;;  %v1233_v59 = vmul.f32 0.5, %v3766_v17 }
 0x5ab   : > { %v1417_v36 = vsel %vm1401_vm4, %v1409_v22, %v1393_v13  ;;  %v1424_v10 = vadd.f32 1.0, %v1416_v7  ;;  %vm1402_vm15 = vcmp.lt.f32.partialorder %v3779_v25, 0.0  ;;  %v1235_v60 = vmul.f32 0.5, %v3770_v45  ;;  %v2454_v45 = vld [vmem:[%s3024_s30 + $0xd0] sm:$0xff] }
 0x5ac   : > { %v1425_v15 = vadd.f32 1.0, %v1417_v36  ;;  %v1419_v3 = vsel %vm1403_vm5, %v1411_v21, %v1395_v28  ;;  %v1418_v14 = vsel %vm1402_vm15, %v1410_v19, %v1394_v50  ;;  %v1234_v25 = vmul.f32 0.5, %v3768_v16  ;;  %v2452_v16 = vld [vmem:[%s3024_s30 + $0xc0] sm:$0xff]  ;;  %v3925_v12 = vpop.permute.xlu0 %1558 }
 0x5ad   : > { %v3877_v4 = vmul.f32 %v1424_v10, %v1232_v54  ;;  %v1427_v29 = vadd.f32 1.0, %v1419_v3  ;;  %v1426_v17 = vadd.f32 1.0, %v1418_v14  ;;  %v3935_v43 = vpop.permute.xlu1 %1563  ;;  %vm4734_vm1 = vcmp.lt.s32.totalorder %v3100_v26, 1 }
 0x5ae   : > { %1448 = vrot.lane.b32.xlu0 %v3866_v62, %s2756_s12  ;;  %v3885_v37 = vmul.f32 %v1425_v15, %v1233_v59  ;;  %vm4736_vm4 = vmmov %vm4734_vm1  ;;  %v1536_v15 = vmul.f32 %v3923_v57, %v3851_v2  ;;  %vm4738_vm5 = vcmp.lt.s32.totalorder %v3100_v26, 127 }
 0x5af   : > { %1438 = vrot.lane.b32.xlu1 %v3877_v4, %s2756_s12  ;;  %v3892_v24 = vmul.f32 %v1427_v29, %v1235_v60  ;;  %v3899_v11 = vmul.f32 %v1426_v17, %v1234_v25  ;;  %vm4739_vm15 = vmmov %vm4734_vm1  ;;  %v1538_v29 = vmul.f32 %v3923_v57, %v3874_v55 }
 0x5b0   : > { %v3929_v32 = vpop.permute.xlu0 %1670 }
 0x5b1   : > { %v3939_v56 = vpop.permute.xlu1 %1675 }
 0x5b2   : > { %1444 = vrot.lane.b32.xlu0 %v3874_v55, %s2756_s12 }
 0x5b3   : > { %1442 = vrot.lane.b32.xlu1 %v3885_v37, %s2756_s12 }
 0x5b4   : > { %v3933_v48 = vpop.permute.xlu0 %1692 }
 0x5b5   : > { %v3941_v63 = vpop.permute.xlu1 %1697 }
 0x5b6   : > { %1468 = vrot.lane.b32.xlu0 %v3851_v2, %s2757_s13 }
 0x5b7   : > { %1450 = vrot.lane.b32.xlu1 %v3892_v24, %s2756_s12 }
 0x5b8   : > { %v3937_v33 = vpop.permute.xlu0 %1722 }
 0x5b9   : > { %v3943_v8 = vpop.permute.xlu1 %1727 }
 0x5ba   : > { %1472 = vrot.lane.b32.xlu0 %v3861_v23, %s2757_s13 }
 0x5bb   : > { %1446 = vrot.lane.b32.xlu1 %v3899_v11, %s2756_s12 }
 0x5be   : > { %1476 = vrot.lane.b32.xlu0 %v3874_v55, %s2757_s13 }
 0x5bf   : > { %1470 = vrot.lane.b32.xlu1 %v3877_v4, %s2757_s13 }
 0x5c2   : > { %1480 = vrot.lane.b32.xlu0 %v3866_v62, %s2757_s13 }
 0x5c3   : > { %1474 = vrot.lane.b32.xlu1 %v3885_v37, %s2757_s13 }
 0x5c6   : > { %1588 = vperm.xlu0 %2607, %v2452_v16  }
 0x5c7   : > { %1478 = vrot.lane.b32.xlu1 %v3899_v11, %s2757_s13 }
 0x5ca   : > { %1610 = vperm.xlu0 %2607, %v2454_v45   ;;  %v1537_v45 = vmul.f32 %v3923_v57, %v3861_v23 }
 0x5cb   : > { %1482 = vrot.lane.b32.xlu1 %v3892_v24, %s2757_s13 }
 0x5ce   : > { %1640 = vperm.xlu0 %2607, %v2456_v41  }
 0x5cf   : > { %1593 = vperm.xlu1 %2608, %v2453_v58  }
 0x5d3   : > { %1615 = vperm.xlu1 %2608, %v2455_v18  }
 0x5d7   : > { %1645 = vperm.xlu1 %2608, %v2457_v30  }
 0x618   : > { %v1437_v5 = vpop.permute.xlu0 %1436 }
 0x61c   : > { %v1441_v61 = vpop.permute.xlu0 %1440 }
 0x61d   : > { %v1456_v50 = vsel %vm4736_vm4, %v1437_v5, %v1441_v61 }
 0x61e   : > { %v3961_v54 = vsel %vm3125_vm6, %v3861_v23, %v1456_v50 }
 0x61f   : > { %v1515_v60 = vmul.f32 %v3921_v34, %v3961_v54  ;;  %v1679_v51 = vmul.f32 %v3929_v32, %v3961_v54 }
 0x620   : > { %v1449_v9 = vpop.permute.xlu0 %1448 }
 0x621   : > { %v1439_v28 = vpop.permute.xlu1 %1438  ;;  %v1458_v0 = vsel %vm4734_vm1, %v1449_v9, %v1437_v5  ;;  %vm4742_vm1 = vmmov %vm4738_vm5 }
 0x622   : > { %v3950_v22 = vsel %vm3135_vm8, %v3851_v2, %v1458_v0 }
 0x623   : > { %v1514_v7 = vmul.f32 %v3921_v34, %v3950_v22 }
 0x624   : > { %v1445_v13 = vpop.permute.xlu0 %1444 }
 0x625   : > { %v3954_v21 = vpop.permute.xlu1 %1442  ;;  %v1452_v59 = vsel %vm4739_vm15, %v1445_v13, %v1449_v9  ;;  %v1544_v17 = vadd.f32 %v1536_v15, %v1514_v7  ;;  %v1545_v7 = vadd.f32 %v1537_v45, %v1515_v60  ;;  %v1539_v60 = vmul.f32 %v3923_v57, %v3866_v62  ;;  %vm4745_vm15 = vmmov %vm4736_vm4 }
 0x626   : > { %v3983_v58 = vsel %vm3150_vm10, %v3866_v62, %v1452_v59  ;;  %v1457_v45 = vsel %vm4745_vm15, %v1439_v28, %v3954_v21 }
 0x628   : > { %v1469_v20 = vpop.permute.xlu0 %1468 }
 0x629   : > { %v1451_v19 = vpop.permute.xlu1 %1450 }
 0x62a   : > { %v1459_v9 = vsel %vm4736_vm4, %v1451_v19, %v1439_v28 }
 0x62b   : > { %v4005_v59 = vsel %vm3135_vm8, %v3877_v4, %v1459_v9 }
 0x62c   : > { %v1473_v10 = vpop.permute.xlu0 %1472  ;;  %v1518_v28 = vmul.f32 %v3927_v46, %v4005_v59 }
 0x62d   : > { %v1488_v3 = vsel %vm4738_vm5, %v1469_v20, %v1473_v10  ;;  %v1447_v18 = vpop.permute.xlu1 %1446  ;;  %vm4744_vm5 = vmmov %vm4742_vm1 }
 0x62e   : > { %v3972_v14 = vsel %vm3154_vm11, %v3851_v2, %v1488_v3  ;;  %vm4749_vm8 = vmmov %vm4744_vm5 }
 0x62f   : > { %v1566_v25 = vmul.f32 %v3925_v12, %v3972_v14 }
 0x630   : > { %v1477_v16 = vpop.permute.xlu0 %1476 }
 0x631   : > { %v1486_v30 = vsel %vm4742_vm1, %v1473_v10, %v1477_v16  ;;  %v3987_v5 = vadd.f32 %v1566_v25, %v1544_v17  ;;  %v1517_v10 = vmul.f32 %v3921_v34, %v3983_v58  ;;  %v1471_v17 = vpop.permute.xlu1 %1470  ;;  %vm4746_vm1 = vmmov %vm4736_vm4 }
 0x632   : > { %v3994_v50 = vsel %vm3176_vm12, %v3861_v23, %v1486_v30  ;;  %v1454_v6 = vsel %vm4746_vm1, %v1441_v61, %v1445_v13  ;;  %v1540_v13 = vmul.f32 %v3931_v39, %v3877_v4  ;;  %vm4750_vm4 = vmmov %vm4746_vm1 }
 0x633   : > { %1746 = vrot.lane.b32.xlu0 %v3987_v5, %s2758_s2  ;;  %v1567_v15 = vmul.f32 %v3925_v12, %v3994_v50  ;;  %v4043_v47 = vsel %vm3146_vm9, %v3874_v55, %v1454_v6  ;;  %v1731_v42 = vmul.f32 %v3937_v33, %v3994_v50 }
 0x634   : > { %v1481_v3 = vpop.permute.xlu0 %1480  ;;  %v1548_v52 = vadd.f32 %v1540_v13, %v1518_v28 }
 0x635   : > { %v1490_v25 = vsel %vm4744_vm5, %v1481_v3, %v1469_v20  ;;  %v4009_v30 = vadd.f32 %v1567_v15, %v1545_v7  ;;  %v1701_v20 = vmul.f32 %v3933_v48, %v3861_v23  ;;  %v1547_v7 = vadd.f32 %v1539_v60, %v1517_v10  ;;  %v1475_v44 = vpop.permute.xlu1 %1474 }
 0x636   : > { %v4023_v35 = vsel %vm3328_vm14, %v3866_v62, %v1490_v25  ;;  %v4038_v15 = vsel %vm3125_vm6, %v3885_v37, %v1457_v45  ;;  %v1484_v10 = vsel %vm4749_vm8, %v1477_v16, %v1481_v3  ;;  %v1453_v60 = vsel %vm4750_vm4, %v1447_v18, %v1451_v19  ;;  %vm4753_vm6 = vmmov %vm4744_vm5 }
 0x637   : > { %1750 = vrot.lane.b32.xlu0 %v4009_v30, %s2758_s2  ;;  %v1569_v61 = vmul.f32 %v3925_v12, %v4023_v35  ;;  %v1489_v36 = vsel %vm4744_vm5, %v1471_v17, %v1475_v44  ;;  %v1709_v53 = vadd.f32 %v1701_v20, %v1679_v51  ;;  %v1519_v16 = vmul.f32 %v3927_v46, %v4038_v15 }
 0x638   : > { %v4058_v6 = vsel %vm3154_vm11, %v3877_v4, %v1489_v36  ;;  %v4065_v19 = vsel %vm3243_vm13, %v3874_v55, %v1484_v10  ;;  %v1700_v51 = vmul.f32 %v3933_v48, %v3851_v2  ;;  %v1680_v20 = vmul.f32 %v3929_v32, %v4043_v47  ;;  %vm4754_vm11 = vmmov %vm4746_vm1 }
 0x639   : > { %v4053_v45 = vadd.f32 %v1569_v61, %v1547_v7  ;;  %v1570_v31 = vmul.f32 %v3935_v43, %v4058_v6  ;;  %v4080_v7 = vsel %vm3150_vm10, %v3892_v24, %v1453_v60  ;;  %v1479_v28 = vpop.permute.xlu1 %1478  ;;  %v1541_v61 = vmul.f32 %v3931_v39, %v3885_v37  ;;  %vm4755_vm10 = vmmov %vm4744_vm5 }
 0x63a   : > { %v1487_v13 = vsel %vm4753_vm6, %v1475_v44, %v1479_v28  ;;  %v4088_v57 = vadd.f32 %v1731_v42, %v1709_v53  ;;  %v1702_v36 = vmul.f32 %v3933_v48, %v3874_v55  ;;  %v1455_v41 = vsel %vm4754_vm11, %v3954_v21, %v1447_v18 }
 0x63b   : > { %4751 = vst [vmem:[#allocation18_spill] sm:$0xff] %v4053_v45  ;;  %1758 = vrot.lane.b32.xlu0 %v4053_v45, %s2758_s2  ;;  %v4086_v10 = vadd.f32 %v1570_v31, %v1548_v52  ;;  %v1732_v60 = vmul.f32 %v3937_v33, %v4065_v19  ;;  %v4100_v27 = vsel %vm3176_vm12, %v3885_v37, %v1487_v13  ;;  %vm4756_vm12 = vmmov %vm4744_vm5 }
 0x63c   : > { %v1521_v44 = vmul.f32 %v3927_v46, %v4080_v7  ;;  %v1549_v42 = vadd.f32 %v1541_v61, %v1519_v16  ;;  %v1571_v31 = vmul.f32 %v3935_v43, %v4100_v27  ;;  %v1543_v52 = vmul.f32 %v3931_v39, %v3892_v24 }
 0x63d   : > { %1748 = vrot.lane.b32.xlu1 %v4086_v10, %s2758_s2  ;;  %v1678_v53 = vmul.f32 %v3929_v32, %v3950_v22  ;;  %v1516_v21 = vmul.f32 %v3921_v34, %v4043_v47  ;;  %v1710_v18 = vadd.f32 %v1702_v36, %v1680_v20  ;;  %v1483_v0 = vpop.permute.xlu1 %1482  ;;  %v4119_v16 = vsel %vm3146_vm9, %v3899_v11, %v1455_v41 }
 0x63e   : > { %v1485_v61 = vsel %vm4755_vm10, %v1479_v28, %v1483_v0  ;;  %v1491_v13 = vsel %vm4756_vm12, %v1483_v0, %v1471_v17  ;;  %v4125_v45 = vadd.f32 %v1571_v31, %v1549_v42  ;;  %v1683_v38 = vmul.f32 %v3939_v56, %v4038_v15 }
 0x63f   : > { %1790 = vrot.lane.b32.xlu0 %v4088_v57, %s2759_s14  ;;  %v1568_v34 = vmul.f32 %v3925_v12, %v4065_v19  ;;  %v4134_v25 = vsel %vm3328_vm14, %v3892_v24, %v1491_v13  ;;  %v4136_v20 = vadd.f32 %v1732_v60, %v1710_v18  ;;  %v1705_v28 = vmul.f32 %v3941_v63, %v3885_v37 }
 0x640   : > { %v1730_v17 = vmul.f32 %v3937_v33, %v3972_v14  ;;  %v1551_v36 = vadd.f32 %v1543_v52, %v1521_v44  ;;  %v1573_v12 = vmul.f32 %v3935_v43, %v4134_v25  ;;  %v1546_v41 = vadd.f32 %v1538_v29, %v1516_v21 }
 0x641   : > { %1752 = vrot.lane.b32.xlu1 %v4125_v45, %s2758_s2  ;;  %v1684_v9 = vmul.f32 %v3939_v56, %v4119_v16  ;;  %v1735_v60 = vmul.f32 %v3943_v8, %v4100_v27  ;;  %v4153_v42 = vsel %vm3243_vm13, %v3899_v11, %v1485_v61  ;;  %v1708_v44 = vadd.f32 %v1700_v51, %v1678_v53 }
 0x642   : > { %v4157_v52 = vadd.f32 %v1573_v12, %v1551_v36  ;;  %v1706_v29 = vmul.f32 %v3941_v63, %v3899_v11  ;;  %v1713_v21 = vadd.f32 %v1705_v28, %v1683_v38  ;;  %v4161_v18 = vadd.f32 %v1568_v34, %v1546_v41 }
 0x643   : > { %1794 = vrot.lane.b32.xlu0 %v4136_v20, %s2759_s14  ;;  %v1703_v0 = vmul.f32 %v3933_v48, %v3866_v62  ;;  %v1681_v3 = vmul.f32 %v3929_v32, %v3983_v58  ;;  %v1736_v61 = vmul.f32 %v3943_v8, %v4153_v42  ;;  %v4171_v51 = vadd.f32 %v1730_v17, %v1708_v44 }
 0x644   : > { %v1520_v53 = vmul.f32 %v3927_v46, %v4119_v16  ;;  %v1714_v38 = vadd.f32 %v1706_v29, %v1684_v9  ;;  %v1733_v13 = vmul.f32 %v3937_v33, %v4023_v35  ;;  %v4177_v34 = vadd.f32 %v1735_v60, %v1713_v21 }
 0x645   : > { %v1589_v31 = vpop.permute.xlu0 %1588  ;;  %1760 = vrot.lane.b32.xlu1 %v4157_v52, %s2758_s2  ;;  %v1542_v9 = vmul.f32 %v3931_v39, %v3899_v11  ;;  %v1711_v60 = vadd.f32 %v1703_v0, %v1681_v3  ;;  %v1682_v44 = vmul.f32 %v3939_v56, %v4005_v59  ;;  %vm4757_vm9 = vcmp.lt.s32.totalorder %v3100_v26, 16 }
 0x646   : > { %v1596_v46 = vmul.f32 %v1589_v31, %v3950_v22  ;;  %v1597_v12 = vmul.f32 %v1589_v31, %v3961_v54  ;;  %v1598_v33 = vmul.f32 %v1589_v31, %v4043_v47  ;;  %v1599_v41 = vmul.f32 %v1589_v31, %v3983_v58  ;;  %vm4758_vm13 = vmmov %vm4757_vm9 }
 0x647   : > { %1754 = vrot.lane.b32.xlu0 %v4161_v18, %s2758_s2  ;;  %v1550_v29 = vadd.f32 %v1542_v9, %v1520_v53  ;;  %v4205_v21 = vadd.f32 %v1733_v13, %v1711_v60  ;;  %v1707_v13 = vmul.f32 %v3941_v63, %v3892_v24  ;;  %vm4759_vm14 = vcmp.lt.s32.totalorder %v3100_v26, 112  ;;  %vm4760_vm15 = vmmov %vm4757_vm9 }
 0x648   : > { %vm4761_vm1 = vmmov %vm4757_vm9  ;;  %v4784_v26 = vmov 0.0  }
 0x649   : > { %v1611_v32 = vpop.permute.xlu0 %1610  ;;  %1792 = vrot.lane.b32.xlu1 %v4177_v34, %s2759_s14  ;;  %vm4762_vm8 = vmmov %vm4759_vm14 }
 0x64a   : > { %v1618_v48 = vmul.f32 %v1611_v32, %v3851_v2  ;;  %v1619_v28 = vmul.f32 %v1611_v32, %v3861_v23  ;;  %v1620_v17 = vmul.f32 %v1611_v32, %v3874_v55  ;;  %v1621_v36 = vmul.f32 %v1611_v32, %v3866_v62  ;;  %vm4765_vm5 = vmmov %vm4762_vm8 }
 0x64b   : > { %v1572_v2 = vmul.f32 %v3935_v43, %v4153_v42  ;;  %v4195_v23 = vadd.f32 %v1736_v61, %v1714_v38  ;;  %1786 = vrot.lane.b32.xlu0 %v4171_v51, %s2759_s14  ;;  %vm4774_vm10 = vmmov %vm4765_vm5 }
 0x64c   : > { %v1626_v62 = vadd.f32 %v1618_v48, %v1596_v46  ;;  %v1627_v55 = vadd.f32 %v1619_v28, %v1597_v12  ;;  %v1628_v22 = vadd.f32 %v1620_v17, %v1598_v33  ;;  %v1629_v54 = vadd.f32 %v1621_v36, %v1599_v41  ;;  %vm4775_vm12 = vmmov %vm4765_vm5 }
 0x64d   : > { %v1641_v47 = vpop.permute.xlu0 %1640  ;;  %1796 = vrot.lane.b32.xlu1 %v4195_v23, %s2759_s14  ;;  %v4223_v38 = vadd.f32 %v1572_v2, %v1550_v29  ;;  %v1737_v48 = vmul.f32 %v3943_v8, %v4134_v25 }
 0x64e   : > { %v1648_v58 = vmul.f32 %v1641_v47, %v3972_v14  ;;  %v1649_v39 = vmul.f32 %v1641_v47, %v3994_v50  ;;  %v1650_v31 = vmul.f32 %v1641_v47, %v4065_v19  ;;  %v1651_v43 = vmul.f32 %v1641_v47, %v4023_v35  ;;  %v1594_v53 = vpop.permute.xlu1 %1593 }
 0x64f   : > { %1798 = vrot.lane.b32.xlu0 %v4205_v21, %s2759_s14  ;;  %v1704_v35 = vmul.f32 %v3941_v63, %v3877_v4  ;;  %v1685_v50 = vmul.f32 %v3939_v56, %v4080_v7  ;;  %v1734_v19 = vmul.f32 %v3943_v8, %v4058_v6  ;;  %v1600_v63 = vmul.f32 %v1594_v53, %v4005_v59 }
 0x650   : > { %v1657_v0 = vadd.f32 %v1649_v39, %v1627_v55  ;;  %v4209_v3 = vadd.f32 %v1648_v58, %v1626_v62  ;;  %v4211_v61 = vadd.f32 %v1650_v31, %v1628_v22  ;;  %v4213_v14 = vadd.f32 %v1651_v43, %v1629_v54 }
 0x651   : > { %v1712_v32 = vadd.f32 %v1704_v35, %v1682_v44  ;;  %1756 = vrot.lane.b32.xlu1 %v4223_v38, %s2758_s2  ;;  %v1715_v28 = vadd.f32 %v1707_v13, %v1685_v50  ;;  %v1601_v41 = vmul.f32 %v1594_v53, %v4038_v15  ;;  %v1602_v9 = vmul.f32 %v1594_v53, %v4119_v16 }
 0x652   : > { %v1616_v17 = vpop.permute.xlu1 %1615  ;;  %v1603_v8 = vmul.f32 %v1594_v53, %v4080_v7 }
 0x653   : > { %v4231_v36 = vadd.f32 %v1734_v19, %v1712_v32  ;;  %v1622_v56 = vmul.f32 %v1616_v17, %v3877_v4  ;;  %v1623_v46 = vmul.f32 %v1616_v17, %v3885_v37  ;;  %v1624_v12 = vmul.f32 %v1616_v17, %v3899_v11 }
 0x654   : > { %v1625_v33 = vmul.f32 %v1616_v17, %v3892_v24  ;;  %v4243_v60 = vadd.f32 %v1737_v48, %v1715_v28 }
 0x655   : > { %1788 = vrot.lane.b32.xlu1 %v4231_v36, %s2759_s14  ;;  %v1630_v4 = vadd.f32 %v1622_v56, %v1600_v63  ;;  %v1631_v2 = vadd.f32 %v1623_v46, %v1601_v41  ;;  %v1632_v37 = vadd.f32 %v1624_v12, %v1602_v9 }
 0x656   : > { %v1633_v62 = vadd.f32 %v1625_v33, %v1603_v8  ;;  %v1646_v11 = vpop.permute.xlu1 %1645 }
 0x657   : > { %v1652_v24 = vmul.f32 %v1646_v11, %v4058_v6  ;;  %v1653_v59 = vmul.f32 %v1646_v11, %v4100_v27  ;;  %v1654_v15 = vmul.f32 %v1646_v11, %v4153_v42  ;;  %v1655_v16 = vmul.f32 %v1646_v11, %v4134_v25 }
 0x659   : > { %1800 = vrot.lane.b32.xlu1 %v4243_v60, %s2759_s14  ;;  %v1661_v7 = vadd.f32 %v1653_v59, %v1631_v2  ;;  %v1660_v55 = vadd.f32 %v1652_v24, %v1630_v4  ;;  %v1662_v22 = vadd.f32 %v1654_v15, %v1632_v37  ;;  %v1663_v54 = vadd.f32 %v1655_v16, %v1633_v62  ;;  %v4769_v37 = vld [vmem:[#allocation18_spill] sm:$0xff]  ;;  %v4772_v24 = vld [vmem:[#allocation16_spill] sm:$0xff] }
 0x65a   : > { %v4770_v62 = vld [vmem:[#allocation14_spill] sm:$0xff]  ;;  %vm4773_vm11 = vnez %v4772_v24 }
 0x6a5   : > { %v1747_v47 = vpop.permute.xlu0 %1746 }
 0x6a9   : > { %v1751_v58 = vpop.permute.xlu0 %1750 }
 0x6aa   : > { %v1766_v27 = vsel %vm4757_vm9, %v1747_v47, %v1751_v58  ;;  %vm4776_vm9 = vmmov %vm4765_vm5 }
 0x6ab   : > { %v1771_v50 = vsel %vm3519_vm0, %v4009_v30, %v1766_v27 }
 0x6ac   : > { %v1779_v13 = vadd.f32 %v1771_v50, %v1657_v0 }
 0x6ad   : > { %v1759_v39 = vpop.permute.xlu0 %1758 }
 0x6ae   : > { %v1768_v17 = vsel %vm4760_vm15, %v1759_v39, %v1747_v47  ;;  %vm4782_vm15 = vmmov %vm4765_vm5 }
 0x6af   : > { %v1749_v31 = vpop.permute.xlu1 %1748 }
 0x6b1   : > { %v1791_v43 = vpop.permute.xlu0 %1790 }
 0x6b3   : > { %v1753_v44 = vpop.permute.xlu1 %1752 }
 0x6b4   : > { %v1767_v25 = vsel %vm4758_vm13, %v1749_v31, %v1753_v44 }
 0x6b5   : > { %v1795_v6 = vpop.permute.xlu0 %1794  ;;  %v1775_v53 = vsel %vm3519_vm0, %v4125_v45, %v1767_v25  ;;  %vm4763_vm0 = vmmov %vm4761_vm1 }
 0x6b6   : > { %v1804_v19 = vsel %vm4759_vm14, %v1791_v43, %v1795_v6  ;;  %v1783_v56 = vadd.f32 %v1775_v53, %v1661_v7  ;;  %vm4764_vm4 = vmmov %vm4763_vm0  ;;  %v2466_v53 = vld [vmem:[%s3640_s18 + $0x18] sm:$0xff] }
 0x6b7   : > { %v1761_v29 = vpop.permute.xlu1 %1760  ;;  %v1811_v32 = vsel %vm3536_vm2, %v4088_v57, %v1804_v19  ;;  %v1770_v57 = vsel %vm3540_vm3, %v3987_v5, %v1768_v17  ;;  %vm4767_vm6 = vmmov %vm4763_vm0 }
 0x6b8   : > { %v1769_v30 = vsel %vm4761_vm1, %v1761_v29, %v1749_v31  ;;  %v1819_v45 = vadd.f32 %v1811_v32, %v1779_v13  ;;  %v1778_v5 = vadd.f32 %v1770_v57, %v4209_v3  ;;  %vm4781_vm14 = vmmov %vm4765_vm5  ;;  %vm4783_vm1 = vcmask 130048  }
 0x6b9   : > { %v1755_v42 = vpop.permute.xlu0 %1754  ;;  %v1774_v12 = vsel %vm3540_vm3, %v4086_v10, %v1769_v30  ;;  %vm4771_vm3 = vnez %v4770_v62 }
 0x6ba   : > { %v1762_v63 = vsel %vm4763_vm0, %v1755_v42, %v1759_v39  ;;  %v1764_v41 = vsel %vm4764_vm4, %v1751_v58, %v1755_v42  ;;  %v1782_v10 = vadd.f32 %v1774_v12, %v1660_v55 }
 0x6bb   : > { %v1793_v35 = vpop.permute.xlu1 %1792  ;;  %v1772_v2 = vsel %vm3561_vm7, %v4161_v18, %v1764_v41  ;;  %v1773_v11 = vsel %vm4771_vm3, %v4769_v37, %v1762_v63 }
 0x6bc   : > { %v1780_v47 = vadd.f32 %v1772_v2, %v4211_v61  ;;  %v1781_v39 = vadd.f32 %v1773_v11, %v4213_v14 }
 0x6bd   : > { %v1787_v28 = vpop.permute.xlu0 %1786 }
 0x6be   : > { %v1806_v40 = vsel %vm4765_vm5, %v1787_v28, %v1791_v43  ;;  %v4777_v43 = vld [vmem:[#allocation17_spill] sm:$0xff] }
 0x6bf   : > { %v1797_v48 = vpop.permute.xlu1 %1796  ;;  %v1810_v59 = vsel %vm4773_vm11, %v4171_v51, %v1806_v40 }
 0x6c0   : > { %v1805_v46 = vsel %vm4762_vm8, %v1793_v35, %v1797_v48  ;;  %vm4785_vm8 = vmmov %vm4783_vm1 }
 0x6c1   : > { %v1815_v1 = vsel %vm3536_vm2, %v4177_v34, %v1805_v46  ;;  %vm4766_vm2 = vmmov %vm4763_vm0  ;;  %v1799_v8 = vpop.permute.xlu0 %1798 }
 0x6c2   : > { %v1823_v0 = vadd.f32 %v1815_v1, %v1783_v56  ;;  %v1802_v16 = vsel %vm4774_vm10, %v1795_v6, %v1799_v8  ;;  %v1808_v7 = vsel %vm4775_vm12, %v1799_v8, %v1787_v28  ;;  %v4779_v6 = vld [vmem:[#allocation30_spill] sm:$0xff]  ;;  %vm4786_vm0 = vmmov %vm4783_vm1 }
 0x6c3   : > { %v1757_v33 = vpop.permute.xlu1 %1756  ;;  %vm4780_vm13 = vnez %v4779_v6  ;;  %vm4787_vm4 = vmmov %vm4786_vm0 }
 0x6c4   : > { %v2505_v34 = vpack.c.bf16 %v1823_v0, %v1819_v45  ;;  %v1765_v9 = vsel %vm4766_vm2, %v1753_v44, %v1757_v33  ;;  %v1763_v49 = vsel %vm4767_vm6, %v1757_v33, %v1761_v29 }
 0x6c5   : > { %v1776_v3 = vsel %vm3561_vm7, %v4223_v38, %v1765_v9  ;;  %v1777_v55 = vsel %vm4771_vm3, %v4157_v52, %v1763_v49  ;;  %v1818_v38 = vadd.f32 %v1810_v59, %v1778_v5  ;;  %vm4778_vm7 = vnez %v4777_v43  ;;  %v2472_v43 = vld [vmem:[%s3708_s20 + $0x10] sm:$0xff] }
 0x6c6   : > { %2506 = vmatprep.subr.bf16.mxu0 %v2505_v34  ;;  %v1784_v31 = vadd.f32 %v1776_v3, %v1662_v22  ;;  %v1812_v44 = vsel %vm4778_vm7, %v4136_v20, %v1802_v16  ;;  %v1813_v52 = vsel %vm4780_vm13, %v4205_v21, %v1808_v7  ;;  %v1785_v27 = vadd.f32 %v1777_v55, %v1663_v54 }
 0x6c7   : > { %v1789_v15 = vpop.permute.xlu1 %1788  ;;  %v1820_v22 = vadd.f32 %v1812_v44, %v1780_v47  ;;  %v1821_v21 = vadd.f32 %v1813_v52, %v1781_v39  ;;  %v2475_v52 = vld [vmem:[%s3715_s3 + $0x10] sm:$0xff] }
 0x6c8   : > { %v1807_v18 = vsel %vm4776_vm9, %v1789_v15, %v1793_v35  ;;  %v2465_v35 = vld [vmem:[%s3640_s18 + $0x10] sm:$0xff] }
 0x6c9   : > { %v1814_v51 = vsel %vm4773_vm11, %v4231_v36, %v1807_v18 }
 0x6ca   : > { %v1822_v58 = vadd.f32 %v1814_v51, %v1782_v10 }
 0x6cb   : > { %v1801_v29 = vpop.permute.xlu1 %1800 }
 0x6cc   : > { %v2507_v42 = vpack.c.bf16 %v1822_v58, %v1818_v38  ;;  %v1803_v61 = vsel %vm4781_vm14, %v1797_v48, %v1801_v29  ;;  %v1809_v14 = vsel %vm4782_vm15, %v1801_v29, %v1789_v15  ;;  %v2473_v29 = vld [vmem:[%s3708_s20 + $0x18] sm:$0xff] }
 0x6cd   : > { %v1816_v36 = vsel %vm4778_vm7, %v4195_v23, %v1803_v61  ;;  %v1817_v20 = vsel %vm4780_vm13, %v4243_v60, %v1809_v14 }
 0x6ce   : > { %v1824_v25 = vadd.f32 %v1816_v36, %v1784_v31  ;;  %v1825_v54 = vadd.f32 %v1817_v20, %v1785_v27  ;;  %2508 = vmatpush1.bf16.msra.mxu0 %v2507_v42  ;;  %v2476_v36 = vld [vmem:[%s3715_s3 + $0x18] sm:$0xff] }
 0x6d0   : > { %v2511_v50 = vpack.c.bf16 %v1824_v25, %v1820_v22  ;;  %v2509_v19 = vpack.c.bf16 %v1825_v54, %v1821_v21 }
 0x6d1   : > { %2467 = vmatmul.mubr.msk.f32.vlgmr.msra.gmra.mrb[4].mxu0 %vm4783_vm1, %v2465_v35 }
 0x6d2   : > { %2510 = vmatprep.subr.bf16.mxu1 %v2509_v19  ;;  %1906 = vmatprep.mubr.f32.mxu0 %v4784_v26 }
 0x6d3   : > { %2512 = vmatpush1.bf16.msra.mxu1 %v2511_v50 }
 0x6d5   : > { %2468 = vmatmul.mubr.msk.f32.gmra.mrb[6].mxu0 %vm4785_vm8, %v2466_v53 }
 0x6d6   : > { %2469 = vmatmul.mubr.msk.f32.vlgmr.msra.gmra.mrb[4].mxu1 %vm4786_vm0, %v2465_v35 }
 0x6d7   : > { %1983 = vmatprep.mubr.f32.mxu1 %v4784_v26 }
 0x6da   : > { %2470 = vmatmul.mubr.msk.f32.gmra.mrb[6].mxu1 %vm4787_vm4, %v2466_v53 }
 0x7a4   : > { %v4342_v23 = vpop.f32.mrb[4].mxu0 }
 0x7a5   : > { %v2006_v60 = vmul.f32 %v4342_v23, %v4342_v23  ;;  %v4346_v13 = vpop.f32.mrb[5].mxu0 }
 0x7a6   : > { %v1996_v32 = vadd.f32 %v4346_v13, %v4342_v23  ;;  %v2007_v48 = vmul.f32 %v4346_v13, %v4346_v13 }
 0x7a8   : > { %v2014_v28 = vadd.f32 %v2007_v48, %v2006_v60  ;;  %v4352_v17 = vpop.f32.mrb[6].mxu0 }
 0x7a9   : > { %v1979_v56 = vpop.f32.mrb[4].mxu1  ;;  %v2010_v30 = vmul.f32 %v4352_v17, %v4352_v17  ;;  %v4356_v46 = vpop.f32.mrb[7].mxu0 }
 0x7aa   : > { %v1997_v1 = vadd.f32 %v1996_v32, %v1979_v56  ;;  %v2008_v45 = vmul.f32 %v1979_v56, %v1979_v56  ;;  %v1981_v0 = vpop.f32.mrb[5].mxu1  ;;  %v2001_v57 = vadd.f32 %v4356_v46, %v4352_v17  ;;  %v2011_v12 = vmul.f32 %v4356_v46, %v4356_v46 }
 0x7ab   : > { %v2009_v33 = vmul.f32 %v1981_v0, %v1981_v0 }
 0x7ac   : > { %v2015_v63 = vadd.f32 %v2014_v28, %v2008_v45  ;;  %v1998_v41 = vadd.f32 %v1997_v1, %v1981_v0  ;;  %v2019_v40 = vadd.f32 %v2011_v12, %v2010_v30 }
 0x7ad   : > { %v4362_v34 = vpop.f32.mrb[6].mxu1 }
 0x7ae   : > { %1999 = vadd.xlane.f32.xlu0 %v1998_v41  ;;  %v2002_v9 = vadd.f32 %v2001_v57, %v4362_v34  ;;  %v2012_v8 = vmul.f32 %v4362_v34, %v4362_v34  ;;  %v4367_v5 = vpop.f32.mrb[7].mxu1  ;;  %v2016_v49 = vadd.f32 %v2015_v63, %v2009_v33 }
 0x7af   : > { %v2013_v10 = vmul.f32 %v4367_v5, %v4367_v5 }
 0x7b0   : > { %v2020_v4 = vadd.f32 %v2019_v40, %v2012_v8  ;;  %v2003_v2 = vadd.f32 %v2002_v9, %v4367_v5 }
 0x7b2   : > { %v2021_v37 = vadd.f32 %v2020_v4, %v2013_v10  ;;  %2017 = vadd.xlane.f32.xlu0 %v2016_v49  ;;  %2004 = vadd.xlane.f32.xlu1 %v2003_v2 }
 0x7b6   : > { %2022 = vadd.xlane.f32.xlu0 %v2021_v37 }
 0x83b   : > { %v2000_v62 = vpop.xlane.xlu0 %1999 }
 0x83c   : > { %v2024_v11 = vmul.f32 0.001953125, %v2000_v62 }
 0x83e   : > { %v2028_v15 = vmul.f32 %v2024_v11, %v2024_v11 }
 0x83f   : > { %v2018_v24 = vpop.xlane.xlu0 %2017  ;;  %v2005_v59 = vpop.xlane.xlu1 %2004 }
 0x840   : > { %v2026_v3 = vmul.f32 0.001953125, %v2018_v24  ;;  %v2025_v16 = vmul.f32 0.001953125, %v2005_v59 }
 0x842   : > { %v2030_v7 = vsub.f32 %v2026_v3, %v2028_v15  ;;  %v2029_v51 = vmul.f32 %v2025_v16, %v2025_v16 }
 0x843   : > { %v2023_v18 = vpop.xlane.xlu0 %2022 }
 0x844   : > { %v2032_v55 = vmax.f32 %v2030_v7, 0.0  ;;  %v2027_v47 = vmul.f32 0.001953125, %v2023_v18 }
 0x846   : > { %v2034_v38 = vadd.f32 1e-05, %v2032_v55  ;;  %v2031_v58 = vsub.f32 %v2027_v47, %v2029_v51 }
 0x848   : > { %2645 = vrsqrt.f32 %v2034_v38  ;;  %v2033_v39 = vmax.f32 %v2031_v58, 0.0 }
 0x84a   : > { %v2035_v31 = vadd.f32 1e-05, %v2033_v39 }
 0x84c   : > { %2647 = vrsqrt.f32 %v2035_v31 }
 0x852   : > { %v2646_v44 = vpop.eup %2645 }
 0x853   : > { %v2038_v6 = vmul.f32 %v2646_v44, %v2472_v43 }
 0x855   : > { %2042 = vperm.xlu1 %2608, %v2038_v6   ;;  %v2058_v27 = vmul.f32 %v2038_v6, %v2024_v11 }
 0x856   : > { %v2648_v42 = vpop.eup %2647 }
 0x857   : > { %v2060_v61 = vsub.f32 %v2475_v52, %v2058_v27  ;;  %v2039_v14 = vmul.f32 %v2648_v42, %v2473_v29 }
 0x859   : > { %2064 = vperm.xlu1 %2608, %v2060_v61   ;;  %2047 = vperm.xlu0 %2607, %v2039_v14   ;;  %v2059_v20 = vmul.f32 %v2039_v14, %v2025_v16 }
 0x85b   : > { %v2061_v22 = vsub.f32 %v2476_v36, %v2059_v20 }
 0x85d   : > { %2069 = vperm.xlu1 %2608, %v2061_v22  }
 0x8d4   : > { %v2043_v21 = vpop.permute.xlu1 %2042 }
 0x8d5   : > { %v2050_v25 = vmul.f32 %v2043_v21, %v4342_v23  ;;  %v2051_v54 = vmul.f32 %v2043_v21, %v4346_v13  ;;  %v2052_v35 = vmul.f32 %v2043_v21, %v1979_v56  ;;  %v2053_v50 = vmul.f32 %v2043_v21, %v1981_v0 }
 0x8d8   : > { %v2065_v19 = vpop.permute.xlu1 %2064  ;;  %v2048_v13 = vpop.permute.xlu0 %2047 }
 0x8d9   : > { %v2072_v26 = vadd.f32 %v2065_v19, %v2050_v25  ;;  %v2073_v53 = vadd.f32 %v2065_v19, %v2051_v54  ;;  %v4378_v60 = vadd.f32 %v2065_v19, %v2052_v35  ;;  %v4380_v32 = vadd.f32 %v2065_v19, %v2053_v50 }
 0x8da   : > { %v2054_v41 = vmul.f32 %v2048_v13, %v4352_v17  ;;  %v2055_v40 = vmul.f32 %v2048_v13, %v4356_v46  ;;  %v2056_v9 = vmul.f32 %v2048_v13, %v4362_v34  ;;  %v2057_v49 = vmul.f32 %v2048_v13, %v4367_v5 }
 0x8db   : > { %v4382_v48 = vmul.f32 0.70710677, %v2072_v26  ;;  %v4384_v28 = vmul.f32 0.70710677, %v2073_v53  ;;  %v4387_v30 = vmul.f32 0.70710677, %v4378_v60 }
 0x8dc   : > { %v4390_v23 = vmul.f32 0.70710677, %v4380_v32  ;;  %v2070_v63 = vpop.permute.xlu1 %2069  ;;  %v4422_v51 = vmul.f32 0.5, %v2072_v26  ;;  %v4426_v39 = vmul.f32 0.5, %v2073_v53 }
 0x8dd   : > { %v2096_v56 = vand.u32 2147483647, %v4382_v48  ;;  %v2097_v1 = vand.u32 2147483647, %v4384_v28  ;;  %v2098_v45 = vand.u32 2147483647, %v4387_v30  ;;  %v4400_v62 = vadd.f32 %v2070_v63, %v2054_v41 }
 0x8de   : > { %v2099_v0 = vand.u32 2147483647, %v4390_v23  ;;  %v4402_v11 = vadd.f32 %v2070_v63, %v2055_v40  ;;  %v4404_v24 = vadd.f32 %v2070_v63, %v2056_v9  ;;  %v4406_v59 = vadd.f32 %v2070_v63, %v2057_v49 }
 0x8df   : > { %v2104_v57 = vmul.f32 0.3275911, %v2096_v56  ;;  %v2105_v12 = vmul.f32 0.3275911, %v2097_v1  ;;  %v2106_v33 = vmul.f32 0.3275911, %v2098_v45 }
 0x8e0   : > { %v2107_v8 = vmul.f32 0.3275911, %v2099_v0  ;;  %v2200_v17 = vsub.f32 0.0, %v2096_v56  ;;  %v2201_v46 = vsub.f32 0.0, %v2097_v1  ;;  %v4409_v34 = vmul.f32 0.70710677, %v4400_v62 }
 0x8e1   : > { %v2112_v10 = vadd.f32 1.0, %v2104_v57  ;;  %v2113_v4 = vadd.f32 1.0, %v2105_v12  ;;  %v2114_v2 = vadd.f32 1.0, %v2106_v33  ;;  %v4412_v5 = vmul.f32 0.70710677, %v4402_v11 }
 0x8e2   : > { %v2115_v37 = vadd.f32 1.0, %v2107_v8  ;;  %v2202_v15 = vsub.f32 0.0, %v2098_v45  ;;  %v4415_v3 = vmul.f32 0.70710677, %v4404_v24  ;;  %v4418_v16 = vmul.f32 0.70710677, %v4406_v59 }
 0x8e3   : > { %2649 = vrcp.f32 %v2112_v10  ;;  %v2203_v7 = vsub.f32 0.0, %v2099_v0  ;;  %v2100_v18 = vand.u32 2147483647, %v4409_v34  ;;  %v2101_v55 = vand.u32 2147483647, %v4412_v5 }
 0x8e4   : > { %2651 = vrcp.f32 %v2113_v4  ;;  %v2208_v47 = vmul.f32 %v2200_v17, %v2096_v56  ;;  %v2102_v38 = vand.u32 2147483647, %v4415_v3  ;;  %v2103_v58 = vand.u32 2147483647, %v4418_v16 }
 0x8e5   : > { %2653 = vrcp.f32 %v2114_v2  ;;  %v2209_v31 = vmul.f32 %v2201_v46, %v2097_v1  ;;  %v2108_v43 = vmul.f32 0.3275911, %v2100_v18  ;;  %v2109_v44 = vmul.f32 0.3275911, %v2101_v55 }
 0x8e6   : > { %2655 = vrcp.f32 %v2115_v37  ;;  %v2210_v6 = vmul.f32 %v2202_v15, %v2098_v45  ;;  %v2110_v52 = vmul.f32 0.3275911, %v2102_v38  ;;  %v2111_v29 = vmul.f32 0.3275911, %v2103_v58 }
 0x8e7   : > { %v2204_v27 = vsub.f32 0.0, %v2100_v18  ;;  %v2211_v42 = vmul.f32 %v2203_v7, %v2099_v0  ;;  %v2116_v61 = vadd.f32 1.0, %v2108_v43  ;;  %v2117_v14 = vadd.f32 1.0, %v2109_v44 }
 0x8e8   : > { %v2205_v36 = vsub.f32 0.0, %v2101_v55  ;;  %v2216_v22 = vmul.f32 1.442695, %v2208_v47  ;;  %v2118_v21 = vadd.f32 1.0, %v2110_v52  ;;  %v2119_v25 = vadd.f32 1.0, %v2111_v29 }
 0x8e9   : > { %v2206_v54 = vsub.f32 0.0, %v2102_v38  ;;  %v2218_v19 = vmul.f32 1.442695, %v2209_v31  ;;  %2657 = vrcp.f32 %v2116_v61  ;;  %v2207_v26 = vsub.f32 0.0, %v2103_v58 }
 0x8ea   : > { %v2220_v56 = vmul.f32 1.442695, %v2210_v6  ;;  %2659 = vrcp.f32 %v2117_v14  ;;  %v2212_v1 = vmul.f32 %v2204_v27, %v2100_v18  ;;  %v2213_v12 = vmul.f32 %v2205_v36, %v2101_v55 }
 0x8eb   : > { %2661 = vrcp.f32 %v2118_v21  ;;  %v2214_v41 = vmul.f32 %v2206_v54, %v2102_v38  ;;  %v2222_v8 = vmul.f32 1.442695, %v2211_v42  ;;  %v2215_v49 = vmul.f32 %v2207_v26, %v2103_v58 }
 0x8ec   : > { %2663 = vrcp.f32 %v2119_v25  ;;  %v2224_v2 = vmul.f32 1.442695, %v2212_v1  ;;  %v2226_v46 = vmul.f32 1.442695, %v2213_v12  ;;  %v4446_v58 = vmul.f32 0.5, %v4378_v60 }
 0x8ed   : > { %v4428_v20 = vpop.eup %2649  ;;  %2665 = vpow2.f32 %v2216_v22  ;;  %v2228_v18 = vmul.f32 1.442695, %v2214_v41  ;;  %v2230_v38 = vmul.f32 1.442695, %v2215_v49  ;;  %v4452_v6 = vmul.f32 0.5, %v4380_v32 }
 0x8ee   : > { %v4430_v35 = vpop.eup %2651  ;;  %v2128_v50 = vmul.f32 1.0614054, %v4428_v20  ;;  %2667 = vpow2.f32 %v2218_v19  ;;  %vm2248_vm5 = vcmp.lt.f32.partialorder %v4382_v48, 0.0  ;;  %vm2249_vm2 = vcmp.lt.f32.partialorder %v4384_v28, 0.0 }
 0x8ef   : > { %v4433_v53 = vpop.eup %2653  ;;  %v2129_v13 = vmul.f32 1.0614054, %v4430_v35  ;;  %2669 = vpow2.f32 %v2220_v56  ;;  %vm2250_vm6 = vcmp.lt.f32.partialorder %v4387_v30, 0.0  ;;  %vm2251_vm3 = vcmp.lt.f32.partialorder %v4390_v23, 0.0  ;;  %v4788_v30 = vld [vmem:[#allocation13_spill] sm:$0xff] }
 0x8f0   : > { %v4436_v45 = vpop.eup %2655  ;;  %v2130_v0 = vmul.f32 1.0614054, %v4433_v53  ;;  %v2136_v57 = vadd.f32 -1.4531521, %v2128_v50  ;;  %2671 = vpow2.f32 %v2222_v8  ;;  %vm2252_vm11 = vcmp.lt.f32.partialorder %v4409_v34, 0.0 }
 0x8f1   : > { %v2131_v33 = vmul.f32 1.0614054, %v4436_v45  ;;  %v2137_v63 = vadd.f32 -1.4531521, %v2129_v13  ;;  %2673 = vpow2.f32 %v2224_v2  ;;  %vm2253_vm10 = vcmp.lt.f32.partialorder %v4412_v5, 0.0 }
 0x8f2   : > { %v2138_v40 = vadd.f32 -1.4531521, %v2130_v0  ;;  %v2144_v9 = vmul.f32 %v4428_v20, %v2136_v57  ;;  %2675 = vpow2.f32 %v2226_v46  ;;  %vm2254_vm12 = vcmp.lt.f32.partialorder %v4415_v3, 0.0 }
 0x8f3   : > { %v2139_v10 = vadd.f32 -1.4531521, %v2131_v33  ;;  %v2145_v4 = vmul.f32 %v4430_v35, %v2137_v63  ;;  %v4449_v44 = vpop.eup %2657  ;;  %2677 = vpow2.f32 %v2228_v18  ;;  %vm2255_vm9 = vcmp.lt.f32.partialorder %v4418_v16, 0.0 }
 0x8f4   : > { %v2146_v37 = vmul.f32 %v4433_v53, %v2138_v40  ;;  %v2152_v17 = vadd.f32 1.4214138, %v2144_v9  ;;  %v4455_v27 = vpop.eup %2659  ;;  %v2132_v60 = vmul.f32 1.0614054, %v4449_v44  ;;  %2679 = vpow2.f32 %v2230_v38 }
 0x8f5   : > { %v2147_v15 = vmul.f32 %v4436_v45, %v2139_v10  ;;  %v2153_v7 = vadd.f32 1.4214138, %v2145_v4  ;;  %v4459_v14 = vpop.eup %2661  ;;  %v2133_v32 = vmul.f32 1.0614054, %v4455_v27 }
 0x8f6   : > { %v2154_v55 = vadd.f32 1.4214138, %v2146_v37  ;;  %v2160_v47 = vmul.f32 %v4428_v20, %v2152_v17  ;;  %v4463_v21 = vpop.eup %2663  ;;  %v2134_v50 = vmul.f32 1.0614054, %v4459_v14  ;;  %v2140_v19 = vadd.f32 -1.4531521, %v2132_v60 }
 0x8f7   : > { %v2155_v31 = vadd.f32 1.4214138, %v2147_v15  ;;  %v2161_v43 = vmul.f32 %v4430_v35, %v2153_v7  ;;  %v2135_v56 = vmul.f32 1.0614054, %v4463_v21  ;;  %v2141_v1 = vadd.f32 -1.4531521, %v2133_v32  ;;  %v2666_v0 = vpop.eup %2665 }
 0x8f8   : > { %v2162_v52 = vmul.f32 %v4433_v53, %v2154_v55  ;;  %v2168_v29 = vadd.f32 -0.28449672, %v2160_v47  ;;  %v2142_v33 = vadd.f32 -1.4531521, %v2134_v50  ;;  %v2148_v63 = vmul.f32 %v4449_v44, %v2140_v19  ;;  %v2668_v41 = vpop.eup %2667 }
 0x8f9   : > { %v2163_v42 = vmul.f32 %v4436_v45, %v2155_v31  ;;  %v2169_v61 = vadd.f32 -0.28449672, %v2161_v43  ;;  %v2143_v8 = vadd.f32 -1.4531521, %v2135_v56  ;;  %v2149_v49 = vmul.f32 %v4455_v27, %v2141_v1  ;;  %v2670_v10 = vpop.eup %2669 }
 0x8fa   : > { %v2170_v36 = vadd.f32 -0.28449672, %v2162_v52  ;;  %v2176_v22 = vmul.f32 %v4428_v20, %v2168_v29  ;;  %v2150_v37 = vmul.f32 %v4459_v14, %v2142_v33  ;;  %v2156_v17 = vadd.f32 1.4214138, %v2148_v63  ;;  %v2672_v46 = vpop.eup %2671 }
 0x8fb   : > { %v2171_v25 = vadd.f32 -0.28449672, %v2163_v42  ;;  %v2177_v54 = vmul.f32 %v4430_v35, %v2169_v61  ;;  %v2157_v18 = vadd.f32 1.4214138, %v2149_v49  ;;  %v2674_v55 = vpop.eup %2673 }
 0x8fc   : > { %v2178_v26 = vmul.f32 %v4433_v53, %v2170_v36  ;;  %v2184_v13 = vadd.f32 0.2548296, %v2176_v22  ;;  %v2158_v31 = vadd.f32 1.4214138, %v2150_v37  ;;  %v2676_v43 = vpop.eup %2675 }
 0x8fd   : > { %v2179_v57 = vmul.f32 %v4436_v45, %v2171_v25  ;;  %v2185_v12 = vadd.f32 0.2548296, %v2177_v54  ;;  %v2165_v61 = vmul.f32 %v4455_v27, %v2157_v18 }
 0x8fe   : > { %v2186_v40 = vadd.f32 0.2548296, %v2178_v26  ;;  %v2192_v9 = vmul.f32 %v4428_v20, %v2184_v13  ;;  %v2151_v20 = vmul.f32 %v4463_v21, %v2143_v8  ;;  %v2166_v22 = vmul.f32 %v4459_v14, %v2158_v31  ;;  %v4789_v31 = vld [vmem:[#allocation12_spill] sm:$0xff] }
 0x8ff   : > { %v2187_v4 = vadd.f32 0.2548296, %v2179_v57  ;;  %v2193_v2 = vmul.f32 %v4430_v35, %v2185_v12  ;;  %v2164_v35 = vmul.f32 %v4449_v44, %v2156_v17  ;;  %v2173_v19 = vadd.f32 -0.28449672, %v2165_v61 }
 0x900   : > { %v2194_v15 = vmul.f32 %v4433_v53, %v2186_v40  ;;  %v2232_v7 = vmul.f32 %v2666_v0, %v2192_v9  ;;  %v2159_v42 = vadd.f32 1.4214138, %v2151_v20  ;;  %v2678_v53 = vpop.eup %2677  ;;  %v2174_v56 = vadd.f32 -0.28449672, %v2166_v22 }
 0x901   : > { %v2195_v47 = vmul.f32 %v4436_v45, %v2187_v4  ;;  %v2233_v38 = vmul.f32 %v2668_v41, %v2193_v2  ;;  %v2172_v32 = vadd.f32 -0.28449672, %v2164_v35  ;;  %v2680_v25 = vpop.eup %2679  ;;  %v2181_v33 = vmul.f32 %v4455_v27, %v2173_v19 }
 0x902   : > { %v2234_v52 = vmul.f32 %v2670_v10, %v2194_v15  ;;  %v2240_v29 = vsub.f32 1.0, %v2232_v7  ;;  %v2167_v45 = vmul.f32 %v4463_v21, %v2159_v42  ;;  %v2182_v9 = vmul.f32 %v4459_v14, %v2174_v56 }
 0x903   : > { %v2235_v60 = vmul.f32 %v2672_v46, %v2195_v47  ;;  %v2241_v36 = vsub.f32 1.0, %v2233_v38  ;;  %v2180_v1 = vmul.f32 %v4449_v44, %v2172_v32  ;;  %v2189_v17 = vadd.f32 0.2548296, %v2181_v33  ;;  %v4793_v33 = vld [vmem:[#allocation8_spill] sm:$0xff] }
 0x904   : > { %v2242_v54 = vsub.f32 1.0, %v2234_v52  ;;  %v2256_v50 = vsub.f32 0.0, %v2240_v29  ;;  %v2175_v12 = vadd.f32 -0.28449672, %v2167_v45  ;;  %v2190_v15 = vadd.f32 0.2548296, %v2182_v9 }
 0x905   : > { %v2243_v26 = vsub.f32 1.0, %v2235_v60  ;;  %v2257_v13 = vsub.f32 0.0, %v2241_v36  ;;  %v2188_v4 = vadd.f32 0.2548296, %v2180_v1  ;;  %v2197_v38 = vmul.f32 %v4455_v27, %v2189_v17  ;;  %v4791_v60 = vld [vmem:[#allocation10_spill] sm:$0xff] }
 0x906   : > { %v2258_v0 = vsub.f32 0.0, %v2242_v54  ;;  %v2264_v57 = vsel %vm2248_vm5, %v2256_v50, %v2240_v29  ;;  %v2183_v10 = vmul.f32 %v4463_v21, %v2175_v12  ;;  %v4790_v29 = vld [vmem:[#allocation11_spill] sm:$0xff]  ;;  %v2085_v50 = vmul.f32 0.5, %v4402_v11  ;;  %v4792_v12 = vld [vmem:[#allocation9_spill] sm:$0xff] }
 0x907   : > { %v2259_v63 = vsub.f32 0.0, %v2243_v26  ;;  %v2265_v41 = vsel %vm2249_vm2, %v2257_v13, %v2241_v36  ;;  %v2272_v40 = vadd.f32 1.0, %v2264_v57  ;;  %v2196_v47 = vmul.f32 %v4449_v44, %v2188_v4 }
 0x908   : > { %v2266_v8 = vsel %vm2250_vm6, %v2258_v0, %v2242_v54  ;;  %v2273_v49 = vadd.f32 1.0, %v2265_v41  ;;  %v2191_v7 = vadd.f32 0.2548296, %v2183_v10  ;;  %v2237_v61 = vmul.f32 %v2676_v43, %v2197_v38 }
 0x909   : > { %v2267_v48 = vsel %vm2251_vm3, %v2259_v63, %v2243_v26  ;;  %v2274_v2 = vadd.f32 1.0, %v2266_v8  ;;  %v2280_v37 = vmul.f32 %v2272_v40, %v4422_v51  ;;  %v2198_v51 = vmul.f32 %v4459_v14, %v2190_v15  ;;  %v4794_v63 = vld [vmem:[#allocation7_spill] sm:$0xff]  ;;  %v4795_v40 = vld [vmem:[#allocation6_spill] sm:$0xff] }
 0x90a   : > { %v2275_v46 = vadd.f32 1.0, %v2267_v48  ;;  %v2281_v28 = vmul.f32 %v2273_v49, %v4426_v39  ;;  %v2199_v35 = vmul.f32 %v4463_v21, %v2191_v7  ;;  %v2236_v42 = vmul.f32 %v2674_v55, %v2196_v47 }
 0x90b   : > { %v2282_v20 = vmul.f32 %v2274_v2, %v4446_v58  ;;  %v2288_v18 = vadd.f32 %v4788_v30, %v2280_v37   ;;  %v2238_v36 = vmul.f32 %v2678_v53, %v2198_v51  ;;  %v2245_v44 = vsub.f32 1.0, %v2237_v61 }
 0x90c   : > { %v2283_v23 = vmul.f32 %v2275_v46, %v4452_v6  ;;  %v2289_v52 = vadd.f32 %v4789_v31, %v2281_v28   ;;  %v2239_v22 = vmul.f32 %v2680_v25, %v2199_v35  ;;  %v2244_v32 = vsub.f32 1.0, %v2236_v42 }
 0x90d   : > { %v2290_v39 = vadd.f32 %v4790_v29, %v2282_v20   ;;  %v2246_v54 = vsub.f32 1.0, %v2238_v36  ;;  %v2084_v6 = vmul.f32 0.5, %v4400_v62  ;;  %v2261_v14 = vsub.f32 0.0, %v2245_v44  ;;  %2296 = vst [vmem:[%s4571_s11] sm:$0xff] (%p482_p0), %v2288_v18 }
 0x90e   : > { %v2291_v58 = vadd.f32 %v4791_v60, %v2283_v23   ;;  %v2247_v27 = vsub.f32 1.0, %v2239_v22  ;;  %v2260_v45 = vsub.f32 0.0, %v2244_v32  ;;  %v2086_v11 = vmul.f32 0.5, %v4404_v24  ;;  %2297 = vst [vmem:[%s4571_s11 + $0x8] sm:$0xff] (%p482_p0), %v2289_v52 }
 0x90f   : > { %v2262_v21 = vsub.f32 0.0, %v2246_v54  ;;  %v2269_v53 = vsel %vm2253_vm10, %v2261_v14, %v2245_v44  ;;  %v2087_v13 = vmul.f32 0.5, %v4406_v59  ;;  %v4801_v44 = vmov %v2290_v39  ;;  %2477 = vst [vmem:[%s4571_s11 + $0x20] sm:$0xff] (%p482_p0), %v2290_v39 }
 0x910   : > { %v2263_v55 = vsub.f32 0.0, %v2247_v27  ;;  %v2268_v43 = vsel %vm2252_vm11, %v2260_v45, %v2244_v32  ;;  %v2277_v62 = vadd.f32 1.0, %v2269_v53  ;;  %v4800_v47 = vmov %v2291_v58  ;;  %2478 = vst [vmem:[%s4571_s11 + $0x28] sm:$0xff] (%p482_p0), %v2291_v58 }
 0x911   : > { %v2270_v25 = vsel %vm2254_vm12, %v2262_v21, %v2246_v54  ;;  %v2276_v26 = vadd.f32 1.0, %v2268_v43  ;;  %v4802_v43 = vmov %v2289_v52  ;;  %v4803_v42 = vmov %v2288_v18 }
 0x912   : > { %v2271_v19 = vsel %vm2255_vm9, %v2263_v55, %v2247_v27  ;;  %v2278_v56 = vadd.f32 1.0, %v2270_v25  ;;  %v2285_v5 = vmul.f32 %v2277_v62, %v2085_v50 }
 0x913   : > { %v2279_v34 = vadd.f32 1.0, %v2271_v19  ;;  %v2284_v1 = vmul.f32 %v2276_v26, %v2084_v6  ;;  %484 = sbr.rel (!%p482_p0) target bundleno = 543 (0x21f), region = 101 }
 0x914   : > { %v2286_v0 = vmul.f32 %v2278_v56, %v2086_v11  ;;  %v2293_v16 = vadd.f32 %v4793_v33, %v2285_v5  }
 0x915   : > { %v2287_v57 = vmul.f32 %v2279_v34, %v2087_v13  ;;  %v2292_v3 = vadd.f32 %v4792_v12, %v2284_v1  }
 0x916   : > { %v2294_v41 = vadd.f32 %v4794_v63, %v2286_v0   ;;  %v4798_v36 = vmov %v2293_v16  ;;  %2299 = vst [vmem:[%s4571_s11 + $0x18] sm:$0xff] (%p482_p0), %v2293_v16 }
 0x917   : > { %v2295_v9 = vadd.f32 %v4795_v40, %v2287_v57   ;;  %v4799_v53 = vmov %v2292_v3  ;;  %2298 = vst [vmem:[%s4571_s11 + $0x10] sm:$0xff] (%p482_p0), %v2292_v3 }
 0x918   : > { %v4797_v54 = vmov %v2294_v41  ;;  %2479 = vst [vmem:[%s4571_s11 + $0x30] sm:$0xff] (%p482_p0), %v2294_v41 }
 0x919   : > { %v4796_v35 = vmov %v2295_v9  ;;  %2480 = vst [vmem:[%s4571_s11 + $0x38] sm:$0xff] (%p482_p0), %v2295_v9 }

</bundles_post_ra>
